<compile_context>
chip_gen: v5e
topology: v5e:2x2
jax: 0.10.0
libtpu: 0.0.40
codegen_flags: <defaults>
</compile_context>

<pallas_src>
import functools

import jax
import jax.numpy as jnp
import numpy as np
from jax import lax
from jax.experimental import pallas as pl
from jax.experimental.pallas import tpu as pltpu


def _round_up(a, m):
    return (a + m - 1) // m * m


def _sigmoid(x):
    # single EUP tanh per call (vs exp + reciprocal)
    return 0.5 * jnp.tanh(0.5 * x) + 0.5


# ------------------------------ fused kernel ---------------------------------
def _fused_rnn_kernel(x_ref, wih_ref, whh_ref, b_ref, w1_ref, b1_ref,
                      w3_ref, b3_ref, out_ref,
                      seq_sc, pre_sc, h_sc, c_sc, *, unroll):
    # x_ref:    (T, Bp, Dp)   padded time-major input          (f32)
    # wih_ref:  (1, Ki, G)    this layer's W_ih^T (gate-blocked, bf16)
    # whh_ref:  (1, Hp, G)    this layer's W_hh^T (gate-blocked, bf16)
    # b_ref:    (1, 1, G)     this layer's combined bias       (f32)
    # w1/b1:    (Hp, F1p) bf16 / (1, F1p) f32                  fc1
    # w3/b3:    (F1p, Cp) bf16 / (1, Cp) f32                   fc3
    # out_ref:  (Bp, Cp)      final logits (written at last layer only)
    # seq_sc:   (T, Bp, Hp)   inter-layer hidden sequence      (f32)
    # pre_sc:   (T, Bp, G)    hoisted input-gate halves + bias (f32)
    # h_sc/c_sc:(Bp, Hp)      recurrent state                  (f32)
    l = pl.program_id(0)
    num_layers = pl.num_programs(0)
    T, Bp, Hp = seq_sc.shape
    Dp = x_ref.shape[2]
    Ki = wih_ref.shape[1]
    G = pre_sc.shape[2]

    # ---- hoisted input projection: whole sequence in one matmul ----
    @pl.when(l == 0)
    def _():
        xs = x_ref[...].reshape(T * Bp, Dp).astype(jnp.bfloat16)
        w = wih_ref[0] if Dp == Ki else wih_ref[0, :Dp, :]
        pre = jnp.dot(xs, w, preferred_element_type=jnp.float32)
        pre_sc[...] = (pre + b_ref[0]).reshape(T, Bp, G)

    @pl.when(l != 0)
    def _():
        hs = seq_sc[...].reshape(T * Bp, Hp).astype(jnp.bfloat16)
        w = wih_ref[0] if Hp == Ki else wih_ref[0, :Hp, :]
        pre = jnp.dot(hs, w, preferred_element_type=jnp.float32)
        pre_sc[...] = (pre + b_ref[0]).reshape(T, Bp, G)

    # ---- serial recurrence over time (only h @ W_hh per step) ----
    h_sc[...] = jnp.zeros_like(h_sc)
    c_sc[...] = jnp.zeros_like(c_sc)

    def step(t, carry):
        gates = pre_sc[t] + jnp.dot(
            h_sc[...].astype(jnp.bfloat16), whh_ref[0],
            preferred_element_type=jnp.float32)            # (Bp, G) f32
        # 128-lane-aligned gate slices (free views)
        i_g = _sigmoid(gates[:, 0 * Hp:1 * Hp])
        f_g = _sigmoid(gates[:, 1 * Hp:2 * Hp])
        g_g = jnp.tanh(gates[:, 2 * Hp:3 * Hp])
        o_g = _sigmoid(gates[:, 3 * Hp:4 * Hp])
        c_new = f_g * c_sc[...] + i_g * g_g
        h_new = o_g * jnp.tanh(c_new)
        c_sc[...] = c_new
        h_sc[...] = h_new
        seq_sc[t] = h_new       # lane-dense store; input to the next layer
        return carry

    lax.fori_loop(0, T, step, 0, unroll=unroll)

    # ---- MLP head on the final hidden state, last layer only ----
    @pl.when(l == num_layers - 1)
    def _():
        h1 = jnp.maximum(
            jnp.dot(h_sc[...].astype(jnp.bfloat16), w1_ref[...],
                    preferred_element_type=jnp.float32) + b1_ref[...], 0.0)
        out_ref[...] = (
            jnp.dot(h1.astype(jnp.bfloat16), w3_ref[...],
                    preferred_element_type=jnp.float32) + b3_ref[...]
        ).astype(out_ref.dtype)


@functools.partial(jax.jit, static_argnames=("unroll",))
def _fused_rnn_call(x_p, wih, whh, b, w1, b1, w3, b3, *, unroll):
    T, Bp, Dp = x_p.shape
    L, Ki, G = wih.shape
    Hp = G // 4
    F1p = w1.shape[1]
    Cp = w3.shape[1]

    # Explicit VMEM budget: double-buffered input blocks + output + scratch.
    def _nb(shape, dtype):
        return int(np.prod(shape)) * jnp.dtype(dtype).itemsize

    in_block_bytes = (
        _nb((T, Bp, Dp), jnp.float32)
        + _nb((1, Ki, G), jnp.bfloat16) + _nb((1, Hp, G), jnp.bfloat16)
        + _nb((1, 1, G), jnp.float32)
        + _nb((Hp, F1p), jnp.bfloat16) + _nb((1, F1p), jnp.float32)
        + _nb((F1p, Cp), jnp.bfloat16) + _nb((1, Cp), jnp.float32))
    out_block_bytes = _nb((Bp, Cp), jnp.float32)
    scratch_bytes = (_nb((T, Bp, Hp), jnp.float32)
                     + _nb((T, Bp, G), jnp.float32)
                     + 2 * _nb((Bp, Hp), jnp.float32))
    vmem_limit = 2 * (in_block_bytes + out_block_bytes) + scratch_bytes
    vmem_limit = min(vmem_limit + (8 << 20), 64 << 20)

    return pl.pallas_call(
        functools.partial(_fused_rnn_kernel, unroll=unroll),
        out_shape=jax.ShapeDtypeStruct((Bp, Cp), jnp.float32),
        grid_spec=pltpu.PrefetchScalarGridSpec(
            num_scalar_prefetch=0,
            grid=(L,),                                  # stream weights per layer
            in_specs=[
                pl.BlockSpec((T, Bp, Dp), lambda l: (0, 0, 0)),
                pl.BlockSpec((1, Ki, G), lambda l: (l, 0, 0)),
                pl.BlockSpec((1, Hp, G), lambda l: (l, 0, 0)),
                pl.BlockSpec((1, 1, G), lambda l: (l, 0, 0)),
                pl.BlockSpec((Hp, F1p), lambda l: (0, 0)),
                pl.BlockSpec((1, F1p), lambda l: (0, 0)),
                pl.BlockSpec((F1p, Cp), lambda l: (0, 0)),
                pl.BlockSpec((1, Cp), lambda l: (0, 0)),
            ],
            out_specs=pl.BlockSpec((Bp, Cp), lambda l: (0, 0)),
            scratch_shapes=[
                pltpu.VMEM((T, Bp, Hp), jnp.float32),   # inter-layer hidden seq
                pltpu.VMEM((T, Bp, G), jnp.float32),    # hoisted gate halves
                pltpu.VMEM((Bp, Hp), jnp.float32),      # h state
                pltpu.VMEM((Bp, Hp), jnp.float32),      # c state
            ],
        ),
        compiler_params=pltpu.CompilerParams(
            dimension_semantics=("arbitrary",),
            vmem_limit_bytes=int(vmem_limit),
        ),
    )(x_p, wih, whh, b, w1, b1, w3, b3)


# --------------------------- parameter preparation ----------------------------
def _pack_gate_cols(mat, H, Hp):
    """mat: (rows, 4H) -> (rows, 4*Hp); each H-wide gate block (i,f,g,o) lands
    at the start of its own 128-aligned Hp-wide block, rest zero."""
    rows = mat.shape[0]
    out = jnp.zeros((rows, 4 * Hp), jnp.float32)
    for g in range(4):
        out = out.at[:, g * Hp:g * Hp + H].set(mat[:, g * H:(g + 1) * H])
    return out


def pad_params(params, input_size, hidden_size, num_layers, hidden_fc,
               num_classes):
    """One-time zero-padding / repacking of the PyTorch-layout weights."""
    H = hidden_size
    Hp = _round_up(H, 128)
    Dp = _round_up(input_size, 128)
    Ki = max(Dp, Hp)
    G = 4 * Hp
    F1p = _round_up(hidden_fc, 128)
    Cp = _round_up(num_classes, 128)

    wih = jnp.zeros((num_layers, Ki, G), jnp.float32)
    whh = jnp.zeros((num_layers, Hp, G), jnp.float32)
    bst = jnp.zeros((num_layers, 1, G), jnp.float32)
    for l in range(num_layers):
        w_ih, w_hh, b_ih, b_hh = params["lstm"][l]
        in_dim = w_ih.shape[1]
        wih = wih.at[l, :in_dim, :].set(
            _pack_gate_cols(w_ih.T.astype(jnp.float32), H, Hp))
        whh = whh.at[l, :H, :].set(
            _pack_gate_cols(w_hh.T.astype(jnp.float32), H, Hp))
        bst = bst.at[l, 0, :].set(
            _pack_gate_cols((b_ih + b_hh).reshape(1, 4 * H), H, Hp)[0])

    w1 = jnp.zeros((Hp, F1p), jnp.float32).at[:H, :hidden_fc].set(
        params["fc1_w"].T)
    b1 = jnp.zeros((1, F1p), jnp.float32).at[0, :hidden_fc].set(
        params["fc1_b"])
    w3 = jnp.zeros((F1p, Cp), jnp.float32).at[:hidden_fc, :num_classes].set(
        params["fc3_w"].T)
    b3 = jnp.zeros((1, Cp), jnp.float32).at[0, :num_classes].set(
        params["fc3_b"])

    return dict(wih=wih.astype(jnp.bfloat16), whh=whh.astype(jnp.bfloat16),
                b=bst, w1=w1.astype(jnp.bfloat16), b1=b1,
                w3=w3.astype(jnp.bfloat16), b3=b3)


# --------------------------------- full model ---------------------------------
@functools.partial(jax.jit, static_argnames=("num_classes",))
def rnn_forward(x, padded, num_classes):
    """x: (B, T, input_size) batch-first, same as PyTorch batch_first=True."""
    x = x.astype(jnp.float32)
    B, T, D = x.shape
    Dp = _round_up(D, 128)
    Bp = _round_up(B, 8)

    x_tm = jnp.transpose(x, (1, 0, 2))                       # (T, B, D)
    x_p = jnp.zeros((T, Bp, Dp), jnp.float32).at[:, :B, :D].set(x_tm)

    # NOTE: for Bp >= 16 a leading "parallel" batch-block grid axis would
    # engage v7x's second TensorCore / v6e megacore; at small B it is skipped.
    out_p = _fused_rnn_call(x_p, padded["wih"], padded["whh"], padded["b"],
                            padded["w1"], padded["b1"],
                            padded["w3"], padded["b3"],
                            unroll=min(T, 8))
    return out_p[:B, :num_classes]


# ------------------------------ parameter init --------------------------------
def init_params(key, input_size, hidden_size, num_layers, hidden_fc,
                num_classes):
    params = {"lstm": []}
    bound = 1.0 / np.sqrt(hidden_size)
    for layer in range(num_layers):
        in_dim = input_size if layer == 0 else hidden_size
        key, k1, k2, k3, k4 = jax.random.split(key, 5)
        w_ih = jax.random.uniform(k1, (4 * hidden_size, in_dim), jnp.float32,
                                  -bound, bound)
        w_hh = jax.random.uniform(k2, (4 * hidden_size, hidden_size),
                                  jnp.float32, -bound, bound)
        b_ih = jax.random.uniform(k3, (4 * hidden_size,), jnp.float32,
                                  -bound, bound)
        b_hh = jax.random.uniform(k4, (4 * hidden_size,), jnp.float32,
                                  -bound, bound)
        params["lstm"].append((w_ih, w_hh, b_ih, b_hh))
    key, k1, k2, k3, k4 = jax.random.split(key, 5)
    b1 = 1.0 / np.sqrt(hidden_size)
    b3 = 1.0 / np.sqrt(hidden_fc)
    params["fc1_w"] = jax.random.uniform(k1, (hidden_fc, hidden_size),
                                         jnp.float32, -b1, b1)
    params["fc1_b"] = jax.random.uniform(k2, (hidden_fc,), jnp.float32, -b1, b1)
    params["fc3_w"] = jax.random.uniform(k3, (num_classes, hidden_fc),
                                         jnp.float32, -b3, b3)
    params["fc3_b"] = jax.random.uniform(k4, (num_classes,), jnp.float32,
                                         -b3, b3)
    return params


# ------------------------------ pure-JAX reference -----------------------------
def ref_forward(x, params, num_layers, hidden_size):
    x = x.astype(jnp.float32)
    B, T, _ = x.shape
    seq = x
    for layer in range(num_layers):
        w_ih, w_hh, b_ih, b_hh = params["lstm"][layer]
        w_ih_t, w_hh_t, b = w_ih.T, w_hh.T, b_ih + b_hh

        def step(carry, x_t):
            h, c = carry
            gates = x_t @ w_ih_t + h @ w_hh_t + b
            H = hidden_size
            i = jax.nn.sigmoid(gates[:, :H])
            f = jax.nn.sigmoid(gates[:, H:2 * H])
            g = jnp.tanh(gates[:, 2 * H:3 * H])
            o = jax.nn.sigmoid(gates[:, 3 * H:])
            c = f * c + i * g
            h = o * jnp.tanh(c)
            return (h, c), h

        h0 = jnp.zeros((B, hidden_size), jnp.float32)
        c0 = jnp.zeros((B, hidden_size), jnp.float32)
        _, hs = jax.lax.scan(step, (h0, c0), jnp.transpose(seq, (1, 0, 2)))
        seq = jnp.transpose(hs, (1, 0, 2))
    last = seq[:, -1, :]
    h = jnp.maximum(last @ params["fc1_w"].T + params["fc1_b"], 0.0)
    return h @ params["fc3_w"].T + params["fc3_b"]


if __name__ == "__main__":
    # small shapes consistent with the module's forward
    B, T = 2, 8
    input_size, hidden_size, num_layers = 16, 32, 2
    hidden_fc, num_classes = 32, 8

    key = jax.random.PRNGKey(0)
    kx, kp = jax.random.split(key)
    x = jax.random.normal(kx, (B, T, input_size), dtype=jnp.float32)
    params = init_params(kp, input_size, hidden_size, num_layers, hidden_fc,
                         num_classes)
    padded = pad_params(params, input_size, hidden_size, num_layers, hidden_fc,
                        num_classes)

    out = rnn_forward(x, padded, num_classes)
    out = jax.block_until_ready(out)

    ref = ref_forward(x, params, num_layers, hidden_size)
    # bf16 weights / bf16 matmul LHS -> loosened tolerance vs f32 reference
    np.testing.assert_allclose(np.asarray(out), np.asarray(ref),
                               rtol=3e-2, atol=3e-2)

    print("KERNEL_OK")
</pallas_src>

<mosaic_0001>
module attributes {stable_mosaic.version = 11 : i64} {
  func.func @_fused_rnn_kernel(%arg0: i32, %arg1: memref<8x8x128xf32, #tpu.memory_space<vmem>>, %arg2: memref<1x128x512xbf16, #tpu.memory_space<vmem>>, %arg3: memref<1x128x512xbf16, #tpu.memory_space<vmem>>, %arg4: memref<1x1x512xf32, #tpu.memory_space<vmem>>, %arg5: memref<128x128xbf16, #tpu.memory_space<vmem>>, %arg6: memref<1x128xf32, #tpu.memory_space<vmem>>, %arg7: memref<128x128xbf16, #tpu.memory_space<vmem>>, %arg8: memref<1x128xf32, #tpu.memory_space<vmem>>, %arg9: memref<8x128xf32, #tpu.memory_space<vmem>>, %arg10: memref<8x8x128xf32, #tpu.memory_space<vmem>>, %arg11: memref<8x8x512xf32, #tpu.memory_space<vmem>>, %arg12: memref<8x128xf32, #tpu.memory_space<vmem>>, %arg13: memref<8x128xf32, #tpu.memory_space<vmem>>) attributes {dimension_semantics = [#tpu.dimension_semantics<arbitrary>], iteration_bounds = array<i64: 2>, scalar_prefetch = 0 : i64, scratch_operands = 4 : i64, tpu.core_type = #tpu.core_type<tc>, window_params = [{pipeline_mode = #tpu.pipeline_mode<synchronous>, transform_indices = @transform_0, window_bounds = array<i64: 8, 8, 128>}, {transform_indices = @transform_1, window_bounds = array<i64: 1, 128, 512>}, {transform_indices = @transform_2, window_bounds = array<i64: 1, 128, 512>}, {transform_indices = @transform_3, window_bounds = array<i64: 1, 1, 512>}, {pipeline_mode = #tpu.pipeline_mode<synchronous>, transform_indices = @transform_4, window_bounds = array<i64: 128, 128>}, {pipeline_mode = #tpu.pipeline_mode<synchronous>, transform_indices = @transform_5, window_bounds = array<i64: 1, 128>}, {pipeline_mode = #tpu.pipeline_mode<synchronous>, transform_indices = @transform_6, window_bounds = array<i64: 128, 128>}, {pipeline_mode = #tpu.pipeline_mode<synchronous>, transform_indices = @transform_7, window_bounds = array<i64: 1, 128>}, {pipeline_mode = #tpu.pipeline_mode<synchronous>, transform_indices = @transform_8, window_bounds = array<i64: 8, 128>}]} {
    %c0_i32 = arith.constant 0 : i32
    %0 = arith.cmpi eq, %arg0, %c0_i32 : i32
    %1 = arith.extui %0 : i1 to i32
    %c0_i32_0 = arith.constant 0 : i32
    %2 = arith.cmpi ne, %1, %c0_i32_0 : i32
    scf.if %2 {
      %c0_210 = arith.constant 0 : index
      %c0_211 = arith.constant 0 : index
      %c0_212 = arith.constant 0 : index
      %389 = vector.load %arg1[%c0_210, %c0_211, %c0_212] : memref<8x8x128xf32, #tpu.memory_space<vmem>>, vector<8x8x128xf32>
      %390 = vector.shape_cast %389 : vector<8x8x128xf32> to vector<64x128xf32>
      %391 = arith.truncf %390 : vector<64x128xf32> to vector<64x128xbf16>
      %c0_213 = arith.constant 0 : index
      %c0_214 = arith.constant 0 : index
      %c0_215 = arith.constant 0 : index
      %392 = vector.load %arg2[%c0_213, %c0_214, %c0_215] : memref<1x128x512xbf16, #tpu.memory_space<vmem>>, vector<1x128x512xbf16>
      %393 = vector.shape_cast %392 : vector<1x128x512xbf16> to vector<128x512xbf16>
      %cst_216 = arith.constant dense<0.000000e+00> : vector<64x512xf32>
      %394 = tpu.matmul %391, %393, %cst_216 {dimension_numbers = #tpu.dot_dimension_numbers<[1], [0], [0], [1], [0, 0, 1, 1], [], []>} : vector<64x128xbf16>, vector<128x512xbf16>, vector<64x512xf32> -> vector<64x512xf32>
      %c0_217 = arith.constant 0 : index
      %c0_218 = arith.constant 0 : index
      %c0_219 = arith.constant 0 : index
      %395 = vector.load %arg4[%c0_217, %c0_218, %c0_219] : memref<1x1x512xf32, #tpu.memory_space<vmem>>, vector<1x1x512xf32>
      %396 = vector.shape_cast %395 : vector<1x1x512xf32> to vector<1x512xf32>
      %397 = vector.broadcast %396 : vector<1x512xf32> to vector<64x512xf32>
      %398 = arith.addf %394, %397 : vector<64x512xf32>
      %399 = vector.shape_cast %398 : vector<64x512xf32> to vector<8x8x512xf32>
      %c0_220 = arith.constant 0 : index
      %c0_221 = arith.constant 0 : index
      %c0_222 = arith.constant 0 : index
      %400 = vector.load %arg11[%c0_220, %c0_221, %c0_222] : memref<8x8x512xf32, #tpu.memory_space<vmem>>, vector<8x8x512xf32>
      tpu.vector_store %arg11[%c0_220, %c0_221, %c0_222], %399 {strides = array<i32>} : memref<8x8x512xf32, #tpu.memory_space<vmem>>, vector<8x8x512xf32>,
    } else {
    }
    %c0_i32_1 = arith.constant 0 : i32
    %3 = arith.cmpi ne, %arg0, %c0_i32_1 : i32
    %4 = arith.extui %3 : i1 to i32
    %c0_i32_2 = arith.constant 0 : i32
    %5 = arith.cmpi ne, %4, %c0_i32_2 : i32
    scf.if %5 {
      %c0_210 = arith.constant 0 : index
      %c0_211 = arith.constant 0 : index
      %c0_212 = arith.constant 0 : index
      %389 = vector.load %arg10[%c0_210, %c0_211, %c0_212] : memref<8x8x128xf32, #tpu.memory_space<vmem>>, vector<8x8x128xf32>
      %390 = vector.shape_cast %389 : vector<8x8x128xf32> to vector<64x128xf32>
      %391 = arith.truncf %390 : vector<64x128xf32> to vector<64x128xbf16>
      %c0_213 = arith.constant 0 : index
      %c0_214 = arith.constant 0 : index
      %c0_215 = arith.constant 0 : index
      %392 = vector.load %arg2[%c0_213, %c0_214, %c0_215] : memref<1x128x512xbf16, #tpu.memory_space<vmem>>, vector<1x128x512xbf16>
      %393 = vector.shape_cast %392 : vector<1x128x512xbf16> to vector<128x512xbf16>
      %cst_216 = arith.constant dense<0.000000e+00> : vector<64x512xf32>
      %394 = tpu.matmul %391, %393, %cst_216 {dimension_numbers = #tpu.dot_dimension_numbers<[1], [0], [0], [1], [0, 0, 1, 1], [], []>} : vector<64x128xbf16>, vector<128x512xbf16>, vector<64x512xf32> -> vector<64x512xf32>
      %c0_217 = arith.constant 0 : index
      %c0_218 = arith.constant 0 : index
      %c0_219 = arith.constant 0 : index
      %395 = vector.load %arg4[%c0_217, %c0_218, %c0_219] : memref<1x1x512xf32, #tpu.memory_space<vmem>>, vector<1x1x512xf32>
      %396 = vector.shape_cast %395 : vector<1x1x512xf32> to vector<1x512xf32>
      %397 = vector.broadcast %396 : vector<1x512xf32> to vector<64x512xf32>
      %398 = arith.addf %394, %397 : vector<64x512xf32>
      %399 = vector.shape_cast %398 : vector<64x512xf32> to vector<8x8x512xf32>
      %c0_220 = arith.constant 0 : index
      %c0_221 = arith.constant 0 : index
      %c0_222 = arith.constant 0 : index
      %400 = vector.load %arg11[%c0_220, %c0_221, %c0_222] : memref<8x8x512xf32, #tpu.memory_space<vmem>>, vector<8x8x512xf32>
      tpu.vector_store %arg11[%c0_220, %c0_221, %c0_222], %399 {strides = array<i32>} : memref<8x8x512xf32, #tpu.memory_space<vmem>>, vector<8x8x512xf32>,
    } else {
    }
    %cst = arith.constant 0.000000e+00 : f32
    %6 = vector.broadcast %cst : f32 to vector<8x128xf32>
    %c0 = arith.constant 0 : index
    %c0_3 = arith.constant 0 : index
    %7 = vector.load %arg12[%c0, %c0_3] : memref<8x128xf32, #tpu.memory_space<vmem>>, vector<8x128xf32>
    tpu.vector_store %arg12[%c0, %c0_3], %6 {strides = array<i32>} : memref<8x128xf32, #tpu.memory_space<vmem>>, vector<8x128xf32>,
    %cst_4 = arith.constant 0.000000e+00 : f32
    %8 = vector.broadcast %cst_4 : f32 to vector<8x128xf32>
    %c0_5 = arith.constant 0 : index
    %c0_6 = arith.constant 0 : index
    %9 = vector.load %arg13[%c0_5, %c0_6] : memref<8x128xf32, #tpu.memory_space<vmem>>, vector<8x128xf32>
    tpu.vector_store %arg13[%c0_5, %c0_6], %8 {strides = array<i32>} : memref<8x128xf32, #tpu.memory_space<vmem>>, vector<8x128xf32>,
    %c0_i32_7 = arith.constant 0 : i32
    %10 = arith.index_cast %c0_i32_7 : i32 to index
    %c0_8 = arith.constant 0 : index
    %c0_9 = arith.constant 0 : index
    %11 = vector.load %arg11[%10, %c0_8, %c0_9] : memref<8x8x512xf32, #tpu.memory_space<vmem>>, vector<1x8x512xf32>
    %12 = vector.shape_cast %11 : vector<1x8x512xf32> to vector<8x512xf32>
    %c0_10 = arith.constant 0 : index
    %c0_11 = arith.constant 0 : index
    %13 = vector.load %arg12[%c0_10, %c0_11] : memref<8x128xf32, #tpu.memory_space<vmem>>, vector<8x128xf32>
    %14 = arith.truncf %13 : vector<8x128xf32> to vector<8x128xbf16>
    %c0_12 = arith.constant 0 : index
    %c0_13 = arith.constant 0 : index
    %c0_14 = arith.constant 0 : index
    %15 = vector.load %arg3[%c0_12, %c0_13, %c0_14] : memref<1x128x512xbf16, #tpu.memory_space<vmem>>, vector<1x128x512xbf16>
    %16 = vector.shape_cast %15 : vector<1x128x512xbf16> to vector<128x512xbf16>
    %cst_15 = arith.constant dense<0.000000e+00> : vector<8x512xf32>
    %17 = tpu.matmul %14, %16, %cst_15 {dimension_numbers = #tpu.dot_dimension_numbers<[1], [0], [0], [1], [0, 0, 1, 1], [], []>} : vector<8x128xbf16>, vector<128x512xbf16>, vector<8x512xf32> -> vector<8x512xf32>
    %18 = arith.addf %12, %17 : vector<8x512xf32>
    %19 = vector.extract_strided_slice %18 {offsets = [0, 0], sizes = [8, 128], strides = [1, 1]} : vector<8x512xf32> to vector<8x128xf32>
    %cst_16 = arith.constant 5.000000e-01 : f32
    %20 = vector.broadcast %cst_16 : f32 to vector<8x128xf32>
    %21 = arith.mulf %20, %19 : vector<8x128xf32>
    %22 = math.tanh %21 : vector<8x128xf32>
    %cst_17 = arith.constant 5.000000e-01 : f32
    %23 = vector.broadcast %cst_17 : f32 to vector<8x128xf32>
    %24 = arith.mulf %23, %22 : vector<8x128xf32>
    %cst_18 = arith.constant 5.000000e-01 : f32
    %25 = vector.broadcast %cst_18 : f32 to vector<8x128xf32>
    %26 = arith.addf %24, %25 : vector<8x128xf32>
    %27 = vector.extract_strided_slice %18 {offsets = [0, 128], sizes = [8, 128], strides = [1, 1]} : vector<8x512xf32> to vector<8x128xf32>
    %cst_19 = arith.constant 5.000000e-01 : f32
    %28 = vector.broadcast %cst_19 : f32 to vector<8x128xf32>
    %29 = arith.mulf %28, %27 : vector<8x128xf32>
    %30 = math.tanh %29 : vector<8x128xf32>
    %cst_20 = arith.constant 5.000000e-01 : f32
    %31 = vector.broadcast %cst_20 : f32 to vector<8x128xf32>
    %32 = arith.mulf %31, %30 : vector<8x128xf32>
    %cst_21 = arith.constant 5.000000e-01 : f32
    %33 = vector.broadcast %cst_21 : f32 to vector<8x128xf32>
    %34 = arith.addf %32, %33 : vector<8x128xf32>
    %35 = vector.extract_strided_slice %18 {offsets = [0, 256], sizes = [8, 128], strides = [1, 1]} : vector<8x512xf32> to vector<8x128xf32>
    %36 = math.tanh %35 : vector<8x128xf32>
    %37 = vector.extract_strided_slice %18 {offsets = [0, 384], sizes = [8, 128], strides = [1, 1]} : vector<8x512xf32> to vector<8x128xf32>
    %cst_22 = arith.constant 5.000000e-01 : f32
    %38 = vector.broadcast %cst_22 : f32 to vector<8x128xf32>
    %39 = arith.mulf %38, %37 : vector<8x128xf32>
    %40 = math.tanh %39 : vector<8x128xf32>
    %cst_23 = arith.constant 5.000000e-01 : f32
    %41 = vector.broadcast %cst_23 : f32 to vector<8x128xf32>
    %42 = arith.mulf %41, %40 : vector<8x128xf32>
    %cst_24 = arith.constant 5.000000e-01 : f32
    %43 = vector.broadcast %cst_24 : f32 to vector<8x128xf32>
    %44 = arith.addf %42, %43 : vector<8x128xf32>
    %c0_25 = arith.constant 0 : index
    %c0_26 = arith.constant 0 : index
    %45 = vector.load %arg13[%c0_25, %c0_26] : memref<8x128xf32, #tpu.memory_space<vmem>>, vector<8x128xf32>
    %46 = arith.mulf %34, %45 : vector<8x128xf32>
    %47 = arith.mulf %26, %36 : vector<8x128xf32>
    %48 = arith.addf %46, %47 : vector<8x128xf32>
    %49 = math.tanh %48 : vector<8x128xf32>
    %50 = arith.mulf %44, %49 : vector<8x128xf32>
    %c0_27 = arith.constant 0 : index
    %c0_28 = arith.constant 0 : index
    %51 = vector.load %arg13[%c0_27, %c0_28] : memref<8x128xf32, #tpu.memory_space<vmem>>, vector<8x128xf32>
    tpu.vector_store %arg13[%c0_27, %c0_28], %48 {strides = array<i32>} : memref<8x128xf32, #tpu.memory_space<vmem>>, vector<8x128xf32>,
    %c0_29 = arith.constant 0 : index
    %c0_30 = arith.constant 0 : index
    %52 = vector.load %arg12[%c0_29, %c0_30] : memref<8x128xf32, #tpu.memory_space<vmem>>, vector<8x128xf32>
    tpu.vector_store %arg12[%c0_29, %c0_30], %50 {strides = array<i32>} : memref<8x128xf32, #tpu.memory_space<vmem>>, vector<8x128xf32>,
    %53 = arith.index_cast %c0_i32_7 : i32 to index
    %c0_31 = arith.constant 0 : index
    %c0_32 = arith.constant 0 : index
    %54 = vector.load %arg10[%53, %c0_31, %c0_32] : memref<8x8x128xf32, #tpu.memory_space<vmem>>, vector<1x8x128xf32>
    %55 = vector.shape_cast %54 : vector<1x8x128xf32> to vector<8x128xf32>
    %56 = vector.shape_cast %50 : vector<8x128xf32> to vector<1x8x128xf32>
    tpu.vector_store %arg10[%53, %c0_31, %c0_32], %56 {strides = array<i32>} : memref<8x8x128xf32, #tpu.memory_space<vmem>>, vector<1x8x128xf32>,
    %c1_i32 = arith.constant 1 : i32
    %57 = arith.index_cast %c1_i32 : i32 to index
    %c0_33 = arith.constant 0 : index
    %c0_34 = arith.constant 0 : index
    %58 = vector.load %arg11[%57, %c0_33, %c0_34] : memref<8x8x512xf32, #tpu.memory_space<vmem>>, vector<1x8x512xf32>
    %59 = vector.shape_cast %58 : vector<1x8x512xf32> to vector<8x512xf32>
    %c0_35 = arith.constant 0 : index
    %c0_36 = arith.constant 0 : index
    %60 = vector.load %arg12[%c0_35, %c0_36] : memref<8x128xf32, #tpu.memory_space<vmem>>, vector<8x128xf32>
    %61 = arith.truncf %60 : vector<8x128xf32> to vector<8x128xbf16>
    %c0_37 = arith.constant 0 : index
    %c0_38 = arith.constant 0 : index
    %c0_39 = arith.constant 0 : index
    %62 = vector.load %arg3[%c0_37, %c0_38, %c0_39] : memref<1x128x512xbf16, #tpu.memory_space<vmem>>, vector<1x128x512xbf16>
    %63 = vector.shape_cast %62 : vector<1x128x512xbf16> to vector<128x512xbf16>
    %cst_40 = arith.constant dense<0.000000e+00> : vector<8x512xf32>
    %64 = tpu.matmul %61, %63, %cst_40 {dimension_numbers = #tpu.dot_dimension_numbers<[1], [0], [0], [1], [0, 0, 1, 1], [], []>} : vector<8x128xbf16>, vector<128x512xbf16>, vector<8x512xf32> -> vector<8x512xf32>
    %65 = arith.addf %59, %64 : vector<8x512xf32>
    %66 = vector.extract_strided_slice %65 {offsets = [0, 0], sizes = [8, 128], strides = [1, 1]} : vector<8x512xf32> to vector<8x128xf32>
    %cst_41 = arith.constant 5.000000e-01 : f32
    %67 = vector.broadcast %cst_41 : f32 to vector<8x128xf32>
    %68 = arith.mulf %67, %66 : vector<8x128xf32>
    %69 = math.tanh %68 : vector<8x128xf32>
    %cst_42 = arith.constant 5.000000e-01 : f32
    %70 = vector.broadcast %cst_42 : f32 to vector<8x128xf32>
    %71 = arith.mulf %70, %69 : vector<8x128xf32>
    %cst_43 = arith.constant 5.000000e-01 : f32
    %72 = vector.broadcast %cst_43 : f32 to vector<8x128xf32>
    %73 = arith.addf %71, %72 : vector<8x128xf32>
    %74 = vector.extract_strided_slice %65 {offsets = [0, 128], sizes = [8, 128], strides = [1, 1]} : vector<8x512xf32> to vector<8x128xf32>
    %cst_44 = arith.constant 5.000000e-01 : f32
    %75 = vector.broadcast %cst_44 : f32 to vector<8x128xf32>
    %76 = arith.mulf %75, %74 : vector<8x128xf32>
    %77 = math.tanh %76 : vector<8x128xf32>
    %cst_45 = arith.constant 5.000000e-01 : f32
    %78 = vector.broadcast %cst_45 : f32 to vector<8x128xf32>
    %79 = arith.mulf %78, %77 : vector<8x128xf32>
    %cst_46 = arith.constant 5.000000e-01 : f32
    %80 = vector.broadcast %cst_46 : f32 to vector<8x128xf32>
    %81 = arith.addf %79, %80 : vector<8x128xf32>
    %82 = vector.extract_strided_slice %65 {offsets = [0, 256], sizes = [8, 128], strides = [1, 1]} : vector<8x512xf32> to vector<8x128xf32>
    %83 = math.tanh %82 : vector<8x128xf32>
    %84 = vector.extract_strided_slice %65 {offsets = [0, 384], sizes = [8, 128], strides = [1, 1]} : vector<8x512xf32> to vector<8x128xf32>
    %cst_47 = arith.constant 5.000000e-01 : f32
    %85 = vector.broadcast %cst_47 : f32 to vector<8x128xf32>
    %86 = arith.mulf %85, %84 : vector<8x128xf32>
    %87 = math.tanh %86 : vector<8x128xf32>
    %cst_48 = arith.constant 5.000000e-01 : f32
    %88 = vector.broadcast %cst_48 : f32 to vector<8x128xf32>
    %89 = arith.mulf %88, %87 : vector<8x128xf32>
    %cst_49 = arith.constant 5.000000e-01 : f32
    %90 = vector.broadcast %cst_49 : f32 to vector<8x128xf32>
    %91 = arith.addf %89, %90 : vector<8x128xf32>
    %c0_50 = arith.constant 0 : index
    %c0_51 = arith.constant 0 : index
    %92 = vector.load %arg13[%c0_50, %c0_51] : memref<8x128xf32, #tpu.memory_space<vmem>>, vector<8x128xf32>
    %93 = arith.mulf %81, %92 : vector<8x128xf32>
    %94 = arith.mulf %73, %83 : vector<8x128xf32>
    %95 = arith.addf %93, %94 : vector<8x128xf32>
    %96 = math.tanh %95 : vector<8x128xf32>
    %97 = arith.mulf %91, %96 : vector<8x128xf32>
    %c0_52 = arith.constant 0 : index
    %c0_53 = arith.constant 0 : index
    %98 = vector.load %arg13[%c0_52, %c0_53] : memref<8x128xf32, #tpu.memory_space<vmem>>, vector<8x128xf32>
    tpu.vector_store %arg13[%c0_52, %c0_53], %95 {strides = array<i32>} : memref<8x128xf32, #tpu.memory_space<vmem>>, vector<8x128xf32>,
    %c0_54 = arith.constant 0 : index
    %c0_55 = arith.constant 0 : index
    %99 = vector.load %arg12[%c0_54, %c0_55] : memref<8x128xf32, #tpu.memory_space<vmem>>, vector<8x128xf32>
    tpu.vector_store %arg12[%c0_54, %c0_55], %97 {strides = array<i32>} : memref<8x128xf32, #tpu.memory_space<vmem>>, vector<8x128xf32>,
    %100 = arith.index_cast %c1_i32 : i32 to index
    %c0_56 = arith.constant 0 : index
    %c0_57 = arith.constant 0 : index
    %101 = vector.load %arg10[%100, %c0_56, %c0_57] : memref<8x8x128xf32, #tpu.memory_space<vmem>>, vector<1x8x128xf32>
    %102 = vector.shape_cast %101 : vector<1x8x128xf32> to vector<8x128xf32>
    %103 = vector.shape_cast %97 : vector<8x128xf32> to vector<1x8x128xf32>
    tpu.vector_store %arg10[%100, %c0_56, %c0_57], %103 {strides = array<i32>} : memref<8x8x128xf32, #tpu.memory_space<vmem>>, vector<1x8x128xf32>,
    %c2_i32 = arith.constant 2 : i32
    %104 = arith.index_cast %c2_i32 : i32 to index
    %c0_58 = arith.constant 0 : index
    %c0_59 = arith.constant 0 : index
    %105 = vector.load %arg11[%104, %c0_58, %c0_59] : memref<8x8x512xf32, #tpu.memory_space<vmem>>, vector<1x8x512xf32>
    %106 = vector.shape_cast %105 : vector<1x8x512xf32> to vector<8x512xf32>
    %c0_60 = arith.constant 0 : index
    %c0_61 = arith.constant 0 : index
    %107 = vector.load %arg12[%c0_60, %c0_61] : memref<8x128xf32, #tpu.memory_space<vmem>>, vector<8x128xf32>
    %108 = arith.truncf %107 : vector<8x128xf32> to vector<8x128xbf16>
    %c0_62 = arith.constant 0 : index
    %c0_63 = arith.constant 0 : index
    %c0_64 = arith.constant 0 : index
    %109 = vector.load %arg3[%c0_62, %c0_63, %c0_64] : memref<1x128x512xbf16, #tpu.memory_space<vmem>>, vector<1x128x512xbf16>
    %110 = vector.shape_cast %109 : vector<1x128x512xbf16> to vector<128x512xbf16>
    %cst_65 = arith.constant dense<0.000000e+00> : vector<8x512xf32>
    %111 = tpu.matmul %108, %110, %cst_65 {dimension_numbers = #tpu.dot_dimension_numbers<[1], [0], [0], [1], [0, 0, 1, 1], [], []>} : vector<8x128xbf16>, vector<128x512xbf16>, vector<8x512xf32> -> vector<8x512xf32>
    %112 = arith.addf %106, %111 : vector<8x512xf32>
    %113 = vector.extract_strided_slice %112 {offsets = [0, 0], sizes = [8, 128], strides = [1, 1]} : vector<8x512xf32> to vector<8x128xf32>
    %cst_66 = arith.constant 5.000000e-01 : f32
    %114 = vector.broadcast %cst_66 : f32 to vector<8x128xf32>
    %115 = arith.mulf %114, %113 : vector<8x128xf32>
    %116 = math.tanh %115 : vector<8x128xf32>
    %cst_67 = arith.constant 5.000000e-01 : f32
    %117 = vector.broadcast %cst_67 : f32 to vector<8x128xf32>
    %118 = arith.mulf %117, %116 : vector<8x128xf32>
    %cst_68 = arith.constant 5.000000e-01 : f32
    %119 = vector.broadcast %cst_68 : f32 to vector<8x128xf32>
    %120 = arith.addf %118, %119 : vector<8x128xf32>
    %121 = vector.extract_strided_slice %112 {offsets = [0, 128], sizes = [8, 128], strides = [1, 1]} : vector<8x512xf32> to vector<8x128xf32>
    %cst_69 = arith.constant 5.000000e-01 : f32
    %122 = vector.broadcast %cst_69 : f32 to vector<8x128xf32>
    %123 = arith.mulf %122, %121 : vector<8x128xf32>
    %124 = math.tanh %123 : vector<8x128xf32>
    %cst_70 = arith.constant 5.000000e-01 : f32
    %125 = vector.broadcast %cst_70 : f32 to vector<8x128xf32>
    %126 = arith.mulf %125, %124 : vector<8x128xf32>
    %cst_71 = arith.constant 5.000000e-01 : f32
    %127 = vector.broadcast %cst_71 : f32 to vector<8x128xf32>
    %128 = arith.addf %126, %127 : vector<8x128xf32>
    %129 = vector.extract_strided_slice %112 {offsets = [0, 256], sizes = [8, 128], strides = [1, 1]} : vector<8x512xf32> to vector<8x128xf32>
    %130 = math.tanh %129 : vector<8x128xf32>
    %131 = vector.extract_strided_slice %112 {offsets = [0, 384], sizes = [8, 128], strides = [1, 1]} : vector<8x512xf32> to vector<8x128xf32>
    %cst_72 = arith.constant 5.000000e-01 : f32
    %132 = vector.broadcast %cst_72 : f32 to vector<8x128xf32>
    %133 = arith.mulf %132, %131 : vector<8x128xf32>
    %134 = math.tanh %133 : vector<8x128xf32>
    %cst_73 = arith.constant 5.000000e-01 : f32
    %135 = vector.broadcast %cst_73 : f32 to vector<8x128xf32>
    %136 = arith.mulf %135, %134 : vector<8x128xf32>
    %cst_74 = arith.constant 5.000000e-01 : f32
    %137 = vector.broadcast %cst_74 : f32 to vector<8x128xf32>
    %138 = arith.addf %136, %137 : vector<8x128xf32>
    %c0_75 = arith.constant 0 : index
    %c0_76 = arith.constant 0 : index
    %139 = vector.load %arg13[%c0_75, %c0_76] : memref<8x128xf32, #tpu.memory_space<vmem>>, vector<8x128xf32>
    %140 = arith.mulf %128, %139 : vector<8x128xf32>
    %141 = arith.mulf %120, %130 : vector<8x128xf32>
    %142 = arith.addf %140, %141 : vector<8x128xf32>
    %143 = math.tanh %142 : vector<8x128xf32>
    %144 = arith.mulf %138, %143 : vector<8x128xf32>
    %c0_77 = arith.constant 0 : index
    %c0_78 = arith.constant 0 : index
    %145 = vector.load %arg13[%c0_77, %c0_78] : memref<8x128xf32, #tpu.memory_space<vmem>>, vector<8x128xf32>
    tpu.vector_store %arg13[%c0_77, %c0_78], %142 {strides = array<i32>} : memref<8x128xf32, #tpu.memory_space<vmem>>, vector<8x128xf32>,
    %c0_79 = arith.constant 0 : index
    %c0_80 = arith.constant 0 : index
    %146 = vector.load %arg12[%c0_79, %c0_80] : memref<8x128xf32, #tpu.memory_space<vmem>>, vector<8x128xf32>
    tpu.vector_store %arg12[%c0_79, %c0_80], %144 {strides = array<i32>} : memref<8x128xf32, #tpu.memory_space<vmem>>, vector<8x128xf32>,
    %147 = arith.index_cast %c2_i32 : i32 to index
    %c0_81 = arith.constant 0 : index
    %c0_82 = arith.constant 0 : index
    %148 = vector.load %arg10[%147, %c0_81, %c0_82] : memref<8x8x128xf32, #tpu.memory_space<vmem>>, vector<1x8x128xf32>
    %149 = vector.shape_cast %148 : vector<1x8x128xf32> to vector<8x128xf32>
    %150 = vector.shape_cast %144 : vector<8x128xf32> to vector<1x8x128xf32>
    tpu.vector_store %arg10[%147, %c0_81, %c0_82], %150 {strides = array<i32>} : memref<8x8x128xf32, #tpu.memory_space<vmem>>, vector<1x8x128xf32>,
    %c3_i32 = arith.constant 3 : i32
    %151 = arith.index_cast %c3_i32 : i32 to index
    %c0_83 = arith.constant 0 : index
    %c0_84 = arith.constant 0 : index
    %152 = vector.load %arg11[%151, %c0_83, %c0_84] : memref<8x8x512xf32, #tpu.memory_space<vmem>>, vector<1x8x512xf32>
    %153 = vector.shape_cast %152 : vector<1x8x512xf32> to vector<8x512xf32>
    %c0_85 = arith.constant 0 : index
    %c0_86 = arith.constant 0 : index
    %154 = vector.load %arg12[%c0_85, %c0_86] : memref<8x128xf32, #tpu.memory_space<vmem>>, vector<8x128xf32>
    %155 = arith.truncf %154 : vector<8x128xf32> to vector<8x128xbf16>
    %c0_87 = arith.constant 0 : index
    %c0_88 = arith.constant 0 : index
    %c0_89 = arith.constant 0 : index
    %156 = vector.load %arg3[%c0_87, %c0_88, %c0_89] : memref<1x128x512xbf16, #tpu.memory_space<vmem>>, vector<1x128x512xbf16>
    %157 = vector.shape_cast %156 : vector<1x128x512xbf16> to vector<128x512xbf16>
    %cst_90 = arith.constant dense<0.000000e+00> : vector<8x512xf32>
    %158 = tpu.matmul %155, %157, %cst_90 {dimension_numbers = #tpu.dot_dimension_numbers<[1], [0], [0], [1], [0, 0, 1, 1], [], []>} : vector<8x128xbf16>, vector<128x512xbf16>, vector<8x512xf32> -> vector<8x512xf32>
    %159 = arith.addf %153, %158 : vector<8x512xf32>
    %160 = vector.extract_strided_slice %159 {offsets = [0, 0], sizes = [8, 128], strides = [1, 1]} : vector<8x512xf32> to vector<8x128xf32>
    %cst_91 = arith.constant 5.000000e-01 : f32
    %161 = vector.broadcast %cst_91 : f32 to vector<8x128xf32>
    %162 = arith.mulf %161, %160 : vector<8x128xf32>
    %163 = math.tanh %162 : vector<8x128xf32>
    %cst_92 = arith.constant 5.000000e-01 : f32
    %164 = vector.broadcast %cst_92 : f32 to vector<8x128xf32>
    %165 = arith.mulf %164, %163 : vector<8x128xf32>
    %cst_93 = arith.constant 5.000000e-01 : f32
    %166 = vector.broadcast %cst_93 : f32 to vector<8x128xf32>
    %167 = arith.addf %165, %166 : vector<8x128xf32>
    %168 = vector.extract_strided_slice %159 {offsets = [0, 128], sizes = [8, 128], strides = [1, 1]} : vector<8x512xf32> to vector<8x128xf32>
    %cst_94 = arith.constant 5.000000e-01 : f32
    %169 = vector.broadcast %cst_94 : f32 to vector<8x128xf32>
    %170 = arith.mulf %169, %168 : vector<8x128xf32>
    %171 = math.tanh %170 : vector<8x128xf32>
    %cst_95 = arith.constant 5.000000e-01 : f32
    %172 = vector.broadcast %cst_95 : f32 to vector<8x128xf32>
    %173 = arith.mulf %172, %171 : vector<8x128xf32>
    %cst_96 = arith.constant 5.000000e-01 : f32
    %174 = vector.broadcast %cst_96 : f32 to vector<8x128xf32>
    %175 = arith.addf %173, %174 : vector<8x128xf32>
    %176 = vector.extract_strided_slice %159 {offsets = [0, 256], sizes = [8, 128], strides = [1, 1]} : vector<8x512xf32> to vector<8x128xf32>
    %177 = math.tanh %176 : vector<8x128xf32>
    %178 = vector.extract_strided_slice %159 {offsets = [0, 384], sizes = [8, 128], strides = [1, 1]} : vector<8x512xf32> to vector<8x128xf32>
    %cst_97 = arith.constant 5.000000e-01 : f32
    %179 = vector.broadcast %cst_97 : f32 to vector<8x128xf32>
    %180 = arith.mulf %179, %178 : vector<8x128xf32>
    %181 = math.tanh %180 : vector<8x128xf32>
    %cst_98 = arith.constant 5.000000e-01 : f32
    %182 = vector.broadcast %cst_98 : f32 to vector<8x128xf32>
    %183 = arith.mulf %182, %181 : vector<8x128xf32>
    %cst_99 = arith.constant 5.000000e-01 : f32
    %184 = vector.broadcast %cst_99 : f32 to vector<8x128xf32>
    %185 = arith.addf %183, %184 : vector<8x128xf32>
    %c0_100 = arith.constant 0 : index
    %c0_101 = arith.constant 0 : index
    %186 = vector.load %arg13[%c0_100, %c0_101] : memref<8x128xf32, #tpu.memory_space<vmem>>, vector<8x128xf32>
    %187 = arith.mulf %175, %186 : vector<8x128xf32>
    %188 = arith.mulf %167, %177 : vector<8x128xf32>
    %189 = arith.addf %187, %188 : vector<8x128xf32>
    %190 = math.tanh %189 : vector<8x128xf32>
    %191 = arith.mulf %185, %190 : vector<8x128xf32>
    %c0_102 = arith.constant 0 : index
    %c0_103 = arith.constant 0 : index
    %192 = vector.load %arg13[%c0_102, %c0_103] : memref<8x128xf32, #tpu.memory_space<vmem>>, vector<8x128xf32>
    tpu.vector_store %arg13[%c0_102, %c0_103], %189 {strides = array<i32>} : memref<8x128xf32, #tpu.memory_space<vmem>>, vector<8x128xf32>,
    %c0_104 = arith.constant 0 : index
    %c0_105 = arith.constant 0 : index
    %193 = vector.load %arg12[%c0_104, %c0_105] : memref<8x128xf32, #tpu.memory_space<vmem>>, vector<8x128xf32>
    tpu.vector_store %arg12[%c0_104, %c0_105], %191 {strides = array<i32>} : memref<8x128xf32, #tpu.memory_space<vmem>>, vector<8x128xf32>,
    %194 = arith.index_cast %c3_i32 : i32 to index
    %c0_106 = arith.constant 0 : index
    %c0_107 = arith.constant 0 : index
    %195 = vector.load %arg10[%194, %c0_106, %c0_107] : memref<8x8x128xf32, #tpu.memory_space<vmem>>, vector<1x8x128xf32>
    %196 = vector.shape_cast %195 : vector<1x8x128xf32> to vector<8x128xf32>
    %197 = vector.shape_cast %191 : vector<8x128xf32> to vector<1x8x128xf32>
    tpu.vector_store %arg10[%194, %c0_106, %c0_107], %197 {strides = array<i32>} : memref<8x8x128xf32, #tpu.memory_space<vmem>>, vector<1x8x128xf32>,
    %c4_i32 = arith.constant 4 : i32
    %198 = arith.index_cast %c4_i32 : i32 to index
    %c0_108 = arith.constant 0 : index
    %c0_109 = arith.constant 0 : index
    %199 = vector.load %arg11[%198, %c0_108, %c0_109] : memref<8x8x512xf32, #tpu.memory_space<vmem>>, vector<1x8x512xf32>
    %200 = vector.shape_cast %199 : vector<1x8x512xf32> to vector<8x512xf32>
    %c0_110 = arith.constant 0 : index
    %c0_111 = arith.constant 0 : index
    %201 = vector.load %arg12[%c0_110, %c0_111] : memref<8x128xf32, #tpu.memory_space<vmem>>, vector<8x128xf32>
    %202 = arith.truncf %201 : vector<8x128xf32> to vector<8x128xbf16>
    %c0_112 = arith.constant 0 : index
    %c0_113 = arith.constant 0 : index
    %c0_114 = arith.constant 0 : index
    %203 = vector.load %arg3[%c0_112, %c0_113, %c0_114] : memref<1x128x512xbf16, #tpu.memory_space<vmem>>, vector<1x128x512xbf16>
    %204 = vector.shape_cast %203 : vector<1x128x512xbf16> to vector<128x512xbf16>
    %cst_115 = arith.constant dense<0.000000e+00> : vector<8x512xf32>
    %205 = tpu.matmul %202, %204, %cst_115 {dimension_numbers = #tpu.dot_dimension_numbers<[1], [0], [0], [1], [0, 0, 1, 1], [], []>} : vector<8x128xbf16>, vector<128x512xbf16>, vector<8x512xf32> -> vector<8x512xf32>
    %206 = arith.addf %200, %205 : vector<8x512xf32>
    %207 = vector.extract_strided_slice %206 {offsets = [0, 0], sizes = [8, 128], strides = [1, 1]} : vector<8x512xf32> to vector<8x128xf32>
    %cst_116 = arith.constant 5.000000e-01 : f32
    %208 = vector.broadcast %cst_116 : f32 to vector<8x128xf32>
    %209 = arith.mulf %208, %207 : vector<8x128xf32>
    %210 = math.tanh %209 : vector<8x128xf32>
    %cst_117 = arith.constant 5.000000e-01 : f32
    %211 = vector.broadcast %cst_117 : f32 to vector<8x128xf32>
    %212 = arith.mulf %211, %210 : vector<8x128xf32>
    %cst_118 = arith.constant 5.000000e-01 : f32
    %213 = vector.broadcast %cst_118 : f32 to vector<8x128xf32>
    %214 = arith.addf %212, %213 : vector<8x128xf32>
    %215 = vector.extract_strided_slice %206 {offsets = [0, 128], sizes = [8, 128], strides = [1, 1]} : vector<8x512xf32> to vector<8x128xf32>
    %cst_119 = arith.constant 5.000000e-01 : f32
    %216 = vector.broadcast %cst_119 : f32 to vector<8x128xf32>
    %217 = arith.mulf %216, %215 : vector<8x128xf32>
    %218 = math.tanh %217 : vector<8x128xf32>
    %cst_120 = arith.constant 5.000000e-01 : f32
    %219 = vector.broadcast %cst_120 : f32 to vector<8x128xf32>
    %220 = arith.mulf %219, %218 : vector<8x128xf32>
    %cst_121 = arith.constant 5.000000e-01 : f32
    %221 = vector.broadcast %cst_121 : f32 to vector<8x128xf32>
    %222 = arith.addf %220, %221 : vector<8x128xf32>
    %223 = vector.extract_strided_slice %206 {offsets = [0, 256], sizes = [8, 128], strides = [1, 1]} : vector<8x512xf32> to vector<8x128xf32>
    %224 = math.tanh %223 : vector<8x128xf32>
    %225 = vector.extract_strided_slice %206 {offsets = [0, 384], sizes = [8, 128], strides = [1, 1]} : vector<8x512xf32> to vector<8x128xf32>
    %cst_122 = arith.constant 5.000000e-01 : f32
    %226 = vector.broadcast %cst_122 : f32 to vector<8x128xf32>
    %227 = arith.mulf %226, %225 : vector<8x128xf32>
    %228 = math.tanh %227 : vector<8x128xf32>
    %cst_123 = arith.constant 5.000000e-01 : f32
    %229 = vector.broadcast %cst_123 : f32 to vector<8x128xf32>
    %230 = arith.mulf %229, %228 : vector<8x128xf32>
    %cst_124 = arith.constant 5.000000e-01 : f32
    %231 = vector.broadcast %cst_124 : f32 to vector<8x128xf32>
    %232 = arith.addf %230, %231 : vector<8x128xf32>
    %c0_125 = arith.constant 0 : index
    %c0_126 = arith.constant 0 : index
    %233 = vector.load %arg13[%c0_125, %c0_126] : memref<8x128xf32, #tpu.memory_space<vmem>>, vector<8x128xf32>
    %234 = arith.mulf %222, %233 : vector<8x128xf32>
    %235 = arith.mulf %214, %224 : vector<8x128xf32>
    %236 = arith.addf %234, %235 : vector<8x128xf32>
    %237 = math.tanh %236 : vector<8x128xf32>
    %238 = arith.mulf %232, %237 : vector<8x128xf32>
    %c0_127 = arith.constant 0 : index
    %c0_128 = arith.constant 0 : index
    %239 = vector.load %arg13[%c0_127, %c0_128] : memref<8x128xf32, #tpu.memory_space<vmem>>, vector<8x128xf32>
    tpu.vector_store %arg13[%c0_127, %c0_128], %236 {strides = array<i32>} : memref<8x128xf32, #tpu.memory_space<vmem>>, vector<8x128xf32>,
    %c0_129 = arith.constant 0 : index
    %c0_130 = arith.constant 0 : index
    %240 = vector.load %arg12[%c0_129, %c0_130] : memref<8x128xf32, #tpu.memory_space<vmem>>, vector<8x128xf32>
    tpu.vector_store %arg12[%c0_129, %c0_130], %238 {strides = array<i32>} : memref<8x128xf32, #tpu.memory_space<vmem>>, vector<8x128xf32>,
    %241 = arith.index_cast %c4_i32 : i32 to index
    %c0_131 = arith.constant 0 : index
    %c0_132 = arith.constant 0 : index
    %242 = vector.load %arg10[%241, %c0_131, %c0_132] : memref<8x8x128xf32, #tpu.memory_space<vmem>>, vector<1x8x128xf32>
    %243 = vector.shape_cast %242 : vector<1x8x128xf32> to vector<8x128xf32>
    %244 = vector.shape_cast %238 : vector<8x128xf32> to vector<1x8x128xf32>
    tpu.vector_store %arg10[%241, %c0_131, %c0_132], %244 {strides = array<i32>} : memref<8x8x128xf32, #tpu.memory_space<vmem>>, vector<1x8x128xf32>,
    %c5_i32 = arith.constant 5 : i32
    %245 = arith.index_cast %c5_i32 : i32 to index
    %c0_133 = arith.constant 0 : index
    %c0_134 = arith.constant 0 : index
    %246 = vector.load %arg11[%245, %c0_133, %c0_134] : memref<8x8x512xf32, #tpu.memory_space<vmem>>, vector<1x8x512xf32>
    %247 = vector.shape_cast %246 : vector<1x8x512xf32> to vector<8x512xf32>
    %c0_135 = arith.constant 0 : index
    %c0_136 = arith.constant 0 : index
    %248 = vector.load %arg12[%c0_135, %c0_136] : memref<8x128xf32, #tpu.memory_space<vmem>>, vector<8x128xf32>
    %249 = arith.truncf %248 : vector<8x128xf32> to vector<8x128xbf16>
    %c0_137 = arith.constant 0 : index
    %c0_138 = arith.constant 0 : index
    %c0_139 = arith.constant 0 : index
    %250 = vector.load %arg3[%c0_137, %c0_138, %c0_139] : memref<1x128x512xbf16, #tpu.memory_space<vmem>>, vector<1x128x512xbf16>
    %251 = vector.shape_cast %250 : vector<1x128x512xbf16> to vector<128x512xbf16>
    %cst_140 = arith.constant dense<0.000000e+00> : vector<8x512xf32>
    %252 = tpu.matmul %249, %251, %cst_140 {dimension_numbers = #tpu.dot_dimension_numbers<[1], [0], [0], [1], [0, 0, 1, 1], [], []>} : vector<8x128xbf16>, vector<128x512xbf16>, vector<8x512xf32> -> vector<8x512xf32>
    %253 = arith.addf %247, %252 : vector<8x512xf32>
    %254 = vector.extract_strided_slice %253 {offsets = [0, 0], sizes = [8, 128], strides = [1, 1]} : vector<8x512xf32> to vector<8x128xf32>
    %cst_141 = arith.constant 5.000000e-01 : f32
    %255 = vector.broadcast %cst_141 : f32 to vector<8x128xf32>
    %256 = arith.mulf %255, %254 : vector<8x128xf32>
    %257 = math.tanh %256 : vector<8x128xf32>
    %cst_142 = arith.constant 5.000000e-01 : f32
    %258 = vector.broadcast %cst_142 : f32 to vector<8x128xf32>
    %259 = arith.mulf %258, %257 : vector<8x128xf32>
    %cst_143 = arith.constant 5.000000e-01 : f32
    %260 = vector.broadcast %cst_143 : f32 to vector<8x128xf32>
    %261 = arith.addf %259, %260 : vector<8x128xf32>
    %262 = vector.extract_strided_slice %253 {offsets = [0, 128], sizes = [8, 128], strides = [1, 1]} : vector<8x512xf32> to vector<8x128xf32>
    %cst_144 = arith.constant 5.000000e-01 : f32
    %263 = vector.broadcast %cst_144 : f32 to vector<8x128xf32>
    %264 = arith.mulf %263, %262 : vector<8x128xf32>
    %265 = math.tanh %264 : vector<8x128xf32>
    %cst_145 = arith.constant 5.000000e-01 : f32
    %266 = vector.broadcast %cst_145 : f32 to vector<8x128xf32>
    %267 = arith.mulf %266, %265 : vector<8x128xf32>
    %cst_146 = arith.constant 5.000000e-01 : f32
    %268 = vector.broadcast %cst_146 : f32 to vector<8x128xf32>
    %269 = arith.addf %267, %268 : vector<8x128xf32>
    %270 = vector.extract_strided_slice %253 {offsets = [0, 256], sizes = [8, 128], strides = [1, 1]} : vector<8x512xf32> to vector<8x128xf32>
    %271 = math.tanh %270 : vector<8x128xf32>
    %272 = vector.extract_strided_slice %253 {offsets = [0, 384], sizes = [8, 128], strides = [1, 1]} : vector<8x512xf32> to vector<8x128xf32>
    %cst_147 = arith.constant 5.000000e-01 : f32
    %273 = vector.broadcast %cst_147 : f32 to vector<8x128xf32>
    %274 = arith.mulf %273, %272 : vector<8x128xf32>
    %275 = math.tanh %274 : vector<8x128xf32>
    %cst_148 = arith.constant 5.000000e-01 : f32
    %276 = vector.broadcast %cst_148 : f32 to vector<8x128xf32>
    %277 = arith.mulf %276, %275 : vector<8x128xf32>
    %cst_149 = arith.constant 5.000000e-01 : f32
    %278 = vector.broadcast %cst_149 : f32 to vector<8x128xf32>
    %279 = arith.addf %277, %278 : vector<8x128xf32>
    %c0_150 = arith.constant 0 : index
    %c0_151 = arith.constant 0 : index
    %280 = vector.load %arg13[%c0_150, %c0_151] : memref<8x128xf32, #tpu.memory_space<vmem>>, vector<8x128xf32>
    %281 = arith.mulf %269, %280 : vector<8x128xf32>
    %282 = arith.mulf %261, %271 : vector<8x128xf32>
    %283 = arith.addf %281, %282 : vector<8x128xf32>
    %284 = math.tanh %283 : vector<8x128xf32>
    %285 = arith.mulf %279, %284 : vector<8x128xf32>
    %c0_152 = arith.constant 0 : index
    %c0_153 = arith.constant 0 : index
    %286 = vector.load %arg13[%c0_152, %c0_153] : memref<8x128xf32, #tpu.memory_space<vmem>>, vector<8x128xf32>
    tpu.vector_store %arg13[%c0_152, %c0_153], %283 {strides = array<i32>} : memref<8x128xf32, #tpu.memory_space<vmem>>, vector<8x128xf32>,
    %c0_154 = arith.constant 0 : index
    %c0_155 = arith.constant 0 : index
    %287 = vector.load %arg12[%c0_154, %c0_155] : memref<8x128xf32, #tpu.memory_space<vmem>>, vector<8x128xf32>
    tpu.vector_store %arg12[%c0_154, %c0_155], %285 {strides = array<i32>} : memref<8x128xf32, #tpu.memory_space<vmem>>, vector<8x128xf32>,
    %288 = arith.index_cast %c5_i32 : i32 to index
    %c0_156 = arith.constant 0 : index
    %c0_157 = arith.constant 0 : index
    %289 = vector.load %arg10[%288, %c0_156, %c0_157] : memref<8x8x128xf32, #tpu.memory_space<vmem>>, vector<1x8x128xf32>
    %290 = vector.shape_cast %289 : vector<1x8x128xf32> to vector<8x128xf32>
    %291 = vector.shape_cast %285 : vector<8x128xf32> to vector<1x8x128xf32>
    tpu.vector_store %arg10[%288, %c0_156, %c0_157], %291 {strides = array<i32>} : memref<8x8x128xf32, #tpu.memory_space<vmem>>, vector<1x8x128xf32>,
    %c6_i32 = arith.constant 6 : i32
    %292 = arith.index_cast %c6_i32 : i32 to index
    %c0_158 = arith.constant 0 : index
    %c0_159 = arith.constant 0 : index
    %293 = vector.load %arg11[%292, %c0_158, %c0_159] : memref<8x8x512xf32, #tpu.memory_space<vmem>>, vector<1x8x512xf32>
    %294 = vector.shape_cast %293 : vector<1x8x512xf32> to vector<8x512xf32>
    %c0_160 = arith.constant 0 : index
    %c0_161 = arith.constant 0 : index
    %295 = vector.load %arg12[%c0_160, %c0_161] : memref<8x128xf32, #tpu.memory_space<vmem>>, vector<8x128xf32>
    %296 = arith.truncf %295 : vector<8x128xf32> to vector<8x128xbf16>
    %c0_162 = arith.constant 0 : index
    %c0_163 = arith.constant 0 : index
    %c0_164 = arith.constant 0 : index
    %297 = vector.load %arg3[%c0_162, %c0_163, %c0_164] : memref<1x128x512xbf16, #tpu.memory_space<vmem>>, vector<1x128x512xbf16>
    %298 = vector.shape_cast %297 : vector<1x128x512xbf16> to vector<128x512xbf16>
    %cst_165 = arith.constant dense<0.000000e+00> : vector<8x512xf32>
    %299 = tpu.matmul %296, %298, %cst_165 {dimension_numbers = #tpu.dot_dimension_numbers<[1], [0], [0], [1], [0, 0, 1, 1], [], []>} : vector<8x128xbf16>, vector<128x512xbf16>, vector<8x512xf32> -> vector<8x512xf32>
    %300 = arith.addf %294, %299 : vector<8x512xf32>
    %301 = vector.extract_strided_slice %300 {offsets = [0, 0], sizes = [8, 128], strides = [1, 1]} : vector<8x512xf32> to vector<8x128xf32>
    %cst_166 = arith.constant 5.000000e-01 : f32
    %302 = vector.broadcast %cst_166 : f32 to vector<8x128xf32>
    %303 = arith.mulf %302, %301 : vector<8x128xf32>
    %304 = math.tanh %303 : vector<8x128xf32>
    %cst_167 = arith.constant 5.000000e-01 : f32
    %305 = vector.broadcast %cst_167 : f32 to vector<8x128xf32>
    %306 = arith.mulf %305, %304 : vector<8x128xf32>
    %cst_168 = arith.constant 5.000000e-01 : f32
    %307 = vector.broadcast %cst_168 : f32 to vector<8x128xf32>
    %308 = arith.addf %306, %307 : vector<8x128xf32>
    %309 = vector.extract_strided_slice %300 {offsets = [0, 128], sizes = [8, 128], strides = [1, 1]} : vector<8x512xf32> to vector<8x128xf32>
    %cst_169 = arith.constant 5.000000e-01 : f32
    %310 = vector.broadcast %cst_169 : f32 to vector<8x128xf32>
    %311 = arith.mulf %310, %309 : vector<8x128xf32>
    %312 = math.tanh %311 : vector<8x128xf32>
    %cst_170 = arith.constant 5.000000e-01 : f32
    %313 = vector.broadcast %cst_170 : f32 to vector<8x128xf32>
    %314 = arith.mulf %313, %312 : vector<8x128xf32>
    %cst_171 = arith.constant 5.000000e-01 : f32
    %315 = vector.broadcast %cst_171 : f32 to vector<8x128xf32>
    %316 = arith.addf %314, %315 : vector<8x128xf32>
    %317 = vector.extract_strided_slice %300 {offsets = [0, 256], sizes = [8, 128], strides = [1, 1]} : vector<8x512xf32> to vector<8x128xf32>
    %318 = math.tanh %317 : vector<8x128xf32>
    %319 = vector.extract_strided_slice %300 {offsets = [0, 384], sizes = [8, 128], strides = [1, 1]} : vector<8x512xf32> to vector<8x128xf32>
    %cst_172 = arith.constant 5.000000e-01 : f32
    %320 = vector.broadcast %cst_172 : f32 to vector<8x128xf32>
    %321 = arith.mulf %320, %319 : vector<8x128xf32>
    %322 = math.tanh %321 : vector<8x128xf32>
    %cst_173 = arith.constant 5.000000e-01 : f32
    %323 = vector.broadcast %cst_173 : f32 to vector<8x128xf32>
    %324 = arith.mulf %323, %322 : vector<8x128xf32>
    %cst_174 = arith.constant 5.000000e-01 : f32
    %325 = vector.broadcast %cst_174 : f32 to vector<8x128xf32>
    %326 = arith.addf %324, %325 : vector<8x128xf32>
    %c0_175 = arith.constant 0 : index
    %c0_176 = arith.constant 0 : index
    %327 = vector.load %arg13[%c0_175, %c0_176] : memref<8x128xf32, #tpu.memory_space<vmem>>, vector<8x128xf32>
    %328 = arith.mulf %316, %327 : vector<8x128xf32>
    %329 = arith.mulf %308, %318 : vector<8x128xf32>
    %330 = arith.addf %328, %329 : vector<8x128xf32>
    %331 = math.tanh %330 : vector<8x128xf32>
    %332 = arith.mulf %326, %331 : vector<8x128xf32>
    %c0_177 = arith.constant 0 : index
    %c0_178 = arith.constant 0 : index
    %333 = vector.load %arg13[%c0_177, %c0_178] : memref<8x128xf32, #tpu.memory_space<vmem>>, vector<8x128xf32>
    tpu.vector_store %arg13[%c0_177, %c0_178], %330 {strides = array<i32>} : memref<8x128xf32, #tpu.memory_space<vmem>>, vector<8x128xf32>,
    %c0_179 = arith.constant 0 : index
    %c0_180 = arith.constant 0 : index
    %334 = vector.load %arg12[%c0_179, %c0_180] : memref<8x128xf32, #tpu.memory_space<vmem>>, vector<8x128xf32>
    tpu.vector_store %arg12[%c0_179, %c0_180], %332 {strides = array<i32>} : memref<8x128xf32, #tpu.memory_space<vmem>>, vector<8x128xf32>,
    %335 = arith.index_cast %c6_i32 : i32 to index
    %c0_181 = arith.constant 0 : index
    %c0_182 = arith.constant 0 : index
    %336 = vector.load %arg10[%335, %c0_181, %c0_182] : memref<8x8x128xf32, #tpu.memory_space<vmem>>, vector<1x8x128xf32>
    %337 = vector.shape_cast %336 : vector<1x8x128xf32> to vector<8x128xf32>
    %338 = vector.shape_cast %332 : vector<8x128xf32> to vector<1x8x128xf32>
    tpu.vector_store %arg10[%335, %c0_181, %c0_182], %338 {strides = array<i32>} : memref<8x8x128xf32, #tpu.memory_space<vmem>>, vector<1x8x128xf32>,
    %c7_i32 = arith.constant 7 : i32
    %339 = arith.index_cast %c7_i32 : i32 to index
    %c0_183 = arith.constant 0 : index
    %c0_184 = arith.constant 0 : index
    %340 = vector.load %arg11[%339, %c0_183, %c0_184] : memref<8x8x512xf32, #tpu.memory_space<vmem>>, vector<1x8x512xf32>
    %341 = vector.shape_cast %340 : vector<1x8x512xf32> to vector<8x512xf32>
    %c0_185 = arith.constant 0 : index
    %c0_186 = arith.constant 0 : index
    %342 = vector.load %arg12[%c0_185, %c0_186] : memref<8x128xf32, #tpu.memory_space<vmem>>, vector<8x128xf32>
    %343 = arith.truncf %342 : vector<8x128xf32> to vector<8x128xbf16>
    %c0_187 = arith.constant 0 : index
    %c0_188 = arith.constant 0 : index
    %c0_189 = arith.constant 0 : index
    %344 = vector.load %arg3[%c0_187, %c0_188, %c0_189] : memref<1x128x512xbf16, #tpu.memory_space<vmem>>, vector<1x128x512xbf16>
    %345 = vector.shape_cast %344 : vector<1x128x512xbf16> to vector<128x512xbf16>
    %cst_190 = arith.constant dense<0.000000e+00> : vector<8x512xf32>
    %346 = tpu.matmul %343, %345, %cst_190 {dimension_numbers = #tpu.dot_dimension_numbers<[1], [0], [0], [1], [0, 0, 1, 1], [], []>} : vector<8x128xbf16>, vector<128x512xbf16>, vector<8x512xf32> -> vector<8x512xf32>
    %347 = arith.addf %341, %346 : vector<8x512xf32>
    %348 = vector.extract_strided_slice %347 {offsets = [0, 0], sizes = [8, 128], strides = [1, 1]} : vector<8x512xf32> to vector<8x128xf32>
    %cst_191 = arith.constant 5.000000e-01 : f32
    %349 = vector.broadcast %cst_191 : f32 to vector<8x128xf32>
    %350 = arith.mulf %349, %348 : vector<8x128xf32>
    %351 = math.tanh %350 : vector<8x128xf32>
    %cst_192 = arith.constant 5.000000e-01 : f32
    %352 = vector.broadcast %cst_192 : f32 to vector<8x128xf32>
    %353 = arith.mulf %352, %351 : vector<8x128xf32>
    %cst_193 = arith.constant 5.000000e-01 : f32
    %354 = vector.broadcast %cst_193 : f32 to vector<8x128xf32>
    %355 = arith.addf %353, %354 : vector<8x128xf32>
    %356 = vector.extract_strided_slice %347 {offsets = [0, 128], sizes = [8, 128], strides = [1, 1]} : vector<8x512xf32> to vector<8x128xf32>
    %cst_194 = arith.constant 5.000000e-01 : f32
    %357 = vector.broadcast %cst_194 : f32 to vector<8x128xf32>
    %358 = arith.mulf %357, %356 : vector<8x128xf32>
    %359 = math.tanh %358 : vector<8x128xf32>
    %cst_195 = arith.constant 5.000000e-01 : f32
    %360 = vector.broadcast %cst_195 : f32 to vector<8x128xf32>
    %361 = arith.mulf %360, %359 : vector<8x128xf32>
    %cst_196 = arith.constant 5.000000e-01 : f32
    %362 = vector.broadcast %cst_196 : f32 to vector<8x128xf32>
    %363 = arith.addf %361, %362 : vector<8x128xf32>
    %364 = vector.extract_strided_slice %347 {offsets = [0, 256], sizes = [8, 128], strides = [1, 1]} : vector<8x512xf32> to vector<8x128xf32>
    %365 = math.tanh %364 : vector<8x128xf32>
    %366 = vector.extract_strided_slice %347 {offsets = [0, 384], sizes = [8, 128], strides = [1, 1]} : vector<8x512xf32> to vector<8x128xf32>
    %cst_197 = arith.constant 5.000000e-01 : f32
    %367 = vector.broadcast %cst_197 : f32 to vector<8x128xf32>
    %368 = arith.mulf %367, %366 : vector<8x128xf32>
    %369 = math.tanh %368 : vector<8x128xf32>
    %cst_198 = arith.constant 5.000000e-01 : f32
    %370 = vector.broadcast %cst_198 : f32 to vector<8x128xf32>
    %371 = arith.mulf %370, %369 : vector<8x128xf32>
    %cst_199 = arith.constant 5.000000e-01 : f32
    %372 = vector.broadcast %cst_199 : f32 to vector<8x128xf32>
    %373 = arith.addf %371, %372 : vector<8x128xf32>
    %c0_200 = arith.constant 0 : index
    %c0_201 = arith.constant 0 : index
    %374 = vector.load %arg13[%c0_200, %c0_201] : memref<8x128xf32, #tpu.memory_space<vmem>>, vector<8x128xf32>
    %375 = arith.mulf %363, %374 : vector<8x128xf32>
    %376 = arith.mulf %355, %365 : vector<8x128xf32>
    %377 = arith.addf %375, %376 : vector<8x128xf32>
    %378 = math.tanh %377 : vector<8x128xf32>
    %379 = arith.mulf %373, %378 : vector<8x128xf32>
    %c0_202 = arith.constant 0 : index
    %c0_203 = arith.constant 0 : index
    %380 = vector.load %arg13[%c0_202, %c0_203] : memref<8x128xf32, #tpu.memory_space<vmem>>, vector<8x128xf32>
    tpu.vector_store %arg13[%c0_202, %c0_203], %377 {strides = array<i32>} : memref<8x128xf32, #tpu.memory_space<vmem>>, vector<8x128xf32>,
    %c0_204 = arith.constant 0 : index
    %c0_205 = arith.constant 0 : index
    %381 = vector.load %arg12[%c0_204, %c0_205] : memref<8x128xf32, #tpu.memory_space<vmem>>, vector<8x128xf32>
    tpu.vector_store %arg12[%c0_204, %c0_205], %379 {strides = array<i32>} : memref<8x128xf32, #tpu.memory_space<vmem>>, vector<8x128xf32>,
    %382 = arith.index_cast %c7_i32 : i32 to index
    %c0_206 = arith.constant 0 : index
    %c0_207 = arith.constant 0 : index
    %383 = vector.load %arg10[%382, %c0_206, %c0_207] : memref<8x8x128xf32, #tpu.memory_space<vmem>>, vector<1x8x128xf32>
    %384 = vector.shape_cast %383 : vector<1x8x128xf32> to vector<8x128xf32>
    %385 = vector.shape_cast %379 : vector<8x128xf32> to vector<1x8x128xf32>
    tpu.vector_store %arg10[%382, %c0_206, %c0_207], %385 {strides = array<i32>} : memref<8x8x128xf32, #tpu.memory_space<vmem>>, vector<1x8x128xf32>,
    %c8_i32 = arith.constant 8 : i32
    %c1_i32_208 = arith.constant 1 : i32
    %386 = arith.cmpi eq, %arg0, %c1_i32_208 : i32
    %387 = arith.extui %386 : i1 to i32
    %c0_i32_209 = arith.constant 0 : i32
    %388 = arith.cmpi ne, %387, %c0_i32_209 : i32
    scf.if %388 {
      %c0_210 = arith.constant 0 : index
      %c0_211 = arith.constant 0 : index
      %389 = vector.load %arg12[%c0_210, %c0_211] : memref<8x128xf32, #tpu.memory_space<vmem>>, vector<8x128xf32>
      %390 = arith.truncf %389 : vector<8x128xf32> to vector<8x128xbf16>
      %c0_212 = arith.constant 0 : index
      %c0_213 = arith.constant 0 : index
      %391 = vector.load %arg5[%c0_212, %c0_213] : memref<128x128xbf16, #tpu.memory_space<vmem>>, vector<128x128xbf16>
      %cst_214 = arith.constant dense<0.000000e+00> : vector<8x128xf32>
      %392 = tpu.matmul %390, %391, %cst_214 {dimension_numbers = #tpu.dot_dimension_numbers<[1], [0], [0], [1], [0, 0, 1, 1], [], []>} : vector<8x128xbf16>, vector<128x128xbf16>, vector<8x128xf32> -> vector<8x128xf32>
      %c0_215 = arith.constant 0 : index
      %c0_216 = arith.constant 0 : index
      %393 = vector.load %arg6[%c0_215, %c0_216] : memref<1x128xf32, #tpu.memory_space<vmem>>, vector<1x128xf32>
      %394 = vector.broadcast %393 : vector<1x128xf32> to vector<8x128xf32>
      %395 = arith.addf %392, %394 : vector<8x128xf32>
      %cst_217 = arith.constant 0.000000e+00 : f32
      %396 = vector.broadcast %cst_217 : f32 to vector<8x128xf32>
      %397 = arith.maximumf %395, %396 : vector<8x128xf32>
      %398 = arith.truncf %397 : vector<8x128xf32> to vector<8x128xbf16>
      %c0_218 = arith.constant 0 : index
      %c0_219 = arith.constant 0 : index
      %399 = vector.load %arg7[%c0_218, %c0_219] : memref<128x128xbf16, #tpu.memory_space<vmem>>, vector<128x128xbf16>
      %cst_220 = arith.constant dense<0.000000e+00> : vector<8x128xf32>
      %400 = tpu.matmul %398, %399, %cst_220 {dimension_numbers = #tpu.dot_dimension_numbers<[1], [0], [0], [1], [0, 0, 1, 1], [], []>} : vector<8x128xbf16>, vector<128x128xbf16>, vector<8x128xf32> -> vector<8x128xf32>
      %c0_221 = arith.constant 0 : index
      %c0_222 = arith.constant 0 : index
      %401 = vector.load %arg8[%c0_221, %c0_222] : memref<1x128xf32, #tpu.memory_space<vmem>>, vector<1x128xf32>
      %402 = vector.broadcast %401 : vector<1x128xf32> to vector<8x128xf32>
      %403 = arith.addf %400, %402 : vector<8x128xf32>
      %c0_223 = arith.constant 0 : index
      %c0_224 = arith.constant 0 : index
      %404 = vector.load %arg9[%c0_223, %c0_224] : memref<8x128xf32, #tpu.memory_space<vmem>>, vector<8x128xf32>
      tpu.vector_store %arg9[%c0_223, %c0_224], %403 {strides = array<i32>} : memref<8x128xf32, #tpu.memory_space<vmem>>, vector<8x128xf32>,
    } else {
    }
    return
  }
  func.func @transform_0(%arg0: i32) -> (i32, i32, i32) {
    %c0_i32 = arith.constant 0 : i32
    %c0_i32_0 = arith.constant 0 : i32
    %c0_i32_1 = arith.constant 0 : i32
    %c0_i32_2 = arith.constant 0 : i32
    return %c0_i32, %c0_i32_0, %c0_i32_1 : i32, i32, i32
  }
  func.func @transform_1(%arg0: i32) -> (i32, i32, i32) {
    %c0_i32 = arith.constant 0 : i32
    %c0_i32_0 = arith.constant 0 : i32
    %c0_i32_1 = arith.constant 0 : i32
    return %arg0, %c0_i32, %c0_i32_0 : i32, i32, i32
  }
  func.func @transform_2(%arg0: i32) -> (i32, i32, i32) {
    %c0_i32 = arith.constant 0 : i32
    %c0_i32_0 = arith.constant 0 : i32
    %c0_i32_1 = arith.constant 0 : i32
    return %arg0, %c0_i32, %c0_i32_0 : i32, i32, i32
  }
  func.func @transform_3(%arg0: i32) -> (i32, i32, i32) {
    %c0_i32 = arith.constant 0 : i32
    %c0_i32_0 = arith.constant 0 : i32
    %c0_i32_1 = arith.constant 0 : i32
    return %arg0, %c0_i32, %c0_i32_0 : i32, i32, i32
  }
  func.func @transform_4(%arg0: i32) -> (i32, i32) {
    %c0_i32 = arith.constant 0 : i32
    %c0_i32_0 = arith.constant 0 : i32
    %c0_i32_1 = arith.constant 0 : i32
    return %c0_i32, %c0_i32_0 : i32, i32
  }
  func.func @transform_5(%arg0: i32) -> (i32, i32) {
    %c0_i32 = arith.constant 0 : i32
    %c0_i32_0 = arith.constant 0 : i32
    %c0_i32_1 = arith.constant 0 : i32
    return %c0_i32, %c0_i32_0 : i32, i32
  }
  func.func @transform_6(%arg0: i32) -> (i32, i32) {
    %c0_i32 = arith.constant 0 : i32
    %c0_i32_0 = arith.constant 0 : i32
    %c0_i32_1 = arith.constant 0 : i32
    return %c0_i32, %c0_i32_0 : i32, i32
  }
  func.func @transform_7(%arg0: i32) -> (i32, i32) {
    %c0_i32 = arith.constant 0 : i32
    %c0_i32_0 = arith.constant 0 : i32
    %c0_i32_1 = arith.constant 0 : i32
    return %c0_i32, %c0_i32_0 : i32, i32
  }
  func.func @transform_8(%arg0: i32) -> (i32, i32) {
    %c0_i32 = arith.constant 0 : i32
    %c0_i32_0 = arith.constant 0 : i32
    %c0_i32_1 = arith.constant 0 : i32
    return %c0_i32, %c0_i32_0 : i32, i32
  }
}

</mosaic_0001>

<bundles_post_ra>
// kernel: _fused_rnn_call.1
= control target key start
LH: loop header
LB: loop body
LE: loop exit
PB: predicated region body
PF: predicated region fallthrough
CT: control target
= control target key end

     0   :  { %s6878_s0 = inlined_call_operand.hbm [shape: f32[8,8,128], index: 0, kind: input, shape index: {}]   ;;  %s6879_s1 = inlined_call_operand.hbm [shape: bf16[2,128,512], index: 1, kind: input, shape index: {}]   ;;  %s6880_s2 = inlined_call_operand.hbm [shape: bf16[2,128,512], index: 2, kind: input, shape index: {}]   ;;  %s6881_s3 = inlined_call_operand.hbm [shape: f32[2,1,512], index: 3, kind: input, shape index: {}]   ;;  %s6882_s4 = inlined_call_operand.hbm [shape: bf16[128,128], index: 4, kind: input, shape index: {}]   ;;  %s6883_s5 = inlined_call_operand.vmem [shape: f32[1,128], index: 5, kind: input, shape index: {}]   ;;  %s6884_s6 = inlined_call_operand.hbm [shape: bf16[128,128], index: 6, kind: input, shape index: {}]   ;;  %s6885_s7 = inlined_call_operand.vmem [shape: f32[1,128], index: 7, kind: input, shape index: {}]   ;;  %s6886_s8 = inlined_call_operand.hbm [shape: f32[8,128], index: 8, kind: output, shape index: {}]  }
   0x1   :  { %6896 = sst [smem:[#allocation27_spill]] %s6878_s0 }
   0x2   :  { %6897 = sst [smem:[#allocation28_spill]] %s6879_s1 }
   0x3   :  { %6898 = sst [smem:[#allocation29_spill]] %s6882_s4 }
   0x4   :  { %13 = vsyncpa [#allocation7], 0 }
   0x5   :  { %14 = vsyncpa [#allocation10], 0 }
   0x6   :  { %16 = vsyncpa [#allocation10 + $0x1], 0 }
   0x7   :  { %17 = vsyncpa [#allocation13], 0 }
   0x8   :  { %19 = vsyncpa [#allocation13 + $0x1], 0 }
   0x9   :  { %20 = vsyncpa [#allocation16], 0 }
   0xa   :  { %21 = vsyncpa [#allocation8], 0  ;;  %s5908_s27 = smov 0   ;;  %s5910_s28 = smov 0  }
   0xb   :  { %s5912_s29 = smov 0   ;;  %s5914_s30 = smov 0  }
   0xc LB: > { %s5927_s9 = sadd.s32 4294967295, %s5850_s30   ;;  %p68_p0 = scmp.ne.s32.totalorder %s5842_s28, %s5838_s27  ;;  %s5850_s30 = sphi %s5914_s30, %s6917_s30   ;;  %s5846_s29 = sphi %s5912_s29, %s6921_s29   ;;  %s5842_s28 = sphi %s5910_s28, %s6920_s28   ;;  %s5838_s27 = sphi %s5908_s27, %s6919_s27  }
   0xd   : > { %p69_p1 = scmp.eq.s32.totalorder %s5927_s9, 0  ;;  %p3703_p2 = scmp.ge.s32.totalorder %s5850_s30, 1 }
   0xe   : > { %p236_p3 = scmp.lt.s32.totalorder %s5850_s30, 3  ;;  %p3704_p4 = scmp.ne.s32.totalorder %s5927_s9, 0 }
   0xf   : > { %p5936_p5 = por %p69_p1, %p68_p0  ;;  %s6900_s4 = sld [smem:[#allocation29_spill]] }
  0x10   : > { %p5943_p6 = pnand %p3703_p2, %p236_p3  ;;  %s5852_s15 = smov [#allocation14]  }
  0x11   : > { %s263_s16 = sshll.u32 %s5852_s15, 4  ;;  %s5956_s18 = sadd.s32 1, %s5850_s30   ;;  %s264_s16 = int_to_ptr.vmem [resolvable:$true] %s263_s16 }
  0x12   : > { %p5434_p7 = pneg %p5943_p6  ;;  %6903 = sst [smem:[#allocation24_spill]] %s5956_s18 }
  0x13   : > { %s6887_s19 = smov 64   ;;  %s6888_s20 = smov 4  }
  0x14   : > { %p5951_p8 = pnand %p5434_p7, %p69_p1  ;;  %s52_s21 = ssub.s32 %s5850_s30, %s5956_s18 }
  0x15   : > { %s261_s13 = sshll.u32 %s6900_s4, 4  ;;  %s55_s22 = sadd.s32 1, %s5846_s29  ;;  %s262_s13 = int_to_ptr.hbm [resolvable:$true] %s261_s13 }
  0x16   : > { %5440 = dma.hbm_to_vmem [thread:$0]  (!%p5951_p8), %s262_s13, 1024, %s264_s16, [#allocation13], %s6887_s19, %s6887_s19, %s6888_s20  }
  0x17   : > { %p53_p9 = scmp.eq.s32.totalorder %s52_s21, 0  ;;  %p62_p10 = scmp.ne.s32.totalorder %s5846_s29, %s5842_s28 }
  0x18   : > { %p63_p11 = scmp.eq.s32.totalorder %s5850_s30, 0  ;;  %p5457_p12 = scmp.lt.s32.totalorder %s5850_s30, 2 }
  0x19   : > { %s5971_s23 = scalar_select %p53_p9, %s5846_s29, %s55_s22  }
  0x1a   : > { %p64_p13 = por %p63_p11, %p62_p10  ;;  %s6890_s24 = sand.u32 1, %s5850_s30  }
  0x1b   : > { %6904 = sst [smem:[#allocation25_spill]] %s5971_s23  ;;  %s6889_s25 = sand.u32 1, %s5846_s29  }
  0x1c   : > { %s5977_s26 = sshll.u32 %s6889_s25, 8  ;;  %s5074_s27 = sshll.u32 %s5850_s30, 8 }
  0x1d   : > { %s6905_s1 = sld [smem:[#allocation28_spill]]  ;;  %s301_s16 = scalar_lea.vmem [#allocation9], %s5977_s26 }
  0x1e   : > { %s309_s21 = sshll.u32 %s301_s16, 4  ;;  %p5986_p0 = pnand %p5457_p12, %p64_p13  ;;  %s310_s21 = int_to_ptr.vmem [resolvable:$true] %s309_s21 }
  0x1f   : > { %s328_s25 = scalar_lea.hbm %s6880_s2, %s5074_s27  ;;  %s5995_s4 = scalar_lea.sflag [#allocation10], %s6890_s24 }
  0x20   : > { %p5622_p3 = pneg %p5986_p0 }
  0x23   : > { %s306_s13 = scalar_lea.hbm %s6905_s1, %s5074_s27  ;;  %s5625_s19 = scalar_lea.hbm %s6905_s1, 512 }
  0x24   : > { %s307_s15 = sshll.u32 %s306_s13, 4  ;;  %s308_s15 = int_to_ptr.hbm [resolvable:$true] %s307_s15 }
  0x25   : > { %s5618_s11 = sshra.s32 %s308_s15, 4  ;;  %s5619_s11 = int_to_ptr.hbm [resolvable:$true] %s5618_s11 }
  0x26   : > { %s5620_s12 = scalar_lea.hbm %s5619_s11, 256  ;;  %p5626_p10 = scmp.lt.s32.totalorder %s5619_s11, %s6905_s1 }
  0x27   : > { %p5621_p2 = scmp.ne.s32.totalorder %s5619_s11, %s5620_s12  ;;  %p5627_p11 = scmp.lt.s32.totalorder %s5625_s19, %s5620_s12 }
  0x29   : > { %p5623_p7 = pnand %p5622_p3, %p5621_p2  ;;  %p5628_p12 = por %p5627_p11, %p5626_p10 }
  0x2b   : > { %p5624_p9 = pneg %p5623_p7 }
  0x2d   : > { %p5629_p13 = pnand %p5628_p12, %p5624_p9 }
  0x2f   : > { %5632 = shalt.err (!%p5629_p13)
}
  0x30   : > { %s6894_s27 = smov 256   ;;  %s6895_s24 = smov 16  }
  0x31   : > { %5447 = dma.hbm_to_vmem [thread:$0]  (!%p5986_p0), %s308_s15, 4096, %s310_s21, %s5995_s4, %s6894_s27, %s6894_s27, %s6895_s24  }
  0x32   : > { %s329_s13 = sshll.u32 %s328_s25, 4  ;;  %s323_s16 = scalar_lea.vmem [#allocation11], %s5977_s26  ;;  %s6017_s13 = int_to_ptr.hbm [resolvable:$true] %s329_s13 }
  0x33   : > { %s6015_s18 = sshll.u32 %s323_s16, 4  ;;  %s6908_s0 = sld [smem:[#allocation27_spill]] }
  0x34   : > { %6907 = sst [smem:[#allocation26_spill]] %s6015_s18  ;;  %s5857_s19 = smov [#allocation6]  }
  0x35   : > { %s249_s20 = sshll.u32 %s5857_s19, 4  ;;  %s278_s15 = sshll.u32 %s6884_s6, 4  ;;  %s250_s20 = int_to_ptr.vmem [resolvable:$true] %s249_s20  ;;  %s279_s15 = int_to_ptr.hbm [resolvable:$true] %s278_s15 }
  0x36   : > { %s5858_s21 = smov 128   ;;  %s5859_s16 = smov 8  }
  0x37   : > { %s5860_s18 = smov [#allocation15]   ;;  %s6909_s23 = sand.u32 1, %s5846_s29  }
  0x38   : > { %s280_s27 = sshll.u32 %s5860_s18, 4  ;;  %s3714_s11 = sshll.u32 %s6909_s23, 2  ;;  %s281_s27 = int_to_ptr.vmem [resolvable:$true] %s280_s27 }
  0x39   : > { %s247_s12 = sshll.u32 %s6908_s0, 4  ;;  %s6910_s24 = smov 4   ;;  %s248_s12 = int_to_ptr.hbm [resolvable:$true] %s247_s12 }
  0x3a   : > { %5437 = dma.hbm_to_vmem [thread:$0]  (!%p5951_p8), %s248_s12, 1024, %s250_s20, [#allocation7], %s5858_s21, %s5858_s21, %s5859_s16  }
  0x3b   : > { %s6911_s0 = smov 64   ;;  %s5708_s19 = sshra.s32 %s6017_s13, 4  ;;  %s5709_s19 = int_to_ptr.hbm [resolvable:$true] %s5708_s19 }
  0x3c   : > { %5443 = dma.hbm_to_vmem [thread:$0]  (!%p5951_p8), %s279_s15, 1024, %s281_s27, [#allocation16], %s6911_s0, %s6911_s0, %s6910_s24  }
  0x3d   : > { %s5710_s1 = scalar_lea.hbm %s5709_s19, 256  ;;  %s5715_s18 = scalar_lea.hbm %s6880_s2, 512 }
  0x3e   : > { %p5711_p2 = scmp.ne.s32.totalorder %s5709_s19, %s5710_s1  ;;  %p5716_p10 = scmp.lt.s32.totalorder %s5709_s19, %s6880_s2 }
  0x3f   : > { %p5717_p11 = scmp.lt.s32.totalorder %s5715_s18, %s5710_s1 }
  0x40   : > { %p5713_p7 = pnand %p5711_p2, %p5622_p3 }
  0x41   : > { %p5718_p12 = por %p5717_p11, %p5716_p10 }
  0x42   : > { %p5714_p9 = pneg %p5713_p7 }
  0x44   : > { %p5719_p13 = pnand %p5718_p12, %p5714_p9 }
  0x46   : > { %5722 = shalt.err (!%p5719_p13)
}
  0x47   : > { %s6912_s0 = smov 16   ;;  %s6913_s17 = smov 256  }
  0x48   : > { %s6914_s24 = sld [smem:[#allocation26_spill]]  ;;  %s3715_s15 = sshll.u32 %s5850_s30, 2 }
  0x49   : > { %s349_s1 = scalar_lea.hbm %s6881_s3, %s3715_s15  ;;  %s345_s23 = scalar_lea.vmem [#allocation12], %s3714_s11 }
  0x4a   : > { %s353_s19 = sshll.u32 %s345_s23, 4  ;;  %s351_s12 = sshll.u32 %s349_s1, 4  ;;  %s354_s19 = int_to_ptr.vmem [resolvable:$true] %s353_s19  ;;  %s352_s12 = int_to_ptr.hbm [resolvable:$true] %s351_s12 }
  0x4b   : > { %s6916_s20 = sand.u32 1, %s5850_s30   ;;  %s5738_s25 = sshra.s32 %s352_s12, 4  ;;  %s5739_s25 = int_to_ptr.hbm [resolvable:$true] %s5738_s25 }
  0x4c   : > { %s342_s18 = scalar_lea.sflag [#allocation13], %s6916_s20  ;;  %s5740_s26 = scalar_lea.hbm %s5739_s25, 4 }
  0x4d   : > { %p5741_p8 = scmp.ne.s32.totalorder %s5739_s25, %s5740_s26  ;;  %p5746_p9 = scmp.lt.s32.totalorder %s5739_s25, %s6881_s3 }
  0x4e   : > { %s6915_s27 = int_to_ptr.vmem [resolvable:$true] %s6914_s24 }
  0x4f   : > { %5450 = dma.hbm_to_vmem [thread:$0]  (!%p5986_p0), %s6017_s13, 4096, %s6915_s27, %s5995_s4, %s6913_s17, %s6913_s17, %s6912_s0  }
  0x50   : > { %p5743_p2 = pnand %p5741_p8, %p5622_p3  ;;  %s5745_s0 = scalar_lea.hbm %s6881_s3, 8 }
  0x51   : > { %p5747_p10 = scmp.lt.s32.totalorder %s5745_s0, %s5740_s26 }
  0x52   : > { %p5744_p7 = pneg %p5743_p2 }
  0x53   : > { %p5748_p11 = por %p5747_p10, %p5746_p9 }
  0x55   : > { %p5749_p12 = pnand %p5748_p11, %p5744_p7 }
  0x57   : > { %5752 = shalt.err (!%p5749_p12)
}
  0x58   : > { %5453 = dma.hbm_to_vmem [thread:$0]  (!%p5986_p0), %s352_s12, 64, %s354_s19, %s342_s18  }
  0x59   : > { %362 = sbr.rel (%p5943_p6) target bundleno = 2163 (0x873), region = 52 }
  0x5e   : > { %5813 = dma.done.wait (%p69_p1), [#allocation7], 1024  }
  0x5f   : > { %5815 = vsyncadd (%p69_p1), [#allocation7], 4294966272  ;;  %s369_s30 = sand.u32 1, %s5927_s9   ;;  %s371_s24 = sand.u32 1, %s5842_s28  }
  0x60   : > { %s3718_s27 = sshll.u32 %s371_s24, 8  ;;  %s370_s15 = scalar_lea.sflag [#allocation10], %s369_s30 }
  0x61   : > { %s6079_s21 = scalar_lea.vmem [#allocation9], %s3718_s27 }
  0x62   : > { %5817 = dma.done.wait (%p5936_p5), %s370_s15, 8192  }
  0x63   : > { %5819 = vsyncadd (%p5936_p5), %s370_s15, 4294959104  ;;  %s6085_s14 = sshll.u32 %s371_s24, 2  ;;  %s6087_s22 = scalar_lea.vmem [#allocation11], %s3718_s27 }
  0x64   : > { %s390_s16 = scalar_lea.sflag [#allocation13], %s369_s30  ;;  %s393_s1 = scalar_lea.vmem [#allocation12], %s6085_s14 }
  0x65   : > { %5821 = dma.done.wait (%p5936_p5), %s390_s16, 64  }
  0x66   : > { %5823 = vsyncadd (%p5936_p5), %s390_s16, 4294967232 }
  0x67   : > { %5825 = dma.done.wait (%p69_p1), [#allocation13], 1024  }
  0x68   : > { %5827 = vsyncadd (%p69_p1), [#allocation13], 4294966272 }
  0x69   : > { %5829 = dma.done.wait (%p69_p1), [#allocation16], 1024  }
  0x6a   : > { %5831 = vsyncadd (%p69_p1), [#allocation16], 4294966272  ;;  %445 = sbr.rel (%p3704_p4) target bundleno = 338 (0x152), region = 80 }
  0x6f   : > { %v3838_v0 = vld [vmem:[%s6079_s21 + $0xe0] sm:$0xf]  ;;  %v5106_v1 = vld [vmem:[%s6079_s21 + $0xec] sm:$0xf0]  ;;  %v5104_v2 = vld [vmem:[%s6079_s21 + $0xe4] sm:$0xf] }
  0x70   : > { %v3839_v3 = vor.u32 %v5106_v1, %v3838_v0  ;;  %v3840_v4 = vld [vmem:[%s6079_s21 + $0xf0] sm:$0xf0]  ;;  %v3846_v5 = vld [vmem:[%s6079_s21 + $0xe8] sm:$0xf]  ;;  %v5107_v6 = vld [vmem:[%s6079_s21 + $0xf4] sm:$0xf0] }
  0x71   : > { %v3843_v7 = vor.u32 %v5104_v2, %v3840_v4  ;;  %v3847_v8 = vor.u32 %v5107_v6, %v3846_v5  ;;  %v5105_v9 = vld [vmem:[%s6079_s21 + $0xec] sm:$0xf]  ;;  %v3848_v10 = vld [vmem:[%s6079_s21 + $0xf8] sm:$0xf0]  ;;  %v3822_v11 = vld [vmem:[%s6079_s21 + $0xc0] sm:$0xf] }
  0x72   : > { %660 = vmatpush.bf16.msra.mxu0 %v3839_v3  ;;  %v3851_v12 = vor.u32 %v5105_v9, %v3848_v10  ;;  %v5102_v13 = vld [vmem:[%s6079_s21 + $0xcc] sm:$0xf0]  ;;  %v5100_v14 = vld [vmem:[%s6079_s21 + $0xc4] sm:$0xf]  ;;  %v3824_v15 = vld [vmem:[%s6079_s21 + $0xd0] sm:$0xf0] }
  0x73   : > { %689 = vmatpush.bf16.msra.mxu1 %v3843_v7  ;;  %718 = vmatpush.bf16.msra.mxu2 %v3847_v8  ;;  %v3823_v16 = vor.u32 %v5102_v13, %v3822_v11  ;;  %v3827_v17 = vor.u32 %v5100_v14, %v3824_v15  ;;  %v3830_v18 = vld [vmem:[%s6079_s21 + $0xc8] sm:$0xf]  ;;  %v5103_v19 = vld [vmem:[%s6079_s21 + $0xd4] sm:$0xf0]  ;;  %v5101_v20 = vld [vmem:[%s6079_s21 + $0xcc] sm:$0xf] }
  0x74   : > { %747 = vmatpush.bf16.msra.mxu3 %v3851_v12  ;;  %v3831_v21 = vor.u32 %v5103_v19, %v3830_v18  ;;  %v3832_v22 = vld [vmem:[%s6079_s21 + $0xd8] sm:$0xf0]  ;;  %v3806_v23 = vld [vmem:[%s6079_s21 + $0xa0] sm:$0xf]  ;;  %v5098_v24 = vld [vmem:[%s6079_s21 + $0xac] sm:$0xf0] }
  0x75   : > { %v3835_v25 = vor.u32 %v5101_v20, %v3832_v22  ;;  %v5096_v26 = vld [vmem:[%s6079_s21 + $0xa4] sm:$0xf]  ;;  %v3808_v27 = vld [vmem:[%s6079_s21 + $0xb0] sm:$0xf0]  ;;  %v3814_v28 = vld [vmem:[%s6079_s21 + $0xa8] sm:$0xf]  ;;  %v3807_v29 = vor.u32 %v5098_v24, %v3806_v23 }
  0x76   : > { %661 = vmatpush.bf16.msra.mxu0 %v3823_v16  ;;  %v5099_v30 = vld [vmem:[%s6079_s21 + $0xb4] sm:$0xf0]  ;;  %v5097_v31 = vld [vmem:[%s6079_s21 + $0xac] sm:$0xf]  ;;  %v3816_v32 = vld [vmem:[%s6079_s21 + $0xb8] sm:$0xf0]  ;;  %v3811_v33 = vor.u32 %v5096_v26, %v3808_v27 }
  0x77   : > { %690 = vmatpush.bf16.msra.mxu1 %v3827_v17  ;;  %719 = vmatpush.bf16.msra.mxu2 %v3831_v21  ;;  %v3815_v34 = vor.u32 %v5099_v30, %v3814_v28  ;;  %v3790_v35 = vld [vmem:[%s6079_s21 + $0x80] sm:$0xf]  ;;  %v5094_v36 = vld [vmem:[%s6079_s21 + $0x8c] sm:$0xf0]  ;;  %v5092_v37 = vld [vmem:[%s6079_s21 + $0x84] sm:$0xf]  ;;  %v3819_v38 = vor.u32 %v5097_v31, %v3816_v32 }
  0x78   : > { %748 = vmatpush.bf16.msra.mxu3 %v3835_v25  ;;  %v3792_v39 = vld [vmem:[%s6079_s21 + $0x90] sm:$0xf0]  ;;  %v3798_v40 = vld [vmem:[%s6079_s21 + $0x88] sm:$0xf]  ;;  %v5095_v41 = vld [vmem:[%s6079_s21 + $0x94] sm:$0xf0]  ;;  %v3791_v44 = vor.u32 %v5094_v36, %v3790_v35 }
  0x79   : > { %v5093_v42 = vld [vmem:[%s6079_s21 + $0x8c] sm:$0xf]  ;;  %v3800_v43 = vld [vmem:[%s6079_s21 + $0x98] sm:$0xf0]  ;;  %v3795_v45 = vor.u32 %v5092_v37, %v3792_v39  ;;  %v3799_v46 = vor.u32 %v5095_v41, %v3798_v40  ;;  %v3774_v47 = vld [vmem:[%s6079_s21 + $0x60] sm:$0xf] }
  0x7a   : > { %662 = vmatpush.bf16.msra.mxu0 %v3807_v29  ;;  %v5090_v48 = vld [vmem:[%s6079_s21 + $0x6c] sm:$0xf0]  ;;  %v5088_v49 = vld [vmem:[%s6079_s21 + $0x64] sm:$0xf]  ;;  %v3803_v50 = vor.u32 %v5093_v42, %v3800_v43  ;;  %v3776_v51 = vld [vmem:[%s6079_s21 + $0x70] sm:$0xf0] }
  0x7b   : > { %691 = vmatpush.bf16.msra.mxu1 %v3811_v33  ;;  %720 = vmatpush.bf16.msra.mxu2 %v3815_v34  ;;  %v3782_v52 = vld [vmem:[%s6079_s21 + $0x68] sm:$0xf]  ;;  %v5091_v53 = vld [vmem:[%s6079_s21 + $0x74] sm:$0xf0]  ;;  %v5089_v54 = vld [vmem:[%s6079_s21 + $0x6c] sm:$0xf]  ;;  %v3775_v56 = vor.u32 %v5090_v48, %v3774_v47  ;;  %v3779_v57 = vor.u32 %v5088_v49, %v3776_v51 }
  0x7c   : > { %749 = vmatpush.bf16.msra.mxu3 %v3819_v38  ;;  %v3784_v55 = vld [vmem:[%s6079_s21 + $0x78] sm:$0xf0]  ;;  %v3783_v58 = vor.u32 %v5091_v53, %v3782_v52  ;;  %v3758_v59 = vld [vmem:[%s6079_s21 + $0x40] sm:$0xf]  ;;  %v5086_v60 = vld [vmem:[%s6079_s21 + $0x4c] sm:$0xf0] }
  0x7d   : > { %v5084_v61 = vld [vmem:[%s6079_s21 + $0x44] sm:$0xf]  ;;  %v3787_v62 = vor.u32 %v5089_v54, %v3784_v55  ;;  %v3760_v63 = vld [vmem:[%s6079_s21 + $0x50] sm:$0xf0]  ;;  %v3766_v0 = vld [vmem:[%s6079_s21 + $0x48] sm:$0xf]  ;;  %v3759_v4 = vor.u32 %v5086_v60, %v3758_v59 }
  0x7e   : > { %663 = vmatpush.bf16.msra.mxu0 %v3791_v44  ;;  %v5087_v1 = vld [vmem:[%s6079_s21 + $0x54] sm:$0xf0]  ;;  %v5085_v2 = vld [vmem:[%s6079_s21 + $0x4c] sm:$0xf]  ;;  %v3768_v3 = vld [vmem:[%s6079_s21 + $0x58] sm:$0xf0]  ;;  %v3763_v5 = vor.u32 %v5084_v61, %v3760_v63 }
  0x7f   : > { %692 = vmatpush.bf16.msra.mxu1 %v3795_v45  ;;  %721 = vmatpush.bf16.msra.mxu2 %v3799_v46  ;;  %v3767_v6 = vor.u32 %v5087_v1, %v3766_v0  ;;  %v3742_v7 = vld [vmem:[%s6079_s21 + $0x20] sm:$0xf]  ;;  %v5082_v8 = vld [vmem:[%s6079_s21 + $0x2c] sm:$0xf0]  ;;  %v5080_v9 = vld [vmem:[%s6079_s21 + $0x24] sm:$0xf]  ;;  %v3771_v10 = vor.u32 %v5085_v2, %v3768_v3 }
  0x80   : > { %750 = vmatpush.bf16.msra.mxu3 %v3803_v50  ;;  %v3744_v11 = vld [vmem:[%s6079_s21 + $0x30] sm:$0xf0]  ;;  %v3750_v12 = vld [vmem:[%s6079_s21 + $0x28] sm:$0xf]  ;;  %v5083_v13 = vld [vmem:[%s6079_s21 + $0x34] sm:$0xf0]  ;;  %v3743_v16 = vor.u32 %v5082_v8, %v3742_v7 }
  0x81   : > { %v5081_v14 = vld [vmem:[%s6079_s21 + $0x2c] sm:$0xf]  ;;  %v3752_v15 = vld [vmem:[%s6079_s21 + $0x38] sm:$0xf0]  ;;  %v3747_v17 = vor.u32 %v5080_v9, %v3744_v11  ;;  %v3751_v18 = vor.u32 %v5083_v13, %v3750_v12  ;;  %v3726_v19 = vld [vmem:[%s6079_s21] sm:$0xf] }
  0x82   : > { %664 = vmatpush.bf16.msra.mxu0 %v3775_v56  ;;  %v5078_v20 = vld [vmem:[%s6079_s21 + $0xc] sm:$0xf0]  ;;  %v5076_v21 = vld [vmem:[%s6079_s21 + $0x4] sm:$0xf]  ;;  %v3755_v22 = vor.u32 %v5081_v14, %v3752_v15  ;;  %v3728_v23 = vld [vmem:[%s6079_s21 + $0x10] sm:$0xf0] }
  0x83   : > { %693 = vmatpush.bf16.msra.mxu1 %v3779_v57  ;;  %722 = vmatpush.bf16.msra.mxu2 %v3783_v58  ;;  %v3734_v24 = vld [vmem:[%s6079_s21 + $0x8] sm:$0xf]  ;;  %v5079_v25 = vld [vmem:[%s6079_s21 + $0x14] sm:$0xf0]  ;;  %v5077_v26 = vld [vmem:[%s6079_s21 + $0xc] sm:$0xf]  ;;  %v3727_v28 = vor.u32 %v5078_v20, %v3726_v19  ;;  %v3731_v31 = vor.u32 %v5076_v21, %v3728_v23 }
  0x84   : > { %751 = vmatpush.bf16.msra.mxu3 %v3787_v62  ;;  %v3736_v27 = vld [vmem:[%s6079_s21 + $0x18] sm:$0xf0]  ;;  %v446_v29 = vld [vmem:[#allocation6] sm:$0xff]  ;;  %v447_v30 = vld [vmem:[#allocation6 + $0x8] sm:$0xff]  ;;  %v3735_v32 = vor.u32 %v5079_v25, %v3734_v24 }
  0x85   : > { %v3739_v33 = vor.u32 %v5077_v26, %v3736_v27  ;;  %v454_v34 = vpack.c.bf16 %v447_v30, %v446_v29  ;;  %v448_v35 = vld [vmem:[#allocation6 + $0x10] sm:$0xff]  ;;  %v449_v36 = vld [vmem:[#allocation6 + $0x18] sm:$0xff]  ;;  %v450_v38 = vld [vmem:[#allocation6 + $0x20] sm:$0xff] }
  0x86   : > { %665 = vmatpush.bf16.msra.mxu0 %v3759_v4  ;;  %v455_v37 = vpack.c.bf16 %v449_v36, %v448_v35  ;;  %v451_v39 = vld [vmem:[#allocation6 + $0x28] sm:$0xff]  ;;  %v452_v41 = vld [vmem:[#allocation6 + $0x30] sm:$0xff]  ;;  %v453_v42 = vld [vmem:[#allocation6 + $0x38] sm:$0xff] }
  0x87   : > { %694 = vmatpush.bf16.msra.mxu1 %v3763_v5  ;;  %723 = vmatpush.bf16.msra.mxu2 %v3767_v6  ;;  %v456_v40 = vpack.c.bf16 %v451_v39, %v450_v38  ;;  %v457_v43 = vpack.c.bf16 %v453_v42, %v452_v41  ;;  %v490_v44 = vld [vmem:[%s393_s1] sm:$0xf] }
  0x88   : > { %752 = vmatpush.bf16.msra.mxu3 %v3771_v10  ;;  %v6170_v45 = vperm.slane %v490_v44, 0  ;;  %v6172_v46 = vperm.slane %v490_v44, 1  ;;  %v6176_v51 = vperm.slane %v490_v44, 2  ;;  %v6178_v52 = vperm.slane %v490_v44, 3 }
  0x8a   : > { %666 = vmatpush.bf16.msra.mxu0 %v3743_v16 }
  0x8b   : > { %695 = vmatpush.bf16.msra.mxu1 %v3747_v17  ;;  %724 = vmatpush.bf16.msra.mxu2 %v3751_v18 }
  0x8c   : > { %753 = vmatpush.bf16.msra.mxu3 %v3755_v22 }
  0x8e   : > { %667 = vmatpush.bf16.msra.mxu0 %v3727_v28 }
  0x8f   : > { %696 = vmatpush.bf16.msra.mxu1 %v3731_v31  ;;  %725 = vmatpush.bf16.msra.mxu2 %v3735_v32 }
  0x90   : > { %754 = vmatpush.bf16.msra.mxu3 %v3739_v33 }
  0x91   : > { %668 = vmatmul.bf16.vlgmr.msra.gmra.mxu0 %v454_v34 }
  0x92   : > { %697 = vmatmul.bf16.vlgmr.msra.gmra.mxu1 %v454_v34  ;;  %726 = vmatmul.bf16.vlgmr.msra.gmra.mxu2 %v454_v34 }
  0x93   : > { %755 = vmatmul.bf16.vlgmr.msra.gmra.mxu3 %v454_v34 }
  0xa1   : > { %673 = vmatmul.bf16.gmra.mxu0 %v455_v37 }
  0xa2   : > { %702 = vmatmul.bf16.gmra.mxu1 %v455_v37  ;;  %731 = vmatmul.bf16.gmra.mxu2 %v455_v37 }
  0xa3   : > { %760 = vmatmul.bf16.gmra.mxu3 %v455_v37 }
  0xb1   : > { %678 = vmatmul.bf16.gmra.mxu0 %v456_v40 }
  0xb2   : > { %707 = vmatmul.bf16.gmra.mxu1 %v456_v40  ;;  %736 = vmatmul.bf16.gmra.mxu2 %v456_v40 }
  0xb3   : > { %765 = vmatmul.bf16.gmra.mxu3 %v456_v40 }
  0xc1   : > { %683 = vmatmul.bf16.gmra.mxu0 %v457_v43 }
  0xc2   : > { %712 = vmatmul.bf16.gmra.mxu1 %v457_v43  ;;  %741 = vmatmul.bf16.gmra.mxu2 %v457_v43 }
  0xc3   : > { %770 = vmatmul.bf16.gmra.mxu3 %v457_v43 }
 0x10e   : > { %v669_v47 = vpop.f32.mrf.mxu0 }
 0x10f   : > { %v670_v48 = vadd.f32 %v669_v47, %v6170_v45  ;;  %v698_v49 = vpop.f32.mrf.mxu1 }
 0x110   : > { %v699_v50 = vadd.f32 %v698_v49, %v6172_v46 }
 0x111   : > { %776 = vst [vmem:[#allocation3] sm:$0xff] %v670_v48 }
 0x112   : > { %777 = vst [vmem:[#allocation3 + $0x18] sm:$0xff] %v699_v50 }
 0x115   : > { %v727_v53 = vpop.f32.mrf.mxu2 }
 0x116   : > { %v728_v54 = vadd.f32 %v727_v53, %v6176_v51  ;;  %v756_v55 = vpop.f32.mrf.mxu3  ;;  %v671_v56 = vpop.f32.mrf.mxu0 }
 0x117   : > { %v757_v57 = vadd.f32 %v756_v55, %v6178_v52  ;;  %v672_v58 = vadd.f32 %v671_v56, %v6170_v45  ;;  %v700_v59 = vpop.f32.mrf.mxu1 }
 0x118   : > { %778 = vst [vmem:[#allocation3 + $0x50] sm:$0xff] %v728_v54  ;;  %v701_v60 = vadd.f32 %v700_v59, %v6172_v46 }
 0x119   : > { %779 = vst [vmem:[#allocation3 + $0xe0] sm:$0xff] %v757_v57 }
 0x11a   : > { %780 = vst [vmem:[#allocation3 + $0xe8] sm:$0xff] %v672_v58 }
 0x11b   : > { %781 = vst [vmem:[#allocation3 + $0x68] sm:$0xff] %v701_v60 }
 0x11d   : > { %v729_v61 = vpop.f32.mrf.mxu2 }
 0x11e   : > { %v730_v62 = vadd.f32 %v729_v61, %v6176_v51  ;;  %v758_v63 = vpop.f32.mrf.mxu3  ;;  %v674_v0 = vpop.f32.mrf.mxu0 }
 0x11f   : > { %v759_v1 = vadd.f32 %v758_v63, %v6178_v52  ;;  %v675_v2 = vadd.f32 %v674_v0, %v6170_v45  ;;  %v703_v3 = vpop.f32.mrf.mxu1 }
 0x120   : > { %782 = vst [vmem:[#allocation3 + $0xf0] sm:$0xff] %v730_v62  ;;  %v704_v4 = vadd.f32 %v703_v3, %v6172_v46 }
 0x121   : > { %783 = vst [vmem:[#allocation3 + $0xd0] sm:$0xff] %v759_v1 }
 0x122   : > { %784 = vst [vmem:[#allocation3 + $0x20] sm:$0xff] %v675_v2 }
 0x123   : > { %785 = vst [vmem:[#allocation3 + $0xa8] sm:$0xff] %v704_v4 }
 0x125   : > { %v732_v5 = vpop.f32.mrf.mxu2 }
 0x126   : > { %v733_v6 = vadd.f32 %v732_v5, %v6176_v51  ;;  %v761_v7 = vpop.f32.mrf.mxu3  ;;  %v676_v8 = vpop.f32.mrf.mxu0 }
 0x127   : > { %v762_v9 = vadd.f32 %v761_v7, %v6178_v52  ;;  %v677_v10 = vadd.f32 %v676_v8, %v6170_v45  ;;  %v705_v11 = vpop.f32.mrf.mxu1 }
 0x128   : > { %786 = vst [vmem:[#allocation3 + $0x10] sm:$0xff] %v733_v6  ;;  %v706_v12 = vadd.f32 %v705_v11, %v6172_v46 }
 0x129   : > { %787 = vst [vmem:[#allocation3 + $0x8] sm:$0xff] %v762_v9 }
 0x12a   : > { %788 = vst [vmem:[#allocation3 + $0xa0] sm:$0xff] %v677_v10 }
 0x12b   : > { %789 = vst [vmem:[#allocation3 + $0x28] sm:$0xff] %v706_v12 }
 0x12d   : > { %v734_v13 = vpop.f32.mrf.mxu2 }
 0x12e   : > { %v735_v14 = vadd.f32 %v734_v13, %v6176_v51  ;;  %v763_v15 = vpop.f32.mrf.mxu3  ;;  %v679_v16 = vpop.f32.mrf.mxu0 }
 0x12f   : > { %v764_v17 = vadd.f32 %v763_v15, %v6178_v52  ;;  %v680_v18 = vadd.f32 %v679_v16, %v6170_v45  ;;  %v708_v19 = vpop.f32.mrf.mxu1 }
 0x130   : > { %790 = vst [vmem:[#allocation3 + $0x78] sm:$0xff] %v735_v14  ;;  %v709_v20 = vadd.f32 %v708_v19, %v6172_v46 }
 0x131   : > { %791 = vst [vmem:[#allocation3 + $0x60] sm:$0xff] %v764_v17 }
 0x132   : > { %792 = vst [vmem:[#allocation3 + $0xb0] sm:$0xff] %v680_v18 }
 0x133   : > { %793 = vst [vmem:[#allocation3 + $0xc8] sm:$0xff] %v709_v20 }
 0x135   : > { %v737_v21 = vpop.f32.mrf.mxu2 }
 0x136   : > { %v738_v22 = vadd.f32 %v737_v21, %v6176_v51  ;;  %v766_v23 = vpop.f32.mrf.mxu3  ;;  %v681_v24 = vpop.f32.mrf.mxu0 }
 0x137   : > { %v767_v25 = vadd.f32 %v766_v23, %v6178_v52  ;;  %v682_v26 = vadd.f32 %v681_v24, %v6170_v45  ;;  %v710_v27 = vpop.f32.mrf.mxu1 }
 0x138   : > { %794 = vst [vmem:[#allocation3 + $0x70] sm:$0xff] %v738_v22  ;;  %v711_v28 = vadd.f32 %v710_v27, %v6172_v46 }
 0x139   : > { %795 = vst [vmem:[#allocation3 + $0x30] sm:$0xff] %v767_v25 }
 0x13a   : > { %796 = vst [vmem:[#allocation3 + $0x90] sm:$0xff] %v682_v26 }
 0x13b   : > { %797 = vst [vmem:[#allocation3 + $0xf8] sm:$0xff] %v711_v28 }
 0x13d   : > { %v739_v29 = vpop.f32.mrf.mxu2 }
 0x13e   : > { %v740_v30 = vadd.f32 %v739_v29, %v6176_v51  ;;  %v768_v31 = vpop.f32.mrf.mxu3  ;;  %v684_v32 = vpop.f32.mrf.mxu0 }
 0x13f   : > { %v769_v33 = vadd.f32 %v768_v31, %v6178_v52  ;;  %v685_v34 = vadd.f32 %v684_v32, %v6170_v45  ;;  %v713_v35 = vpop.f32.mrf.mxu1 }
 0x140   : > { %798 = vst [vmem:[#allocation3 + $0xb8] sm:$0xff] %v740_v30  ;;  %v714_v36 = vadd.f32 %v713_v35, %v6172_v46 }
 0x141   : > { %799 = vst [vmem:[#allocation3 + $0x80] sm:$0xff] %v769_v33 }
 0x142   : > { %800 = vst [vmem:[#allocation3 + $0x48] sm:$0xff] %v685_v34 }
 0x143   : > { %801 = vst [vmem:[#allocation3 + $0x38] sm:$0xff] %v714_v36 }
 0x145   : > { %v742_v37 = vpop.f32.mrf.mxu2 }
 0x146   : > { %v743_v38 = vadd.f32 %v742_v37, %v6176_v51  ;;  %v771_v39 = vpop.f32.mrf.mxu3  ;;  %v686_v40 = vpop.f32.mrf.mxu0 }
 0x147   : > { %v772_v41 = vadd.f32 %v771_v39, %v6178_v52  ;;  %v687_v42 = vadd.f32 %v686_v40, %v6170_v45  ;;  %v715_v43 = vpop.f32.mrf.mxu1 }
 0x148   : > { %802 = vst [vmem:[#allocation3 + $0xd8] sm:$0xff] %v743_v38  ;;  %v716_v44 = vadd.f32 %v715_v43, %v6172_v46 }
 0x149   : > { %803 = vst [vmem:[#allocation3 + $0x98] sm:$0xff] %v772_v41 }
 0x14a   : > { %804 = vst [vmem:[#allocation3 + $0x58] sm:$0xff] %v687_v42 }
 0x14b   : > { %805 = vst [vmem:[#allocation3 + $0xc0] sm:$0xff] %v716_v44 }
 0x14d   : > { %v744_v47 = vpop.f32.mrf.mxu2 }
 0x14e   : > { %v745_v48 = vadd.f32 %v744_v47, %v6176_v51  ;;  %v773_v49 = vpop.f32.mrf.mxu3 }
 0x14f   : > { %v774_v50 = vadd.f32 %v773_v49, %v6178_v52 }
 0x150   : > { %806 = vst [vmem:[#allocation3 + $0x40] sm:$0xff] %v745_v48 }
 0x151   : > { %807 = vst [vmem:[#allocation3 + $0x88] sm:$0xff] %v774_v50 }
 0x152 PF: > { %811 = sbr.rel (%p69_p1) target bundleno = 570 (0x23a), region = 84 }
 0x157   : > { %v3967_v45 = vld [vmem:[%s6079_s21 + $0xe0] sm:$0xf]  ;;  %v5138_v46 = vld [vmem:[%s6079_s21 + $0xec] sm:$0xf0]  ;;  %v5136_v51 = vld [vmem:[%s6079_s21 + $0xe4] sm:$0xf] }
 0x158   : > { %v3968_v52 = vor.u32 %v5138_v46, %v3967_v45  ;;  %v3969_v53 = vld [vmem:[%s6079_s21 + $0xf0] sm:$0xf0]  ;;  %v3975_v54 = vld [vmem:[%s6079_s21 + $0xe8] sm:$0xf]  ;;  %v5139_v55 = vld [vmem:[%s6079_s21 + $0xf4] sm:$0xf0] }
 0x159   : > { %v3972_v56 = vor.u32 %v5136_v51, %v3969_v53  ;;  %v3976_v57 = vor.u32 %v5139_v55, %v3975_v54  ;;  %v5137_v58 = vld [vmem:[%s6079_s21 + $0xec] sm:$0xf]  ;;  %v3977_v59 = vld [vmem:[%s6079_s21 + $0xf8] sm:$0xf0]  ;;  %v3951_v60 = vld [vmem:[%s6079_s21 + $0xc0] sm:$0xf] }
 0x15a   : > { %1026 = vmatpush.bf16.msra.mxu0 %v3968_v52  ;;  %v3980_v61 = vor.u32 %v5137_v58, %v3977_v59  ;;  %v5134_v62 = vld [vmem:[%s6079_s21 + $0xcc] sm:$0xf0]  ;;  %v5132_v63 = vld [vmem:[%s6079_s21 + $0xc4] sm:$0xf]  ;;  %v3953_v0 = vld [vmem:[%s6079_s21 + $0xd0] sm:$0xf0] }
 0x15b   : > { %1055 = vmatpush.bf16.msra.mxu1 %v3972_v56  ;;  %1084 = vmatpush.bf16.msra.mxu2 %v3976_v57  ;;  %v3952_v1 = vor.u32 %v5134_v62, %v3951_v60  ;;  %v3956_v2 = vor.u32 %v5132_v63, %v3953_v0  ;;  %v3959_v3 = vld [vmem:[%s6079_s21 + $0xc8] sm:$0xf]  ;;  %v5135_v4 = vld [vmem:[%s6079_s21 + $0xd4] sm:$0xf0]  ;;  %v5133_v5 = vld [vmem:[%s6079_s21 + $0xcc] sm:$0xf] }
 0x15c   : > { %1113 = vmatpush.bf16.msra.mxu3 %v3980_v61  ;;  %v3960_v6 = vor.u32 %v5135_v4, %v3959_v3  ;;  %v3961_v7 = vld [vmem:[%s6079_s21 + $0xd8] sm:$0xf0]  ;;  %v3935_v8 = vld [vmem:[%s6079_s21 + $0xa0] sm:$0xf]  ;;  %v5130_v9 = vld [vmem:[%s6079_s21 + $0xac] sm:$0xf0] }
 0x15d   : > { %v3964_v10 = vor.u32 %v5133_v5, %v3961_v7  ;;  %v5128_v11 = vld [vmem:[%s6079_s21 + $0xa4] sm:$0xf]  ;;  %v3937_v12 = vld [vmem:[%s6079_s21 + $0xb0] sm:$0xf0]  ;;  %v3943_v13 = vld [vmem:[%s6079_s21 + $0xa8] sm:$0xf]  ;;  %v3936_v14 = vor.u32 %v5130_v9, %v3935_v8 }
 0x15e   : > { %1027 = vmatpush.bf16.msra.mxu0 %v3952_v1  ;;  %v5131_v15 = vld [vmem:[%s6079_s21 + $0xb4] sm:$0xf0]  ;;  %v5129_v16 = vld [vmem:[%s6079_s21 + $0xac] sm:$0xf]  ;;  %v3945_v17 = vld [vmem:[%s6079_s21 + $0xb8] sm:$0xf0]  ;;  %v3940_v18 = vor.u32 %v5128_v11, %v3937_v12 }
 0x15f   : > { %1056 = vmatpush.bf16.msra.mxu1 %v3956_v2  ;;  %1085 = vmatpush.bf16.msra.mxu2 %v3960_v6  ;;  %v3944_v19 = vor.u32 %v5131_v15, %v3943_v13  ;;  %v3919_v20 = vld [vmem:[%s6079_s21 + $0x80] sm:$0xf]  ;;  %v5126_v21 = vld [vmem:[%s6079_s21 + $0x8c] sm:$0xf0]  ;;  %v5124_v22 = vld [vmem:[%s6079_s21 + $0x84] sm:$0xf]  ;;  %v3948_v23 = vor.u32 %v5129_v16, %v3945_v17 }
 0x160   : > { %1114 = vmatpush.bf16.msra.mxu3 %v3964_v10  ;;  %v3921_v24 = vld [vmem:[%s6079_s21 + $0x90] sm:$0xf0]  ;;  %v3927_v25 = vld [vmem:[%s6079_s21 + $0x88] sm:$0xf]  ;;  %v5127_v26 = vld [vmem:[%s6079_s21 + $0x94] sm:$0xf0]  ;;  %v3920_v29 = vor.u32 %v5126_v21, %v3919_v20 }
 0x161   : > { %v5125_v27 = vld [vmem:[%s6079_s21 + $0x8c] sm:$0xf]  ;;  %v3929_v28 = vld [vmem:[%s6079_s21 + $0x98] sm:$0xf0]  ;;  %v3924_v30 = vor.u32 %v5124_v22, %v3921_v24  ;;  %v3928_v31 = vor.u32 %v5127_v26, %v3927_v25  ;;  %v3903_v32 = vld [vmem:[%s6079_s21 + $0x60] sm:$0xf] }
 0x162   : > { %1028 = vmatpush.bf16.msra.mxu0 %v3936_v14  ;;  %v5122_v33 = vld [vmem:[%s6079_s21 + $0x6c] sm:$0xf0]  ;;  %v5120_v34 = vld [vmem:[%s6079_s21 + $0x64] sm:$0xf]  ;;  %v3932_v35 = vor.u32 %v5125_v27, %v3929_v28  ;;  %v3905_v36 = vld [vmem:[%s6079_s21 + $0x70] sm:$0xf0] }
 0x163   : > { %1057 = vmatpush.bf16.msra.mxu1 %v3940_v18  ;;  %1086 = vmatpush.bf16.msra.mxu2 %v3944_v19  ;;  %v3911_v37 = vld [vmem:[%s6079_s21 + $0x68] sm:$0xf]  ;;  %v5123_v38 = vld [vmem:[%s6079_s21 + $0x74] sm:$0xf0]  ;;  %v5121_v39 = vld [vmem:[%s6079_s21 + $0x6c] sm:$0xf]  ;;  %v3904_v41 = vor.u32 %v5122_v33, %v3903_v32  ;;  %v3908_v42 = vor.u32 %v5120_v34, %v3905_v36 }
 0x164   : > { %1115 = vmatpush.bf16.msra.mxu3 %v3948_v23  ;;  %v3913_v40 = vld [vmem:[%s6079_s21 + $0x78] sm:$0xf0]  ;;  %v3912_v43 = vor.u32 %v5123_v38, %v3911_v37  ;;  %v3887_v44 = vld [vmem:[%s6079_s21 + $0x40] sm:$0xf]  ;;  %v5118_v47 = vld [vmem:[%s6079_s21 + $0x4c] sm:$0xf0] }
 0x165   : > { %v5116_v48 = vld [vmem:[%s6079_s21 + $0x44] sm:$0xf]  ;;  %v3916_v49 = vor.u32 %v5121_v39, %v3913_v40  ;;  %v3889_v50 = vld [vmem:[%s6079_s21 + $0x50] sm:$0xf0]  ;;  %v3895_v45 = vld [vmem:[%s6079_s21 + $0x48] sm:$0xf]  ;;  %v3888_v53 = vor.u32 %v5118_v47, %v3887_v44 }
 0x166   : > { %1029 = vmatpush.bf16.msra.mxu0 %v3920_v29  ;;  %v5119_v46 = vld [vmem:[%s6079_s21 + $0x54] sm:$0xf0]  ;;  %v5117_v51 = vld [vmem:[%s6079_s21 + $0x4c] sm:$0xf]  ;;  %v3897_v52 = vld [vmem:[%s6079_s21 + $0x58] sm:$0xf0]  ;;  %v3892_v54 = vor.u32 %v5116_v48, %v3889_v50 }
 0x167   : > { %1058 = vmatpush.bf16.msra.mxu1 %v3924_v30  ;;  %1087 = vmatpush.bf16.msra.mxu2 %v3928_v31  ;;  %v3896_v55 = vor.u32 %v5119_v46, %v3895_v45  ;;  %v3871_v56 = vld [vmem:[%s6079_s21 + $0x20] sm:$0xf]  ;;  %v5114_v57 = vld [vmem:[%s6079_s21 + $0x2c] sm:$0xf0]  ;;  %v5112_v58 = vld [vmem:[%s6079_s21 + $0x24] sm:$0xf]  ;;  %v3900_v59 = vor.u32 %v5117_v51, %v3897_v52 }
 0x168   : > { %1116 = vmatpush.bf16.msra.mxu3 %v3932_v35  ;;  %v3873_v60 = vld [vmem:[%s6079_s21 + $0x30] sm:$0xf0]  ;;  %v3879_v61 = vld [vmem:[%s6079_s21 + $0x28] sm:$0xf]  ;;  %v5115_v62 = vld [vmem:[%s6079_s21 + $0x34] sm:$0xf0]  ;;  %v3872_v1 = vor.u32 %v5114_v57, %v3871_v56 }
 0x169   : > { %v5113_v63 = vld [vmem:[%s6079_s21 + $0x2c] sm:$0xf]  ;;  %v3881_v0 = vld [vmem:[%s6079_s21 + $0x38] sm:$0xf0]  ;;  %v3876_v2 = vor.u32 %v5112_v58, %v3873_v60  ;;  %v3880_v3 = vor.u32 %v5115_v62, %v3879_v61  ;;  %v3855_v4 = vld [vmem:[%s6079_s21] sm:$0xf] }
 0x16a   : > { %1030 = vmatpush.bf16.msra.mxu0 %v3904_v41  ;;  %v5110_v5 = vld [vmem:[%s6079_s21 + $0xc] sm:$0xf0]  ;;  %v5108_v6 = vld [vmem:[%s6079_s21 + $0x4] sm:$0xf]  ;;  %v3884_v7 = vor.u32 %v5113_v63, %v3881_v0  ;;  %v3857_v8 = vld [vmem:[%s6079_s21 + $0x10] sm:$0xf0] }
 0x16b   : > { %1059 = vmatpush.bf16.msra.mxu1 %v3908_v42  ;;  %1088 = vmatpush.bf16.msra.mxu2 %v3912_v43  ;;  %v3863_v9 = vld [vmem:[%s6079_s21 + $0x8] sm:$0xf]  ;;  %v5111_v10 = vld [vmem:[%s6079_s21 + $0x14] sm:$0xf0]  ;;  %v5109_v11 = vld [vmem:[%s6079_s21 + $0xc] sm:$0xf]  ;;  %v3856_v13 = vor.u32 %v5110_v5, %v3855_v4  ;;  %v3860_v16 = vor.u32 %v5108_v6, %v3857_v8 }
 0x16c   : > { %1117 = vmatpush.bf16.msra.mxu3 %v3916_v49  ;;  %v3865_v12 = vld [vmem:[%s6079_s21 + $0x18] sm:$0xf0]  ;;  %v812_v14 = vld [vmem:[#allocation2 + $0x30] sm:$0xff]  ;;  %v3864_v17 = vor.u32 %v5111_v10, %v3863_v9  ;;  %v814_v20 = vld [vmem:[#allocation2 + $0x18] sm:$0xff] }
 0x16d   : > { %v813_v15 = vld [vmem:[#allocation2] sm:$0xff]  ;;  %v3868_v18 = vor.u32 %v5109_v11, %v3865_v12  ;;  %v815_v21 = vld [vmem:[#allocation2 + $0x10] sm:$0xff]  ;;  %v816_v23 = vld [vmem:[#allocation2 + $0x8] sm:$0xff] }
 0x16e   : > { %1031 = vmatpush.bf16.msra.mxu0 %v3888_v53  ;;  %v820_v19 = vpack.c.bf16 %v813_v15, %v812_v14  ;;  %v821_v22 = vpack.c.bf16 %v815_v21, %v814_v20  ;;  %v817_v24 = vld [vmem:[#allocation2 + $0x20] sm:$0xff]  ;;  %v818_v26 = vld [vmem:[#allocation2 + $0x28] sm:$0xff]  ;;  %v819_v27 = vld [vmem:[#allocation2 + $0x38] sm:$0xff] }
 0x16f   : > { %1060 = vmatpush.bf16.msra.mxu1 %v3892_v54  ;;  %1089 = vmatpush.bf16.msra.mxu2 %v3896_v55  ;;  %v822_v25 = vpack.c.bf16 %v817_v24, %v816_v23  ;;  %v823_v28 = vpack.c.bf16 %v819_v27, %v818_v26  ;;  %v856_v29 = vld [vmem:[%s393_s1] sm:$0xf] }
 0x170   : > { %1118 = vmatpush.bf16.msra.mxu3 %v3900_v59  ;;  %v6278_v30 = vperm.slane %v856_v29, 0  ;;  %v6280_v31 = vperm.slane %v856_v29, 1  ;;  %v6284_v36 = vperm.slane %v856_v29, 2  ;;  %v6286_v37 = vperm.slane %v856_v29, 3 }
 0x172   : > { %1032 = vmatpush.bf16.msra.mxu0 %v3872_v1 }
 0x173   : > { %1061 = vmatpush.bf16.msra.mxu1 %v3876_v2  ;;  %1090 = vmatpush.bf16.msra.mxu2 %v3880_v3 }
 0x174   : > { %1119 = vmatpush.bf16.msra.mxu3 %v3884_v7 }
 0x176   : > { %1033 = vmatpush.bf16.msra.mxu0 %v3856_v13 }
 0x177   : > { %1062 = vmatpush.bf16.msra.mxu1 %v3860_v16  ;;  %1091 = vmatpush.bf16.msra.mxu2 %v3864_v17 }
 0x178   : > { %1120 = vmatpush.bf16.msra.mxu3 %v3868_v18 }
 0x179   : > { %1034 = vmatmul.bf16.vlgmr.msra.gmra.mxu0 %v820_v19 }
 0x17a   : > { %1063 = vmatmul.bf16.vlgmr.msra.gmra.mxu1 %v820_v19  ;;  %1092 = vmatmul.bf16.vlgmr.msra.gmra.mxu2 %v820_v19 }
 0x17b   : > { %1121 = vmatmul.bf16.vlgmr.msra.gmra.mxu3 %v820_v19 }
 0x189   : > { %1039 = vmatmul.bf16.gmra.mxu0 %v821_v22 }
 0x18a   : > { %1068 = vmatmul.bf16.gmra.mxu1 %v821_v22  ;;  %1097 = vmatmul.bf16.gmra.mxu2 %v821_v22 }
 0x18b   : > { %1126 = vmatmul.bf16.gmra.mxu3 %v821_v22 }
 0x199   : > { %1044 = vmatmul.bf16.gmra.mxu0 %v822_v25 }
 0x19a   : > { %1073 = vmatmul.bf16.gmra.mxu1 %v822_v25  ;;  %1102 = vmatmul.bf16.gmra.mxu2 %v822_v25 }
 0x19b   : > { %1131 = vmatmul.bf16.gmra.mxu3 %v822_v25 }
 0x1a9   : > { %1049 = vmatmul.bf16.gmra.mxu0 %v823_v28 }
 0x1aa   : > { %1078 = vmatmul.bf16.gmra.mxu1 %v823_v28  ;;  %1107 = vmatmul.bf16.gmra.mxu2 %v823_v28 }
 0x1ab   : > { %1136 = vmatmul.bf16.gmra.mxu3 %v823_v28 }
 0x1f6   : > { %v1035_v32 = vpop.f32.mrf.mxu0 }
 0x1f7   : > { %v1036_v33 = vadd.f32 %v1035_v32, %v6278_v30  ;;  %v1064_v34 = vpop.f32.mrf.mxu1 }
 0x1f8   : > { %v1065_v35 = vadd.f32 %v1064_v34, %v6280_v31 }
 0x1f9   : > { %1142 = vst [vmem:[#allocation3] sm:$0xff] %v1036_v33 }
 0x1fa   : > { %1143 = vst [vmem:[#allocation3 + $0x18] sm:$0xff] %v1065_v35 }
 0x1fd   : > { %v1093_v38 = vpop.f32.mrf.mxu2 }
 0x1fe   : > { %v1094_v39 = vadd.f32 %v1093_v38, %v6284_v36  ;;  %v1122_v40 = vpop.f32.mrf.mxu3  ;;  %v1037_v41 = vpop.f32.mrf.mxu0 }
 0x1ff   : > { %v1123_v42 = vadd.f32 %v1122_v40, %v6286_v37  ;;  %v1038_v43 = vadd.f32 %v1037_v41, %v6278_v30  ;;  %v1066_v44 = vpop.f32.mrf.mxu1 }
 0x200   : > { %1144 = vst [vmem:[#allocation3 + $0x50] sm:$0xff] %v1094_v39  ;;  %v1067_v47 = vadd.f32 %v1066_v44, %v6280_v31 }
 0x201   : > { %1145 = vst [vmem:[#allocation3 + $0xe0] sm:$0xff] %v1123_v42 }
 0x202   : > { %1146 = vst [vmem:[#allocation3 + $0xe8] sm:$0xff] %v1038_v43 }
 0x203   : > { %1147 = vst [vmem:[#allocation3 + $0x68] sm:$0xff] %v1067_v47 }
 0x205   : > { %v1095_v48 = vpop.f32.mrf.mxu2 }
 0x206   : > { %v1096_v49 = vadd.f32 %v1095_v48, %v6284_v36  ;;  %v1124_v50 = vpop.f32.mrf.mxu3  ;;  %v1040_v45 = vpop.f32.mrf.mxu0 }
 0x207   : > { %v1125_v46 = vadd.f32 %v1124_v50, %v6286_v37  ;;  %v1041_v51 = vadd.f32 %v1040_v45, %v6278_v30  ;;  %v1069_v52 = vpop.f32.mrf.mxu1 }
 0x208   : > { %1148 = vst [vmem:[#allocation3 + $0xf0] sm:$0xff] %v1096_v49  ;;  %v1070_v53 = vadd.f32 %v1069_v52, %v6280_v31 }
 0x209   : > { %1149 = vst [vmem:[#allocation3 + $0xd0] sm:$0xff] %v1125_v46 }
 0x20a   : > { %1150 = vst [vmem:[#allocation3 + $0x20] sm:$0xff] %v1041_v51 }
 0x20b   : > { %1151 = vst [vmem:[#allocation3 + $0xa8] sm:$0xff] %v1070_v53 }
 0x20d   : > { %v1098_v54 = vpop.f32.mrf.mxu2 }
 0x20e   : > { %v1099_v55 = vadd.f32 %v1098_v54, %v6284_v36  ;;  %v1127_v56 = vpop.f32.mrf.mxu3  ;;  %v1042_v57 = vpop.f32.mrf.mxu0 }
 0x20f   : > { %v1128_v58 = vadd.f32 %v1127_v56, %v6286_v37  ;;  %v1043_v59 = vadd.f32 %v1042_v57, %v6278_v30  ;;  %v1071_v60 = vpop.f32.mrf.mxu1 }
 0x210   : > { %1152 = vst [vmem:[#allocation3 + $0x10] sm:$0xff] %v1099_v55  ;;  %v1072_v61 = vadd.f32 %v1071_v60, %v6280_v31 }
 0x211   : > { %1153 = vst [vmem:[#allocation3 + $0x8] sm:$0xff] %v1128_v58 }
 0x212   : > { %1154 = vst [vmem:[#allocation3 + $0xa0] sm:$0xff] %v1043_v59 }
 0x213   : > { %1155 = vst [vmem:[#allocation3 + $0x28] sm:$0xff] %v1072_v61 }
 0x215   : > { %v1100_v62 = vpop.f32.mrf.mxu2 }
 0x216   : > { %v1101_v63 = vadd.f32 %v1100_v62, %v6284_v36  ;;  %v1129_v0 = vpop.f32.mrf.mxu3  ;;  %v1045_v1 = vpop.f32.mrf.mxu0 }
 0x217   : > { %v1130_v2 = vadd.f32 %v1129_v0, %v6286_v37  ;;  %v1046_v3 = vadd.f32 %v1045_v1, %v6278_v30  ;;  %v1074_v4 = vpop.f32.mrf.mxu1 }
 0x218   : > { %1156 = vst [vmem:[#allocation3 + $0x78] sm:$0xff] %v1101_v63  ;;  %v1075_v5 = vadd.f32 %v1074_v4, %v6280_v31 }
 0x219   : > { %1157 = vst [vmem:[#allocation3 + $0x60] sm:$0xff] %v1130_v2 }
 0x21a   : > { %1158 = vst [vmem:[#allocation3 + $0xb0] sm:$0xff] %v1046_v3 }
 0x21b   : > { %1159 = vst [vmem:[#allocation3 + $0xc8] sm:$0xff] %v1075_v5 }
 0x21d   : > { %v1103_v6 = vpop.f32.mrf.mxu2 }
 0x21e   : > { %v1104_v7 = vadd.f32 %v1103_v6, %v6284_v36  ;;  %v1132_v8 = vpop.f32.mrf.mxu3  ;;  %v1047_v9 = vpop.f32.mrf.mxu0 }
 0x21f   : > { %v1133_v10 = vadd.f32 %v1132_v8, %v6286_v37  ;;  %v1048_v11 = vadd.f32 %v1047_v9, %v6278_v30  ;;  %v1076_v12 = vpop.f32.mrf.mxu1 }
 0x220   : > { %1160 = vst [vmem:[#allocation3 + $0x70] sm:$0xff] %v1104_v7  ;;  %v1077_v13 = vadd.f32 %v1076_v12, %v6280_v31 }
 0x221   : > { %1161 = vst [vmem:[#allocation3 + $0x30] sm:$0xff] %v1133_v10 }
 0x222   : > { %1162 = vst [vmem:[#allocation3 + $0x90] sm:$0xff] %v1048_v11 }
 0x223   : > { %1163 = vst [vmem:[#allocation3 + $0xf8] sm:$0xff] %v1077_v13 }
 0x225   : > { %v1105_v14 = vpop.f32.mrf.mxu2 }
 0x226   : > { %v1106_v15 = vadd.f32 %v1105_v14, %v6284_v36  ;;  %v1134_v16 = vpop.f32.mrf.mxu3  ;;  %v1050_v17 = vpop.f32.mrf.mxu0 }
 0x227   : > { %v1135_v18 = vadd.f32 %v1134_v16, %v6286_v37  ;;  %v1051_v19 = vadd.f32 %v1050_v17, %v6278_v30  ;;  %v1079_v20 = vpop.f32.mrf.mxu1 }
 0x228   : > { %1164 = vst [vmem:[#allocation3 + $0xb8] sm:$0xff] %v1106_v15  ;;  %v1080_v21 = vadd.f32 %v1079_v20, %v6280_v31 }
 0x229   : > { %1165 = vst [vmem:[#allocation3 + $0x80] sm:$0xff] %v1135_v18 }
 0x22a   : > { %1166 = vst [vmem:[#allocation3 + $0x48] sm:$0xff] %v1051_v19 }
 0x22b   : > { %1167 = vst [vmem:[#allocation3 + $0x38] sm:$0xff] %v1080_v21 }
 0x22d   : > { %v1108_v22 = vpop.f32.mrf.mxu2 }
 0x22e   : > { %v1109_v23 = vadd.f32 %v1108_v22, %v6284_v36  ;;  %v1137_v24 = vpop.f32.mrf.mxu3  ;;  %v1052_v25 = vpop.f32.mrf.mxu0 }
 0x22f   : > { %v1138_v26 = vadd.f32 %v1137_v24, %v6286_v37  ;;  %v1053_v27 = vadd.f32 %v1052_v25, %v6278_v30  ;;  %v1081_v28 = vpop.f32.mrf.mxu1 }
 0x230   : > { %1168 = vst [vmem:[#allocation3 + $0xd8] sm:$0xff] %v1109_v23  ;;  %v1082_v29 = vadd.f32 %v1081_v28, %v6280_v31 }
 0x231   : > { %1169 = vst [vmem:[#allocation3 + $0x98] sm:$0xff] %v1138_v26 }
 0x232   : > { %1170 = vst [vmem:[#allocation3 + $0x58] sm:$0xff] %v1053_v27 }
 0x233   : > { %1171 = vst [vmem:[#allocation3 + $0xc0] sm:$0xff] %v1082_v29 }
 0x235   : > { %v1110_v32 = vpop.f32.mrf.mxu2 }
 0x236   : > { %v1111_v33 = vadd.f32 %v1110_v32, %v6284_v36  ;;  %v1139_v34 = vpop.f32.mrf.mxu3 }
 0x237   : > { %v1140_v35 = vadd.f32 %v1139_v34, %v6286_v37 }
 0x238   : > { %1172 = vst [vmem:[#allocation3 + $0x40] sm:$0xff] %v1111_v33 }
 0x239   : > { %1173 = vst [vmem:[#allocation3 + $0x88] sm:$0xff] %v1140_v35 }
 0x23a PF: > { %v4095_v30 = vld [vmem:[%s6087_s22 + $0xe0] sm:$0xf]  ;;  %v5170_v31 = vld [vmem:[%s6087_s22 + $0xec] sm:$0xf0]  ;;  %v5168_v36 = vld [vmem:[%s6087_s22 + $0xe4] sm:$0xf] }
 0x23b   : > { %v4096_v38 = vor.u32 %v5170_v31, %v4095_v30  ;;  %v4097_v37 = vld [vmem:[%s6087_s22 + $0xf0] sm:$0xf0]  ;;  %v4103_v39 = vld [vmem:[%s6087_s22 + $0xe8] sm:$0xf]  ;;  %v5171_v40 = vld [vmem:[%s6087_s22 + $0xf4] sm:$0xf0] }
 0x23c   : > { %v4100_v41 = vor.u32 %v5168_v36, %v4097_v37  ;;  %v4104_v42 = vor.u32 %v5171_v40, %v4103_v39  ;;  %v5169_v43 = vld [vmem:[%s6087_s22 + $0xec] sm:$0xf]  ;;  %v4105_v44 = vld [vmem:[%s6087_s22 + $0xf8] sm:$0xf0]  ;;  %v4079_v47 = vld [vmem:[%s6087_s22 + $0xc0] sm:$0xf] }
 0x23d   : > { %1374 = vmatpush.bf16.msra.mxu0 %v4096_v38  ;;  %v4108_v48 = vor.u32 %v5169_v43, %v4105_v44  ;;  %v5166_v49 = vld [vmem:[%s6087_s22 + $0xcc] sm:$0xf0]  ;;  %v5164_v50 = vld [vmem:[%s6087_s22 + $0xc4] sm:$0xf]  ;;  %v4081_v45 = vld [vmem:[%s6087_s22 + $0xd0] sm:$0xf0] }
 0x23e   : > { %1387 = vmatpush.bf16.msra.mxu1 %v4100_v41  ;;  %1400 = vmatpush.bf16.msra.mxu2 %v4104_v42  ;;  %v4080_v46 = vor.u32 %v5166_v49, %v4079_v47  ;;  %v4084_v51 = vor.u32 %v5164_v50, %v4081_v45  ;;  %v4087_v52 = vld [vmem:[%s6087_s22 + $0xc8] sm:$0xf]  ;;  %v5167_v53 = vld [vmem:[%s6087_s22 + $0xd4] sm:$0xf0]  ;;  %v5165_v54 = vld [vmem:[%s6087_s22 + $0xcc] sm:$0xf] }
 0x23f   : > { %1413 = vmatpush.bf16.msra.mxu3 %v4108_v48  ;;  %v4088_v55 = vor.u32 %v5167_v53, %v4087_v52  ;;  %v4089_v56 = vld [vmem:[%s6087_s22 + $0xd8] sm:$0xf0]  ;;  %v4063_v57 = vld [vmem:[%s6087_s22 + $0xa0] sm:$0xf]  ;;  %v5162_v58 = vld [vmem:[%s6087_s22 + $0xac] sm:$0xf0] }
 0x240   : > { %v4092_v59 = vor.u32 %v5165_v54, %v4089_v56  ;;  %v5160_v60 = vld [vmem:[%s6087_s22 + $0xa4] sm:$0xf]  ;;  %v4065_v61 = vld [vmem:[%s6087_s22 + $0xb0] sm:$0xf0]  ;;  %v4071_v62 = vld [vmem:[%s6087_s22 + $0xa8] sm:$0xf]  ;;  %v4064_v63 = vor.u32 %v5162_v58, %v4063_v57 }
 0x241   : > { %1375 = vmatpush.bf16.msra.mxu0 %v4080_v46  ;;  %v5163_v0 = vld [vmem:[%s6087_s22 + $0xb4] sm:$0xf0]  ;;  %v5161_v1 = vld [vmem:[%s6087_s22 + $0xac] sm:$0xf]  ;;  %v4073_v2 = vld [vmem:[%s6087_s22 + $0xb8] sm:$0xf0]  ;;  %v4068_v3 = vor.u32 %v5160_v60, %v4065_v61 }
 0x242   : > { %1388 = vmatpush.bf16.msra.mxu1 %v4084_v51  ;;  %1401 = vmatpush.bf16.msra.mxu2 %v4088_v55  ;;  %v4072_v4 = vor.u32 %v5163_v0, %v4071_v62  ;;  %v4047_v5 = vld [vmem:[%s6087_s22 + $0x80] sm:$0xf]  ;;  %v5158_v6 = vld [vmem:[%s6087_s22 + $0x8c] sm:$0xf0]  ;;  %v5156_v7 = vld [vmem:[%s6087_s22 + $0x84] sm:$0xf]  ;;  %v4076_v8 = vor.u32 %v5161_v1, %v4073_v2 }
 0x243   : > { %1414 = vmatpush.bf16.msra.mxu3 %v4092_v59  ;;  %v4049_v9 = vld [vmem:[%s6087_s22 + $0x90] sm:$0xf0]  ;;  %v4055_v10 = vld [vmem:[%s6087_s22 + $0x88] sm:$0xf]  ;;  %v5159_v11 = vld [vmem:[%s6087_s22 + $0x94] sm:$0xf0]  ;;  %v4048_v14 = vor.u32 %v5158_v6, %v4047_v5 }
 0x244   : > { %v5157_v12 = vld [vmem:[%s6087_s22 + $0x8c] sm:$0xf]  ;;  %v4057_v13 = vld [vmem:[%s6087_s22 + $0x98] sm:$0xf0]  ;;  %v4052_v15 = vor.u32 %v5156_v7, %v4049_v9  ;;  %v4056_v16 = vor.u32 %v5159_v11, %v4055_v10  ;;  %v4031_v17 = vld [vmem:[%s6087_s22 + $0x60] sm:$0xf] }
 0x245   : > { %1376 = vmatpush.bf16.msra.mxu0 %v4064_v63  ;;  %v5154_v18 = vld [vmem:[%s6087_s22 + $0x6c] sm:$0xf0]  ;;  %v5152_v19 = vld [vmem:[%s6087_s22 + $0x64] sm:$0xf]  ;;  %v4060_v20 = vor.u32 %v5157_v12, %v4057_v13  ;;  %v4033_v21 = vld [vmem:[%s6087_s22 + $0x70] sm:$0xf0] }
 0x246   : > { %1389 = vmatpush.bf16.msra.mxu1 %v4068_v3  ;;  %1402 = vmatpush.bf16.msra.mxu2 %v4072_v4  ;;  %v4039_v22 = vld [vmem:[%s6087_s22 + $0x68] sm:$0xf]  ;;  %v5155_v23 = vld [vmem:[%s6087_s22 + $0x74] sm:$0xf0]  ;;  %v5153_v24 = vld [vmem:[%s6087_s22 + $0x6c] sm:$0xf]  ;;  %v4032_v26 = vor.u32 %v5154_v18, %v4031_v17  ;;  %v4036_v27 = vor.u32 %v5152_v19, %v4033_v21 }
 0x247   : > { %1415 = vmatpush.bf16.msra.mxu3 %v4076_v8  ;;  %v4041_v25 = vld [vmem:[%s6087_s22 + $0x78] sm:$0xf0]  ;;  %v4040_v28 = vor.u32 %v5155_v23, %v4039_v22  ;;  %v4015_v29 = vld [vmem:[%s6087_s22 + $0x40] sm:$0xf]  ;;  %v5150_v32 = vld [vmem:[%s6087_s22 + $0x4c] sm:$0xf0] }
 0x248   : > { %v5148_v33 = vld [vmem:[%s6087_s22 + $0x44] sm:$0xf]  ;;  %v4044_v34 = vor.u32 %v5153_v24, %v4041_v25  ;;  %v4017_v35 = vld [vmem:[%s6087_s22 + $0x50] sm:$0xf0]  ;;  %v4023_v30 = vld [vmem:[%s6087_s22 + $0x48] sm:$0xf]  ;;  %v4016_v37 = vor.u32 %v5150_v32, %v4015_v29 }
 0x249   : > { %1377 = vmatpush.bf16.msra.mxu0 %v4048_v14  ;;  %v5151_v31 = vld [vmem:[%s6087_s22 + $0x54] sm:$0xf0]  ;;  %v5149_v36 = vld [vmem:[%s6087_s22 + $0x4c] sm:$0xf]  ;;  %v4025_v38 = vld [vmem:[%s6087_s22 + $0x58] sm:$0xf0]  ;;  %v4020_v39 = vor.u32 %v5148_v33, %v4017_v35 }
 0x24a   : > { %1390 = vmatpush.bf16.msra.mxu1 %v4052_v15  ;;  %1403 = vmatpush.bf16.msra.mxu2 %v4056_v16  ;;  %v4024_v40 = vor.u32 %v5151_v31, %v4023_v30  ;;  %v3999_v41 = vld [vmem:[%s6087_s22 + $0x20] sm:$0xf]  ;;  %v5146_v42 = vld [vmem:[%s6087_s22 + $0x2c] sm:$0xf0]  ;;  %v5144_v43 = vld [vmem:[%s6087_s22 + $0x24] sm:$0xf]  ;;  %v4028_v44 = vor.u32 %v5149_v36, %v4025_v38 }
 0x24b   : > { %1416 = vmatpush.bf16.msra.mxu3 %v4060_v20  ;;  %v4001_v47 = vld [vmem:[%s6087_s22 + $0x30] sm:$0xf0]  ;;  %v4007_v48 = vld [vmem:[%s6087_s22 + $0x28] sm:$0xf]  ;;  %v5147_v49 = vld [vmem:[%s6087_s22 + $0x34] sm:$0xf0]  ;;  %v4000_v46 = vor.u32 %v5146_v42, %v3999_v41 }
 0x24c   : > { %v5145_v50 = vld [vmem:[%s6087_s22 + $0x2c] sm:$0xf]  ;;  %v4009_v45 = vld [vmem:[%s6087_s22 + $0x38] sm:$0xf0]  ;;  %v4004_v51 = vor.u32 %v5144_v43, %v4001_v47  ;;  %v4008_v52 = vor.u32 %v5147_v49, %v4007_v48  ;;  %v3983_v53 = vld [vmem:[%s6087_s22] sm:$0xf] }
 0x24d   : > { %1378 = vmatpush.bf16.msra.mxu0 %v4032_v26  ;;  %v5142_v54 = vld [vmem:[%s6087_s22 + $0xc] sm:$0xf0]  ;;  %v5140_v55 = vld [vmem:[%s6087_s22 + $0x4] sm:$0xf]  ;;  %v4012_v56 = vor.u32 %v5145_v50, %v4009_v45  ;;  %v3985_v57 = vld [vmem:[%s6087_s22 + $0x10] sm:$0xf0] }
 0x24e   : > { %1391 = vmatpush.bf16.msra.mxu1 %v4036_v27  ;;  %1404 = vmatpush.bf16.msra.mxu2 %v4040_v28  ;;  %v3991_v58 = vld [vmem:[%s6087_s22 + $0x8] sm:$0xf]  ;;  %v5143_v59 = vld [vmem:[%s6087_s22 + $0x14] sm:$0xf0]  ;;  %v5141_v60 = vld [vmem:[%s6087_s22 + $0xc] sm:$0xf]  ;;  %v3984_v62 = vor.u32 %v5142_v54, %v3983_v53  ;;  %v3988_v63 = vor.u32 %v5140_v55, %v3985_v57 }
 0x24f   : > { %1417 = vmatpush.bf16.msra.mxu3 %v4044_v34  ;;  %v3993_v61 = vld [vmem:[%s6087_s22 + $0x18] sm:$0xf0]  ;;  %v3992_v0 = vor.u32 %v5143_v59, %v3991_v58  ;;  %v5861_v2 = vmov 0.0|0.0   ;;  %v4223_v3 = vld [vmem:[%s6087_s22 + $0xe0] sm:$0xf]  ;;  %p5005_p1 = scmp.ne.s32.totalorder %s5927_s9, 1 }
 0x250   : > { %v3996_v1 = vor.u32 %v5141_v60, %v3993_v61  ;;  %v5202_v4 = vld [vmem:[%s6087_s22 + $0xec] sm:$0xf0]  ;;  %v5200_v5 = vld [vmem:[%s6087_s22 + $0xe4] sm:$0xf]  ;;  %v4225_v7 = vld [vmem:[%s6087_s22 + $0xf0] sm:$0xf0] }
 0x251   : > { %1379 = vmatpush.bf16.msra.mxu0 %v4016_v37  ;;  %v4224_v6 = vor.u32 %v5202_v4, %v4223_v3  ;;  %v4231_v8 = vld [vmem:[%s6087_s22 + $0xe8] sm:$0xf]  ;;  %v5203_v9 = vld [vmem:[%s6087_s22 + $0xf4] sm:$0xf0]  ;;  %v4228_v10 = vor.u32 %v5200_v5, %v4225_v7  ;;  %v5201_v12 = vld [vmem:[%s6087_s22 + $0xec] sm:$0xf] }
 0x252   : > { %1392 = vmatpush.bf16.msra.mxu1 %v4020_v39  ;;  %1405 = vmatpush.bf16.msra.mxu2 %v4024_v40  ;;  %v4232_v11 = vor.u32 %v5203_v9, %v4231_v8  ;;  %v4233_v13 = vld [vmem:[%s6087_s22 + $0xf8] sm:$0xf0]  ;;  %v4207_v15 = vld [vmem:[%s6087_s22 + $0xc0] sm:$0xf]  ;;  %v5198_v16 = vld [vmem:[%s6087_s22 + $0xcc] sm:$0xf0] }
 0x253   : > { %1418 = vmatpush.bf16.msra.mxu3 %v4028_v44  ;;  %v4236_v14 = vor.u32 %v5201_v12, %v4233_v13  ;;  %v5196_v17 = vld [vmem:[%s6087_s22 + $0xc4] sm:$0xf]  ;;  %v4208_v18 = vor.u32 %v5198_v16, %v4207_v15  ;;  %v4209_v19 = vld [vmem:[%s6087_s22 + $0xd0] sm:$0xf0]  ;;  %v4215_v20 = vld [vmem:[%s6087_s22 + $0xc8] sm:$0xf] }
 0x254   : > { %v5199_v21 = vld [vmem:[%s6087_s22 + $0xd4] sm:$0xf0]  ;;  %v4212_v22 = vor.u32 %v5196_v17, %v4209_v19  ;;  %v5197_v24 = vld [vmem:[%s6087_s22 + $0xcc] sm:$0xf]  ;;  %v4217_v25 = vld [vmem:[%s6087_s22 + $0xd8] sm:$0xf0] }
 0x255   : > { %1380 = vmatpush.bf16.msra.mxu0 %v4000_v46  ;;  %v4216_v23 = vor.u32 %v5199_v21, %v4215_v20  ;;  %v4220_v26 = vor.u32 %v5197_v24, %v4217_v25  ;;  %v4191_v27 = vld [vmem:[%s6087_s22 + $0xa0] sm:$0xf]  ;;  %v5194_v28 = vld [vmem:[%s6087_s22 + $0xac] sm:$0xf0]  ;;  %v5192_v29 = vld [vmem:[%s6087_s22 + $0xa4] sm:$0xf] }
 0x256   : > { %1393 = vmatpush.bf16.msra.mxu1 %v4004_v51  ;;  %1406 = vmatpush.bf16.msra.mxu2 %v4008_v52  ;;  %v4192_v32 = vor.u32 %v5194_v28, %v4191_v27  ;;  %v4193_v33 = vld [vmem:[%s6087_s22 + $0xb0] sm:$0xf0]  ;;  %v4199_v34 = vld [vmem:[%s6087_s22 + $0xa8] sm:$0xf]  ;;  %v5195_v30 = vld [vmem:[%s6087_s22 + $0xb4] sm:$0xf0] }
 0x257   : > { %1419 = vmatpush.bf16.msra.mxu3 %v4012_v56  ;;  %v4196_v35 = vor.u32 %v5192_v29, %v4193_v33  ;;  %v5193_v31 = vld [vmem:[%s6087_s22 + $0xac] sm:$0xf]  ;;  %v4201_v36 = vld [vmem:[%s6087_s22 + $0xb8] sm:$0xf0]  ;;  %v4200_v38 = vor.u32 %v5195_v30, %v4199_v34  ;;  %v4175_v39 = vld [vmem:[%s6087_s22 + $0x80] sm:$0xf] }
 0x258   : > { %v4204_v37 = vor.u32 %v5193_v31, %v4201_v36  ;;  %v5190_v40 = vld [vmem:[%s6087_s22 + $0x8c] sm:$0xf0]  ;;  %v5188_v41 = vld [vmem:[%s6087_s22 + $0x84] sm:$0xf]  ;;  %v4177_v43 = vld [vmem:[%s6087_s22 + $0x90] sm:$0xf0] }
 0x259   : > { %1381 = vmatpush.bf16.msra.mxu0 %v3984_v62  ;;  %v4176_v42 = vor.u32 %v5190_v40, %v4175_v39  ;;  %v4183_v44 = vld [vmem:[%s6087_s22 + $0x88] sm:$0xf]  ;;  %v5191_v47 = vld [vmem:[%s6087_s22 + $0x94] sm:$0xf0]  ;;  %v4180_v48 = vor.u32 %v5188_v41, %v4177_v43  ;;  %v5189_v50 = vld [vmem:[%s6087_s22 + $0x8c] sm:$0xf] }
 0x25a   : > { %1394 = vmatpush.bf16.msra.mxu1 %v3988_v63  ;;  %1407 = vmatpush.bf16.msra.mxu2 %v3992_v0  ;;  %v4184_v49 = vor.u32 %v5191_v47, %v4183_v44  ;;  %v4185_v45 = vld [vmem:[%s6087_s22 + $0x98] sm:$0xf0]  ;;  %v4159_v51 = vld [vmem:[%s6087_s22 + $0x60] sm:$0xf]  ;;  %v5186_v52 = vld [vmem:[%s6087_s22 + $0x6c] sm:$0xf0] }
 0x25b   : > { %1420 = vmatpush.bf16.msra.mxu3 %v3996_v1  ;;  %v4188_v46 = vor.u32 %v5189_v50, %v4185_v45  ;;  %v5184_v53 = vld [vmem:[%s6087_s22 + $0x64] sm:$0xf]  ;;  %v4160_v54 = vor.u32 %v5186_v52, %v4159_v51  ;;  %v4161_v55 = vld [vmem:[%s6087_s22 + $0x70] sm:$0xf0]  ;;  %v4167_v56 = vld [vmem:[%s6087_s22 + $0x68] sm:$0xf] }
 0x25c   : > { %1382 = vmatmul.bf16.vlgmr.msra.gmra.mxu0 %v5861_v2  ;;  %v5187_v57 = vld [vmem:[%s6087_s22 + $0x74] sm:$0xf0]  ;;  %v4164_v58 = vor.u32 %v5184_v53, %v4161_v55  ;;  %v5185_v60 = vld [vmem:[%s6087_s22 + $0x6c] sm:$0xf]  ;;  %v4169_v61 = vld [vmem:[%s6087_s22 + $0x78] sm:$0xf0] }
 0x25d   : > { %1395 = vmatmul.bf16.vlgmr.msra.gmra.mxu1 %v5861_v2  ;;  %1408 = vmatmul.bf16.vlgmr.msra.gmra.mxu2 %v5861_v2  ;;  %v4168_v59 = vor.u32 %v5187_v57, %v4167_v56  ;;  %v4172_v62 = vor.u32 %v5185_v60, %v4169_v61  ;;  %v4143_v63 = vld [vmem:[%s6087_s22 + $0x40] sm:$0xf]  ;;  %v5182_v0 = vld [vmem:[%s6087_s22 + $0x4c] sm:$0xf0]  ;;  %v5180_v1 = vld [vmem:[%s6087_s22 + $0x44] sm:$0xf] }
 0x25e   : > { %1421 = vmatmul.bf16.vlgmr.msra.gmra.mxu3 %v5861_v2  ;;  %1651 = vmatpush.bf16.msrb.mxu0 %v4224_v6  ;;  %v4144_v2 = vor.u32 %v5182_v0, %v4143_v63  ;;  %v4145_v3 = vld [vmem:[%s6087_s22 + $0x50] sm:$0xf0]  ;;  %v4151_v4 = vld [vmem:[%s6087_s22 + $0x48] sm:$0xf]  ;;  %v5183_v5 = vld [vmem:[%s6087_s22 + $0x54] sm:$0xf0] }
 0x25f   : > { %1664 = vmatpush.bf16.msrb.mxu1 %v4228_v10  ;;  %1677 = vmatpush.bf16.msrb.mxu2 %v4232_v11  ;;  %v4148_v6 = vor.u32 %v5180_v1, %v4145_v3  ;;  %v4152_v7 = vor.u32 %v5183_v5, %v4151_v4  ;;  %v5181_v8 = vld [vmem:[%s6087_s22 + $0x4c] sm:$0xf]  ;;  %v4153_v9 = vld [vmem:[%s6087_s22 + $0x58] sm:$0xf0]  ;;  %v4127_v11 = vld [vmem:[%s6087_s22 + $0x20] sm:$0xf] }
 0x260   : > { %1690 = vmatpush.bf16.msrb.mxu3 %v4236_v14  ;;  %v4156_v10 = vor.u32 %v5181_v8, %v4153_v9  ;;  %v5178_v12 = vld [vmem:[%s6087_s22 + $0x2c] sm:$0xf0]  ;;  %v5176_v13 = vld [vmem:[%s6087_s22 + $0x24] sm:$0xf]  ;;  %v4129_v15 = vld [vmem:[%s6087_s22 + $0x30] sm:$0xf0] }
 0x261   : > { %v4128_v14 = vor.u32 %v5178_v12, %v4127_v11  ;;  %v4135_v16 = vld [vmem:[%s6087_s22 + $0x28] sm:$0xf]  ;;  %v5179_v17 = vld [vmem:[%s6087_s22 + $0x34] sm:$0xf0]  ;;  %v5177_v20 = vld [vmem:[%s6087_s22 + $0x2c] sm:$0xf] }
 0x262   : > { %1652 = vmatpush.bf16.msrb.mxu0 %v4208_v18  ;;  %v4132_v18 = vor.u32 %v5176_v13, %v4129_v15  ;;  %v4136_v19 = vor.u32 %v5179_v17, %v4135_v16  ;;  %v4137_v21 = vld [vmem:[%s6087_s22 + $0x38] sm:$0xf0]  ;;  %v5174_v24 = vld [vmem:[%s6087_s22 + $0xc] sm:$0xf0]  ;;  %v5172_v25 = vld [vmem:[%s6087_s22 + $0x4] sm:$0xf] }
 0x263   : > { %1665 = vmatpush.bf16.msrb.mxu1 %v4212_v22  ;;  %1678 = vmatpush.bf16.msrb.mxu2 %v4216_v23  ;;  %v4140_v22 = vor.u32 %v5177_v20, %v4137_v21  ;;  %v4111_v23 = vld [vmem:[%s6087_s22] sm:$0xf]  ;;  %v4113_v27 = vld [vmem:[%s6087_s22 + $0x10] sm:$0xf0]  ;;  %v4119_v28 = vld [vmem:[%s6087_s22 + $0x8] sm:$0xf] }
 0x264   : > { %1691 = vmatpush.bf16.msrb.mxu3 %v4220_v26  ;;  %v4112_v26 = vor.u32 %v5174_v24, %v4111_v23  ;;  %v5175_v29 = vld [vmem:[%s6087_s22 + $0x14] sm:$0xf0]  ;;  %v5173_v34 = vld [vmem:[%s6087_s22 + $0xc] sm:$0xf]  ;;  %v1177_v36 = vld [vmem:[#allocation3 + $0x18] sm:$0xff] }
 0x265   : > { %v4120_v33 = vor.u32 %v5175_v29, %v4119_v28  ;;  %v1176_v30 = vld [vmem:[#allocation3] sm:$0xff]  ;;  %v1178_v43 = vld [vmem:[#allocation3 + $0x50] sm:$0xff]  ;;  %v5232_v8 = vld [vmem:[%s6087_s22 + $0xe4] sm:$0xf] }
 0x266   : > { %1653 = vmatpush.bf16.msrb.mxu0 %v4192_v32  ;;  %v4116_v32 = vor.u32 %v5172_v25, %v4113_v27  ;;  %v1179_v44 = vld [vmem:[#allocation3 + $0xe0] sm:$0xff]  ;;  %v4359_v11 = vld [vmem:[%s6087_s22 + $0xe8] sm:$0xf]  ;;  %v5233_v15 = vld [vmem:[%s6087_s22 + $0xec] sm:$0xf] }
 0x267   : > { %1666 = vmatpush.bf16.msrb.mxu1 %v4196_v35  ;;  %1679 = vmatpush.bf16.msrb.mxu2 %v4200_v38  ;;  %v4121_v35 = vld [vmem:[%s6087_s22 + $0x18] sm:$0xf0]  ;;  %v5235_v12 = vld [vmem:[%s6087_s22 + $0xf4] sm:$0xf0]  ;;  %v5228_v20 = vld [vmem:[%s6087_s22 + $0xc4] sm:$0xf] }
 0x268   : > { %1692 = vmatpush.bf16.msrb.mxu3 %v4204_v37  ;;  %v4124_v31 = vor.u32 %v5173_v34, %v4121_v35  ;;  %v4361_v16 = vld [vmem:[%s6087_s22 + $0xf8] sm:$0xf0]  ;;  %v4343_v23 = vld [vmem:[%s6087_s22 + $0xc8] sm:$0xf]  ;;  %v5231_v24 = vld [vmem:[%s6087_s22 + $0xd4] sm:$0xf0] }
 0x269   : > { %v4364_v17 = vor.u32 %v5233_v15, %v4361_v16  ;;  %v5229_v27 = vld [vmem:[%s6087_s22 + $0xcc] sm:$0xf]  ;;  %v4345_v28 = vld [vmem:[%s6087_s22 + $0xd8] sm:$0xf0]  ;;  %v5224_v34 = vld [vmem:[%s6087_s22 + $0xa4] sm:$0xf] }
 0x26a   : > { %1654 = vmatpush.bf16.msrb.mxu0 %v4176_v42  ;;  %v4348_v29 = vor.u32 %v5229_v27, %v4345_v28  ;;  %v4255_v15 = vld [vmem:[%s6087_s22 + $0x20] sm:$0xf]  ;;  %v5210_v16 = vld [vmem:[%s6087_s22 + $0x2c] sm:$0xf0] }
 0x26b   : > { %1667 = vmatpush.bf16.msrb.mxu1 %v4180_v48  ;;  %1680 = vmatpush.bf16.msrb.mxu2 %v4184_v49  ;;  %v4239_v27 = vld [vmem:[%s6087_s22] sm:$0xf]  ;;  %v5206_v28 = vld [vmem:[%s6087_s22 + $0xc] sm:$0xf0] }
 0x26c   : > { %1693 = vmatpush.bf16.msrb.mxu3 %v4188_v46 }
 0x26e   : > { %1655 = vmatpush.bf16.msrb.mxu0 %v4160_v54 }
 0x26f   : > { %1668 = vmatpush.bf16.msrb.mxu1 %v4164_v58  ;;  %1681 = vmatpush.bf16.msrb.mxu2 %v4168_v59 }
 0x270   : > { %1694 = vmatpush.bf16.msrb.mxu3 %v4172_v62 }
 0x272   : > { %1656 = vmatpush.bf16.msrb.mxu0 %v4144_v2 }
 0x273   : > { %1669 = vmatpush.bf16.msrb.mxu1 %v4148_v6  ;;  %1682 = vmatpush.bf16.msrb.mxu2 %v4152_v7  ;;  %v4351_v6 = vld [vmem:[%s6087_s22 + $0xe0] sm:$0xf]  ;;  %v5234_v7 = vld [vmem:[%s6087_s22 + $0xec] sm:$0xf0] }
 0x274   : > { %1695 = vmatpush.bf16.msrb.mxu3 %v4156_v10  ;;  %v4352_v9 = vor.u32 %v5234_v7, %v4351_v6  ;;  %v4353_v10 = vld [vmem:[%s6087_s22 + $0xf0] sm:$0xf0] }
 0x275   : > { %v4356_v13 = vor.u32 %v5232_v8, %v4353_v10  ;;  %v4273_v7 = vld [vmem:[%s6087_s22 + $0x50] sm:$0xf0]  ;;  %v4279_v8 = vld [vmem:[%s6087_s22 + $0x48] sm:$0xf] }
 0x276   : > { %1657 = vmatpush.bf16.msrb.mxu0 %v4128_v14  ;;  %v4360_v14 = vor.u32 %v5235_v12, %v4359_v11  ;;  %v5213_v12 = vld [vmem:[%s6087_s22 + $0x4c] sm:$0xf] }
 0x277   : > { %1670 = vmatpush.bf16.msrb.mxu1 %v4132_v18  ;;  %1683 = vmatpush.bf16.msrb.mxu2 %v4136_v19  ;;  %v4335_v18 = vld [vmem:[%s6087_s22 + $0xc0] sm:$0xf]  ;;  %v5230_v19 = vld [vmem:[%s6087_s22 + $0xcc] sm:$0xf0] }
 0x278   : > { %1696 = vmatpush.bf16.msrb.mxu3 %v4140_v22  ;;  %v4336_v21 = vor.u32 %v5230_v19, %v4335_v18  ;;  %v4337_v22 = vld [vmem:[%s6087_s22 + $0xd0] sm:$0xf0]  ;;  %v4256_v18 = vor.u32 %v5210_v16, %v4255_v15  ;;  %v4487_v15 = vld [vmem:[%s6087_s22 + $0xe8] sm:$0xf]  ;;  %v5267_v16 = vld [vmem:[%s6087_s22 + $0xf4] sm:$0xf0] }
 0x279   : > { %v4340_v25 = vor.u32 %v5228_v20, %v4337_v22  ;;  %v4257_v19 = vld [vmem:[%s6087_s22 + $0x30] sm:$0xf0]  ;;  %v4263_v20 = vld [vmem:[%s6087_s22 + $0x28] sm:$0xf] }
 0x27a   : > { %1658 = vmatpush.bf16.msrb.mxu0 %v4112_v26  ;;  %v4344_v26 = vor.u32 %v5231_v24, %v4343_v23  ;;  %v5209_v24 = vld [vmem:[%s6087_s22 + $0x2c] sm:$0xf] }
 0x27b   : > { %1671 = vmatpush.bf16.msrb.mxu1 %v4116_v32  ;;  %1684 = vmatpush.bf16.msrb.mxu2 %v4120_v33  ;;  %v4319_v32 = vld [vmem:[%s6087_s22 + $0xa0] sm:$0xf]  ;;  %v5226_v33 = vld [vmem:[%s6087_s22 + $0xac] sm:$0xf0] }
 0x27c   : > { %1697 = vmatpush.bf16.msrb.mxu3 %v4124_v31  ;;  %v4320_v35 = vor.u32 %v5226_v33, %v4319_v32  ;;  %v4240_v32 = vor.u32 %v5206_v28, %v4239_v27  ;;  %v4241_v33 = vld [vmem:[%s6087_s22 + $0x10] sm:$0xf0]  ;;  %v4471_v27 = vld [vmem:[%s6087_s22 + $0xc8] sm:$0xf]  ;;  %v5263_v28 = vld [vmem:[%s6087_s22 + $0xd4] sm:$0xf0] }
 0x27e   : > { %1929 = vmatpush.bf16.msra.mxu0 %v4352_v9  ;;  %v5215_v9 = vld [vmem:[%s6087_s22 + $0x54] sm:$0xf0] }
 0x27f   : > { %1942 = vmatpush.bf16.msra.mxu1 %v4356_v13  ;;  %1955 = vmatpush.bf16.msra.mxu2 %v4360_v14  ;;  %v4280_v11 = vor.u32 %v5215_v9, %v4279_v8  ;;  %v4281_v13 = vld [vmem:[%s6087_s22 + $0x58] sm:$0xf0] }
 0x280   : > { %1968 = vmatpush.bf16.msra.mxu3 %v4364_v17  ;;  %v4284_v14 = vor.u32 %v5213_v12, %v4281_v13  ;;  %v5208_v17 = vld [vmem:[%s6087_s22 + $0x24] sm:$0xf] }
 0x281   : > { %v4260_v22 = vor.u32 %v5208_v17, %v4257_v19  ;;  %v5264_v12 = vld [vmem:[%s6087_s22 + $0xe4] sm:$0xf]  ;;  %v5265_v19 = vld [vmem:[%s6087_s22 + $0xec] sm:$0xf] }
 0x282   : > { %1930 = vmatpush.bf16.msra.mxu0 %v4336_v21  ;;  %v5211_v21 = vld [vmem:[%s6087_s22 + $0x34] sm:$0xf0] }
 0x283   : > { %1943 = vmatpush.bf16.msra.mxu1 %v4340_v25  ;;  %1956 = vmatpush.bf16.msra.mxu2 %v4344_v26  ;;  %v4264_v23 = vor.u32 %v5211_v21, %v4263_v20  ;;  %v4265_v25 = vld [vmem:[%s6087_s22 + $0x38] sm:$0xf0] }
 0x284   : > { %1969 = vmatpush.bf16.msra.mxu3 %v4348_v29  ;;  %v4268_v26 = vor.u32 %v5209_v24, %v4265_v25  ;;  %v5204_v29 = vld [vmem:[%s6087_s22 + $0x4] sm:$0xf]  ;;  %v4489_v20 = vld [vmem:[%s6087_s22 + $0xf8] sm:$0xf0] }
 0x285   : > { %v4492_v21 = vor.u32 %v5265_v19, %v4489_v20  ;;  %v5260_v24 = vld [vmem:[%s6087_s22 + $0xc4] sm:$0xf]  ;;  %v4383_v19 = vld [vmem:[%s6087_s22 + $0x20] sm:$0xf]  ;;  %v5242_v20 = vld [vmem:[%s6087_s22 + $0x2c] sm:$0xf0] }
 0x286   : > { %1931 = vmatpush.bf16.msra.mxu0 %v4320_v35  ;;  %v5207_v35 = vld [vmem:[%s6087_s22 + $0x14] sm:$0xf0] }
 0x2d9   : > { %v1383_v38 = vpop.f32.mrf.mxu0 }
 0x2da   : > { %v1426_v37 = vadd.f32 %v1383_v38, %v1176_v30  ;;  %v1396_v39 = vpop.f32.mrf.mxu1  ;;  %v4321_v30 = vld [vmem:[%s6087_s22 + $0xb0] sm:$0xf0]  ;;  %v5227_v38 = vld [vmem:[%s6087_s22 + $0xb4] sm:$0xf0] }
 0x2db   : > { %v1427_v40 = vadd.f32 %v1396_v39, %v1177_v36  ;;  %v4324_v31 = vor.u32 %v5224_v34, %v4321_v30  ;;  %v4327_v36 = vld [vmem:[%s6087_s22 + $0xa8] sm:$0xf]  ;;  %v4244_v30 = vor.u32 %v5204_v29, %v4241_v33  ;;  %v5261_v33 = vld [vmem:[%s6087_s22 + $0xcc] sm:$0xf] }
 0x2dc   : > { %v1430_v41 = vmul.f32 0.5, %v1426_v37  ;;  %v5225_v37 = vld [vmem:[%s6087_s22 + $0xac] sm:$0xf]  ;;  %v4328_v39 = vor.u32 %v5227_v38, %v4327_v36  ;;  %v4247_v34 = vld [vmem:[%s6087_s22 + $0x8] sm:$0xf] }
 0x2dd   : > { %v1434_v42 = vmul.f32 0.5, %v1427_v40  ;;  %v4329_v40 = vld [vmem:[%s6087_s22 + $0xb8] sm:$0xf0]  ;;  %1944 = vmatpush.bf16.msra.mxu1 %v4324_v31  ;;  %v4248_v31 = vor.u32 %v5207_v35, %v4247_v34  ;;  %v5205_v36 = vld [vmem:[%s6087_s22 + $0xc] sm:$0xf] }
 0x2de   : > { %5506 = vtanh.f32 %v1430_v41  ;;  %v4332_v41 = vor.u32 %v5225_v37, %v4329_v40  ;;  %1957 = vmatpush.bf16.msra.mxu2 %v4328_v39  ;;  %v4249_v38 = vld [vmem:[%s6087_s22 + $0x18] sm:$0xf0]  ;;  %v1453_v39 = vld [vmem:[#allocation3 + $0xe8] sm:$0xff] }
 0x2df   : > { %5508 = vtanh.f32 %v1434_v42  ;;  %v4303_v42 = vld [vmem:[%s6087_s22 + $0x80] sm:$0xf]  ;;  %v4252_v37 = vor.u32 %v5205_v36, %v4249_v38  ;;  %v4473_v34 = vld [vmem:[%s6087_s22 + $0xd8] sm:$0xf0]  ;;  %v5256_v36 = vld [vmem:[%s6087_s22 + $0xa4] sm:$0xf] }
 0x2e0   : > { %v1409_v47 = vpop.f32.mrf.mxu2  ;;  %1970 = vmatpush.bf16.msra.mxu3 %v4332_v41  ;;  %v1454_v40 = vld [vmem:[#allocation3 + $0x68] sm:$0xff]  ;;  %v4476_v35 = vor.u32 %v5261_v33, %v4473_v34  ;;  %v5238_v34 = vld [vmem:[%s6087_s22 + $0xc] sm:$0xf0] }
 0x2e1   : > { %v1428_v48 = vadd.f32 %v1409_v47, %v1178_v43  ;;  %v1422_v49 = vpop.f32.mrf.mxu3  ;;  %v1385_v50 = vpop.f32.mrf.mxu0  ;;  %v5222_v43 = vld [vmem:[%s6087_s22 + $0x8c] sm:$0xf0]  ;;  %v4367_v33 = vld [vmem:[%s6087_s22] sm:$0xf] }
 0x2e2   : > { %v1429_v45 = vadd.f32 %v1422_v49, %v1179_v44  ;;  %v1398_v46 = vpop.f32.mrf.mxu1  ;;  %v5220_v44 = vld [vmem:[%s6087_s22 + $0x84] sm:$0xf]  ;;  %v4304_v47 = vor.u32 %v5222_v43, %v4303_v42  ;;  %v4311_v49 = vld [vmem:[%s6087_s22 + $0x88] sm:$0xf]  ;;  %v5223_v50 = vld [vmem:[%s6087_s22 + $0x94] sm:$0xf0] }
 0x2e3   : > { %5510 = vtanh.f32 %v1428_v48  ;;  %v4305_v48 = vld [vmem:[%s6087_s22 + $0x90] sm:$0xf0]  ;;  %v4312_v46 = vor.u32 %v5223_v50, %v4311_v49  ;;  %v1455_v49 = vld [vmem:[#allocation3 + $0xf0] sm:$0xff] }
 0x2e4   : > { %v5507_v51 = vpop.eup %5506  ;;  %v1439_v52 = vmul.f32 0.5, %v1429_v45  ;;  %v4308_v45 = vor.u32 %v5220_v44, %v4305_v48  ;;  %1932 = vmatpush.bf16.msra.mxu0 %v4304_v47  ;;  %v1456_v50 = vld [vmem:[#allocation3 + $0xd0] sm:$0xff] }
 0x2e5   : > { %v5509_v53 = vpop.eup %5508  ;;  %v1432_v54 = vmul.f32 0.5, %v5507_v51  ;;  %v5221_v51 = vld [vmem:[%s6087_s22 + $0x8c] sm:$0xf]  ;;  %1958 = vmatpush.bf16.msra.mxu2 %v4312_v46 }
 0x2e6   : > { %v1436_v55 = vmul.f32 0.5, %v5509_v53  ;;  %5512 = vtanh.f32 %v1439_v52  ;;  %v4313_v52 = vld [vmem:[%s6087_s22 + $0x98] sm:$0xf0]  ;;  %1945 = vmatpush.bf16.msra.mxu1 %v4308_v45 }
 0x2e7   : > { %v1433_v56 = vadd.f32 0.5, %v1432_v54  ;;  %v4316_v53 = vor.u32 %v5221_v51, %v4313_v52  ;;  %v4287_v54 = vld [vmem:[%s6087_s22 + $0x60] sm:$0xf] }
 0x2e8   : > { %v1437_v57 = vadd.f32 0.5, %v1436_v55  ;;  %v1411_v58 = vpop.f32.mrf.mxu2  ;;  %v5218_v55 = vld [vmem:[%s6087_s22 + $0x6c] sm:$0xf0] }
 0x2e9   : > { %v5511_v59 = vpop.eup %5510  ;;  %v1424_v60 = vpop.f32.mrf.mxu3  ;;  %v4289_v58 = vld [vmem:[%s6087_s22 + $0x70] sm:$0xf0]  ;;  %1971 = vmatpush.bf16.msra.mxu3 %v4316_v53 }
 0x2ea   : > { %v1444_v61 = vmul.f32 0.0, %v1437_v57  ;;  %v1445_v62 = vmul.f32 %v5511_v59, %v1433_v56  ;;  %v5216_v56 = vld [vmem:[%s6087_s22 + $0x64] sm:$0xf]  ;;  %v4288_v57 = vor.u32 %v5218_v55, %v4287_v54  ;;  %v4295_v59 = vld [vmem:[%s6087_s22 + $0x68] sm:$0xf] }
 0x2eb   : > { %v5219_v60 = vld [vmem:[%s6087_s22 + $0x74] sm:$0xf0] }
 0x2ec   : > { %v5513_v63 = vpop.eup %5512  ;;  %v6446_v0 = vadd.f32 %v1445_v62, %v1444_v61  ;;  %v4292_v61 = vor.u32 %v5216_v56, %v4289_v58  ;;  %v4296_v62 = vor.u32 %v5219_v60, %v4295_v59  ;;  %1933 = vmatpush.bf16.msra.mxu0 %v4288_v57 }
 0x2ed   : > { %v1441_v1 = vmul.f32 0.5, %v5513_v63  ;;  %v5217_v63 = vld [vmem:[%s6087_s22 + $0x6c] sm:$0xf] }
 0x2ee   : > { %5514 = vtanh.f32 %v6446_v0  ;;  %1946 = vmatpush.bf16.msra.mxu1 %v4292_v61  ;;  %1959 = vmatpush.bf16.msra.mxu2 %v4296_v62 }
 0x2ef   : > { %v1442_v2 = vadd.f32 0.5, %v1441_v1  ;;  %v4297_v1 = vld [vmem:[%s6087_s22 + $0x78] sm:$0xf0] }
 0x2f2   : > { %1960 = vmatpush.bf16.msra.mxu2 %v4280_v11  ;;  %v5266_v11 = vld [vmem:[%s6087_s22 + $0xec] sm:$0xf0] }
 0x2f4   : > { %v5515_v3 = vpop.eup %5514 }
 0x2f5   : > { %v1448_v4 = vmul.f32 %v5515_v3, %v1442_v2  ;;  %v4300_v2 = vor.u32 %v5217_v63, %v4297_v1  ;;  %v4271_v3 = vld [vmem:[%s6087_s22 + $0x40] sm:$0xf] }
 0x2f6   : > { %1961 = vmatpush.bf16.msra.mxu2 %v4264_v23  ;;  %v5262_v23 = vld [vmem:[%s6087_s22 + $0xcc] sm:$0xf0] }
 0x2f7   : > { %1451 = vst [vmem:[#allocation2 + $0x30] sm:$0xff] %v1448_v4  ;;  %v1458_v5 = vpack.c.bf16 %v1448_v4, %v1448_v4  ;;  %v5214_v4 = vld [vmem:[%s6087_s22 + $0x4c] sm:$0xf0]  ;;  %1972 = vmatpush.bf16.msra.mxu3 %v4300_v2 }
 0x2f8   : > { %v4272_v6 = vor.u32 %v5214_v4, %v4271_v3 }
 0x2f9   : > { %1659 = vmatmul.bf16.vlgmr.msrb.gmra.mxu0 %v1458_v5  ;;  %1672 = vmatmul.bf16.vlgmr.msrb.gmra.mxu1 %v1458_v5 }
 0x2fa   : > { %1685 = vmatmul.bf16.vlgmr.msrb.gmra.mxu2 %v1458_v5  ;;  %1698 = vmatmul.bf16.vlgmr.msrb.gmra.mxu3 %v1458_v5  ;;  %v5212_v5 = vld [vmem:[%s6087_s22 + $0x44] sm:$0xf] }
 0x2fb   : > { %v4276_v10 = vor.u32 %v5212_v5, %v4273_v7  ;;  %1934 = vmatpush.bf16.msra.mxu0 %v4272_v6  ;;  %1973 = vmatpush.bf16.msra.mxu3 %v4284_v14  ;;  %v4481_v14 = vld [vmem:[%s6087_s22 + $0xf0] sm:$0xf0] }
 0x2fc   : > { %1962 = vmatpush.bf16.msra.mxu2 %v4248_v31  ;;  %v4484_v17 = vor.u32 %v5264_v12, %v4481_v14  ;;  %v5258_v31 = vld [vmem:[%s6087_s22 + $0xac] sm:$0xf0]  ;;  %v4407_v12 = vld [vmem:[%s6087_s22 + $0x48] sm:$0xf] }
 0x2fd   : > { %1947 = vmatpush.bf16.msra.mxu1 %v4276_v10 }
 0x2ff   : > { %1935 = vmatpush.bf16.msra.mxu0 %v4256_v18  ;;  %1974 = vmatpush.bf16.msra.mxu3 %v4268_v26  ;;  %v4488_v18 = vor.u32 %v5267_v16, %v4487_v15  ;;  %v4465_v26 = vld [vmem:[%s6087_s22 + $0xd0] sm:$0xf0]  ;;  %v5245_v16 = vld [vmem:[%s6087_s22 + $0x4c] sm:$0xf] }
 0x300   : > { %v4468_v29 = vor.u32 %v5260_v24, %v4465_v26  ;;  %v4391_v24 = vld [vmem:[%s6087_s22 + $0x28] sm:$0xf] }
 0x301   : > { %1948 = vmatpush.bf16.msra.mxu1 %v4260_v22  ;;  %2233 = vmatpush.bf16.msrb.mxu2 %v4488_v18  ;;  %v4463_v22 = vld [vmem:[%s6087_s22 + $0xc0] sm:$0xf] }
 0x302   : > { %v4464_v25 = vor.u32 %v5262_v23, %v4463_v22  ;;  %v4384_v22 = vor.u32 %v5242_v20, %v4383_v19  ;;  %v4385_v23 = vld [vmem:[%s6087_s22 + $0x30] sm:$0xf0]  ;;  %v4615_v19 = vld [vmem:[%s6087_s22 + $0xe8] sm:$0xf]  ;;  %v5299_v20 = vld [vmem:[%s6087_s22 + $0xf4] sm:$0xf0] }
 0x303   : > { %1936 = vmatpush.bf16.msra.mxu0 %v4240_v32  ;;  %1975 = vmatpush.bf16.msra.mxu3 %v4252_v37  ;;  %v4472_v32 = vor.u32 %v5263_v28, %v4471_v27  ;;  %v4449_v37 = vld [vmem:[%s6087_s22 + $0xb0] sm:$0xf0]  ;;  %v5241_v28 = vld [vmem:[%s6087_s22 + $0x2c] sm:$0xf] }
 0x305   : > { %1949 = vmatpush.bf16.msra.mxu1 %v4244_v30  ;;  %2234 = vmatpush.bf16.msrb.mxu2 %v4472_v32  ;;  %v4447_v30 = vld [vmem:[%s6087_s22 + $0xa0] sm:$0xf] }
 0x306   : > { %v4448_v38 = vor.u32 %v5258_v31, %v4447_v30  ;;  %v4368_v30 = vor.u32 %v5238_v34, %v4367_v33  ;;  %v4369_v31 = vld [vmem:[%s6087_s22 + $0x10] sm:$0xf0]  ;;  %v4599_v33 = vld [vmem:[%s6087_s22 + $0xc8] sm:$0xf]  ;;  %v5295_v34 = vld [vmem:[%s6087_s22 + $0xd4] sm:$0xf0] }
 0x307   : > { %2246 = vmatpush.bf16.msrb.mxu3 %v4492_v21  ;;  %v5240_v21 = vld [vmem:[%s6087_s22 + $0x24] sm:$0xf] }
 0x308   : > { %v4388_v26 = vor.u32 %v5240_v21, %v4385_v23  ;;  %v5297_v23 = vld [vmem:[%s6087_s22 + $0xec] sm:$0xf] }
 0x309   : > { %2220 = vmatpush.bf16.msrb.mxu1 %v4484_v17  ;;  %v4409_v17 = vld [vmem:[%s6087_s22 + $0x58] sm:$0xf0] }
 0x30a   : > { %v4412_v18 = vor.u32 %v5245_v16, %v4409_v17  ;;  %v5296_v16 = vld [vmem:[%s6087_s22 + $0xe4] sm:$0xf] }
 0x30b   : > { %2247 = vmatpush.bf16.msrb.mxu3 %v4476_v35  ;;  %v5236_v35 = vld [vmem:[%s6087_s22 + $0x4] sm:$0xf] }
 0x30d   : > { %2221 = vmatpush.bf16.msrb.mxu1 %v4468_v29  ;;  %v4393_v29 = vld [vmem:[%s6087_s22 + $0x38] sm:$0xf0] }
 0x30e   : > { %v4396_v32 = vor.u32 %v5241_v28, %v4393_v29  ;;  %v5292_v28 = vld [vmem:[%s6087_s22 + $0xc4] sm:$0xf] }
 0x376   : > { %v1660_v41 = vpop.f32.mrf.mxu0  ;;  %v1673_v42 = vpop.f32.mrf.mxu1 }
 0x377   : > { %v1703_v43 = vadd.f32 %v1660_v41, %v1453_v39  ;;  %v1704_v44 = vadd.f32 %v1673_v42, %v1454_v40  ;;  %v4452_v39 = vor.u32 %v5256_v36, %v4449_v37  ;;  %v4455_v40 = vld [vmem:[%s6087_s22 + $0xa8] sm:$0xf]  ;;  %v5259_v41 = vld [vmem:[%s6087_s22 + $0xb4] sm:$0xf0]  ;;  %v5257_v42 = vld [vmem:[%s6087_s22 + $0xac] sm:$0xf]  ;;  %v4372_v37 = vor.u32 %v5236_v35, %v4369_v31 }
 0x378   : > { %v4375_v36 = vld [vmem:[%s6087_s22 + $0x8] sm:$0xf]  ;;  %v5293_v31 = vld [vmem:[%s6087_s22 + $0xcc] sm:$0xf] }
 0x379   : > { %v1707_v47 = vmul.f32 0.5, %v1703_v43  ;;  %v1711_v48 = vmul.f32 0.5, %v1704_v44  ;;  %v4456_v43 = vor.u32 %v5259_v41, %v4455_v40  ;;  %v4457_v44 = vld [vmem:[%s6087_s22 + $0xb8] sm:$0xf0]  ;;  %2222 = vmatpush.bf16.msrb.mxu1 %v4452_v39  ;;  %v5237_v40 = vld [vmem:[%s6087_s22 + $0xc] sm:$0xf] }
 0x37a   : > { %v4377_v41 = vld [vmem:[%s6087_s22 + $0x18] sm:$0xf0] }
 0x37b   : > { %5516 = vtanh.f32 %v1707_v47  ;;  %v4460_v47 = vor.u32 %v5257_v42, %v4457_v44  ;;  %2235 = vmatpush.bf16.msrb.mxu2 %v4456_v43  ;;  %v4380_v42 = vor.u32 %v5237_v40, %v4377_v41  ;;  %v1731_v43 = vld [vmem:[#allocation3 + $0x20] sm:$0xff]  ;;  %v1732_v44 = vld [vmem:[#allocation3 + $0xa8] sm:$0xff] }
 0x37c   : > { %5518 = vtanh.f32 %v1711_v48  ;;  %v4431_v48 = vld [vmem:[%s6087_s22 + $0x80] sm:$0xf]  ;;  %v5288_v40 = vld [vmem:[%s6087_s22 + $0xa4] sm:$0xf] }
 0x37d   : > { %v1686_v45 = vpop.f32.mrf.mxu2  ;;  %v1699_v46 = vpop.f32.mrf.mxu3  ;;  %2248 = vmatpush.bf16.msrb.mxu3 %v4460_v47 }
 0x37e   : > { %v1705_v51 = vadd.f32 %v1686_v45, %v1455_v49  ;;  %v1706_v52 = vadd.f32 %v1699_v46, %v1456_v50  ;;  %v1662_v53 = vpop.f32.mrf.mxu0  ;;  %v1675_v54 = vpop.f32.mrf.mxu1  ;;  %v5254_v49 = vld [vmem:[%s6087_s22 + $0x8c] sm:$0xf0]  ;;  %v5252_v50 = vld [vmem:[%s6087_s22 + $0x84] sm:$0xf]  ;;  %v4433_v46 = vld [vmem:[%s6087_s22 + $0x90] sm:$0xf0] }
 0x37f   : > { %v4432_v45 = vor.u32 %v5254_v49, %v4431_v48  ;;  %v4436_v53 = vor.u32 %v5252_v50, %v4433_v46 }
 0x380   : > { %5520 = vtanh.f32 %v1705_v51  ;;  %v1716_v55 = vmul.f32 0.5, %v1706_v52  ;;  %v4439_v51 = vld [vmem:[%s6087_s22 + $0x88] sm:$0xf]  ;;  %v5255_v52 = vld [vmem:[%s6087_s22 + $0x94] sm:$0xf0] }
 0x381   : > { %v5517_v56 = vpop.eup %5516  ;;  %v4440_v54 = vor.u32 %v5255_v52, %v4439_v51  ;;  %2223 = vmatpush.bf16.msrb.mxu1 %v4436_v53  ;;  %v1733_v51 = vld [vmem:[#allocation3 + $0x10] sm:$0xff]  ;;  %v1734_v52 = vld [vmem:[#allocation3 + $0x8] sm:$0xff] }
 0x382   : > { %v5519_v57 = vpop.eup %5518  ;;  %v1709_v58 = vmul.f32 0.5, %v5517_v56  ;;  %5522 = vtanh.f32 %v1716_v55  ;;  %v5253_v55 = vld [vmem:[%s6087_s22 + $0x8c] sm:$0xf]  ;;  %v4441_v56 = vld [vmem:[%s6087_s22 + $0x98] sm:$0xf0] }
 0x383   : > { %v1713_v59 = vmul.f32 0.5, %v5519_v57  ;;  %v4444_v57 = vor.u32 %v5253_v55, %v4441_v56  ;;  %2236 = vmatpush.bf16.msrb.mxu2 %v4440_v54 }
 0x384   : > { %v1710_v60 = vadd.f32 0.5, %v1709_v58  ;;  %v4415_v58 = vld [vmem:[%s6087_s22 + $0x60] sm:$0xf] }
 0x385   : > { %v1714_v61 = vadd.f32 0.5, %v1713_v59  ;;  %v1688_v62 = vpop.f32.mrf.mxu2  ;;  %v1701_v63 = vpop.f32.mrf.mxu3  ;;  %v5250_v59 = vld [vmem:[%s6087_s22 + $0x6c] sm:$0xf0]  ;;  %2249 = vmatpush.bf16.msrb.mxu3 %v4444_v57 }
 0x386   : > { %v5521_v1 = vpop.eup %5520  ;;  %v4417_v62 = vld [vmem:[%s6087_s22 + $0x70] sm:$0xf0]  ;;  %v4423_v63 = vld [vmem:[%s6087_s22 + $0x68] sm:$0xf] }
 0x387   : > { %v1721_v2 = vmul.f32 %v1714_v61, %v6446_v0  ;;  %v1722_v3 = vmul.f32 %v5521_v1, %v1710_v60  ;;  %v4479_v0 = vld [vmem:[%s6087_s22 + $0xe0] sm:$0xf]  ;;  %v5248_v60 = vld [vmem:[%s6087_s22 + $0x64] sm:$0xf]  ;;  %v4416_v61 = vor.u32 %v5250_v59, %v4415_v58  ;;  %v5251_v1 = vld [vmem:[%s6087_s22 + $0x74] sm:$0xf0] }
 0x388   : > { %v5523_v4 = vpop.eup %5522  ;;  %v4480_v13 = vor.u32 %v5266_v11, %v4479_v0  ;;  %v4401_v11 = vld [vmem:[%s6087_s22 + $0x50] sm:$0xf0] }
 0x389   : > { %v6514_v5 = vadd.f32 %v1722_v3, %v1721_v2  ;;  %v1718_v6 = vmul.f32 0.5, %v5523_v4  ;;  %v4420_v2 = vor.u32 %v5248_v60, %v4417_v62  ;;  %v4424_v3 = vor.u32 %v5251_v1, %v4423_v63  ;;  %v5249_v4 = vld [vmem:[%s6087_s22 + $0x6c] sm:$0xf] }
 0x38a   : > { %2207 = vmatpush.bf16.msrb.mxu0 %v4480_v13  ;;  %v5247_v13 = vld [vmem:[%s6087_s22 + $0x54] sm:$0xf0] }
 0x38b   : > { %5524 = vtanh.f32 %v6514_v5  ;;  %v1719_v7 = vadd.f32 0.5, %v1718_v6  ;;  %v4425_v6 = vld [vmem:[%s6087_s22 + $0x78] sm:$0xf0]  ;;  %2224 = vmatpush.bf16.msrb.mxu1 %v4420_v2  ;;  %2237 = vmatpush.bf16.msrb.mxu2 %v4424_v3  ;;  %v4408_v15 = vor.u32 %v5247_v13, %v4407_v12 }
 0x38e   : > { %2208 = vmatpush.bf16.msrb.mxu0 %v4464_v25  ;;  %v5243_v25 = vld [vmem:[%s6087_s22 + $0x34] sm:$0xf0] }
 0x38f   : > { %2238 = vmatpush.bf16.msrb.mxu2 %v4408_v15  ;;  %v4392_v27 = vor.u32 %v5243_v25, %v4391_v24  ;;  %v5298_v15 = vld [vmem:[%s6087_s22 + $0xec] sm:$0xf0]  ;;  %v4617_v24 = vld [vmem:[%s6087_s22 + $0xf8] sm:$0xf0] }
 0x390   : > { %v4620_v25 = vor.u32 %v5297_v23, %v4617_v24  ;;  %v4511_v23 = vld [vmem:[%s6087_s22 + $0x20] sm:$0xf]  ;;  %v5274_v24 = vld [vmem:[%s6087_s22 + $0x2c] sm:$0xf0] }
 0x391   : > { %v5525_v8 = vpop.eup %5524 }
 0x392   : > { %v1725_v9 = vmul.f32 %v5525_v8, %v1719_v7  ;;  %2209 = vmatpush.bf16.msrb.mxu0 %v4448_v38  ;;  %v4428_v7 = vor.u32 %v5249_v4, %v4425_v6  ;;  %v4399_v8 = vld [vmem:[%s6087_s22 + $0x40] sm:$0xf]  ;;  %v5239_v38 = vld [vmem:[%s6087_s22 + $0x14] sm:$0xf0] }
 0x393   : > { %2239 = vmatpush.bf16.msrb.mxu2 %v4392_v27  ;;  %v4376_v39 = vor.u32 %v5239_v38, %v4375_v36  ;;  %v5294_v27 = vld [vmem:[%s6087_s22 + $0xcc] sm:$0xf0]  ;;  %v4601_v36 = vld [vmem:[%s6087_s22 + $0xd8] sm:$0xf0] }
 0x394   : > { %1729 = vst [vmem:[#allocation2] sm:$0xff] %v1725_v9  ;;  %v1736_v10 = vpack.c.bf16 %v1725_v9, %v1725_v9  ;;  %v5246_v9 = vld [vmem:[%s6087_s22 + $0x4c] sm:$0xf0]  ;;  %2250 = vmatpush.bf16.msrb.mxu3 %v4428_v7  ;;  %v4604_v38 = vor.u32 %v5293_v31, %v4601_v36  ;;  %v4495_v31 = vld [vmem:[%s6087_s22] sm:$0xf] }
 0x395   : > { %v4400_v0 = vor.u32 %v5246_v9, %v4399_v8  ;;  %v5270_v36 = vld [vmem:[%s6087_s22 + $0xc] sm:$0xf0] }
 0x396   : > { %1937 = vmatmul.bf16.vlgmr.msra.gmra.mxu0 %v1736_v10  ;;  %1950 = vmatmul.bf16.vlgmr.msra.gmra.mxu1 %v1736_v10 }
 0x397   : > { %1963 = vmatmul.bf16.vlgmr.msra.gmra.mxu2 %v1736_v10  ;;  %1976 = vmatmul.bf16.vlgmr.msra.gmra.mxu3 %v1736_v10  ;;  %v5244_v10 = vld [vmem:[%s6087_s22 + $0x44] sm:$0xf] }
 0x398   : > { %2210 = vmatpush.bf16.msrb.mxu0 %v4432_v45  ;;  %v4404_v14 = vor.u32 %v5244_v10, %v4401_v11  ;;  %2251 = vmatpush.bf16.msrb.mxu3 %v4412_v18  ;;  %v4609_v18 = vld [vmem:[%s6087_s22 + $0xf0] sm:$0xf0] }
 0x399   : > { %2240 = vmatpush.bf16.msrb.mxu2 %v4376_v39  ;;  %v4612_v21 = vor.u32 %v5296_v16, %v4609_v18  ;;  %v5290_v39 = vld [vmem:[%s6087_s22 + $0xac] sm:$0xf0]  ;;  %v4535_v16 = vld [vmem:[%s6087_s22 + $0x48] sm:$0xf] }
 0x39a   : > { %2225 = vmatpush.bf16.msrb.mxu1 %v4404_v14 }
 0x39c   : > { %2211 = vmatpush.bf16.msrb.mxu0 %v4416_v61  ;;  %2252 = vmatpush.bf16.msrb.mxu3 %v4396_v32  ;;  %v4593_v32 = vld [vmem:[%s6087_s22 + $0xd0] sm:$0xf0] }
 0x39d   : > { %v4596_v35 = vor.u32 %v5292_v28, %v4593_v32  ;;  %v4519_v28 = vld [vmem:[%s6087_s22 + $0x28] sm:$0xf] }
 0x39e   : > { %2226 = vmatpush.bf16.msrb.mxu1 %v4388_v26  ;;  %v4591_v26 = vld [vmem:[%s6087_s22 + $0xc0] sm:$0xf] }
 0x39f   : > { %v4592_v29 = vor.u32 %v5294_v27, %v4591_v26  ;;  %v4512_v26 = vor.u32 %v5274_v24, %v4511_v23  ;;  %v4513_v27 = vld [vmem:[%s6087_s22 + $0x30] sm:$0xf0]  ;;  %v4743_v23 = vld [vmem:[%s6087_s22 + $0xe8] sm:$0xf]  ;;  %v5331_v24 = vld [vmem:[%s6087_s22 + $0xf4] sm:$0xf0] }
 0x3a0   : > { %2212 = vmatpush.bf16.msrb.mxu0 %v4400_v0  ;;  %2253 = vmatpush.bf16.msrb.mxu3 %v4380_v42  ;;  %v4577_v42 = vld [vmem:[%s6087_s22 + $0xb0] sm:$0xf0] }
 0x3a2   : > { %2227 = vmatpush.bf16.msrb.mxu1 %v4372_v37  ;;  %v4575_v37 = vld [vmem:[%s6087_s22 + $0xa0] sm:$0xf] }
 0x3a3   : > { %v4576_v41 = vor.u32 %v5290_v39, %v4575_v37  ;;  %v4496_v37 = vor.u32 %v5270_v36, %v4495_v31  ;;  %v4497_v39 = vld [vmem:[%s6087_s22 + $0x10] sm:$0xf0]  ;;  %v4727_v31 = vld [vmem:[%s6087_s22 + $0xc8] sm:$0xf]  ;;  %v5327_v36 = vld [vmem:[%s6087_s22 + $0xd4] sm:$0xf0] }
 0x3a4   : > { %2213 = vmatpush.bf16.msrb.mxu0 %v4384_v22  ;;  %v4616_v22 = vor.u32 %v5299_v20, %v4615_v19  ;;  %2524 = vmatpush.bf16.msra.mxu3 %v4620_v25  ;;  %v5277_v20 = vld [vmem:[%s6087_s22 + $0x4c] sm:$0xf]  ;;  %v5272_v25 = vld [vmem:[%s6087_s22 + $0x24] sm:$0xf] }
 0x3a5   : > { %v4516_v32 = vor.u32 %v5272_v25, %v4513_v27  ;;  %v5329_v27 = vld [vmem:[%s6087_s22 + $0xec] sm:$0xf] }
 0x3a6   : > { %2498 = vmatpush.bf16.msra.mxu1 %v4612_v21  ;;  %2511 = vmatpush.bf16.msra.mxu2 %v4616_v22  ;;  %v4537_v21 = vld [vmem:[%s6087_s22 + $0x58] sm:$0xf0] }
 0x3a7   : > { %v4540_v22 = vor.u32 %v5277_v20, %v4537_v21  ;;  %v5328_v20 = vld [vmem:[%s6087_s22 + $0xe4] sm:$0xf] }
 0x3a8   : > { %2214 = vmatpush.bf16.msrb.mxu0 %v4368_v30  ;;  %v4600_v30 = vor.u32 %v5295_v34, %v4599_v33  ;;  %2525 = vmatpush.bf16.msra.mxu3 %v4604_v38  ;;  %v5273_v34 = vld [vmem:[%s6087_s22 + $0x2c] sm:$0xf]  ;;  %v5268_v38 = vld [vmem:[%s6087_s22 + $0x4] sm:$0xf] }
 0x3aa   : > { %2499 = vmatpush.bf16.msra.mxu1 %v4596_v35  ;;  %2512 = vmatpush.bf16.msra.mxu2 %v4600_v30  ;;  %v4521_v35 = vld [vmem:[%s6087_s22 + $0x38] sm:$0xf0] }
 0x3ab   : > { %v4524_v30 = vor.u32 %v5273_v34, %v4521_v35  ;;  %v5324_v34 = vld [vmem:[%s6087_s22 + $0xc4] sm:$0xf] }
 0x413   : > { %v1938_v47 = vpop.f32.mrf.mxu0  ;;  %v1951_v48 = vpop.f32.mrf.mxu1 }
 0x414   : > { %v1981_v49 = vadd.f32 %v1938_v47, %v1731_v43  ;;  %v1982_v50 = vadd.f32 %v1951_v48, %v1732_v44  ;;  %v4580_v43 = vor.u32 %v5288_v40, %v4577_v42  ;;  %v4583_v44 = vld [vmem:[%s6087_s22 + $0xa8] sm:$0xf]  ;;  %v5291_v47 = vld [vmem:[%s6087_s22 + $0xb4] sm:$0xf0]  ;;  %v5289_v48 = vld [vmem:[%s6087_s22 + $0xac] sm:$0xf]  ;;  %v4500_v42 = vor.u32 %v5268_v38, %v4497_v39 }
 0x415   : > { %v4503_v40 = vld [vmem:[%s6087_s22 + $0x8] sm:$0xf]  ;;  %v5325_v39 = vld [vmem:[%s6087_s22 + $0xcc] sm:$0xf] }
 0x416   : > { %v1985_v45 = vmul.f32 0.5, %v1981_v49  ;;  %v1989_v46 = vmul.f32 0.5, %v1982_v50  ;;  %v4584_v49 = vor.u32 %v5291_v47, %v4583_v44  ;;  %v4585_v50 = vld [vmem:[%s6087_s22 + $0xb8] sm:$0xf0]  ;;  %2500 = vmatpush.bf16.msra.mxu1 %v4580_v43  ;;  %v5269_v44 = vld [vmem:[%s6087_s22 + $0xc] sm:$0xf] }
 0x417   : > { %v4505_v47 = vld [vmem:[%s6087_s22 + $0x18] sm:$0xf0] }
 0x418   : > { %5526 = vtanh.f32 %v1985_v45  ;;  %v4588_v45 = vor.u32 %v5289_v48, %v4585_v50  ;;  %2513 = vmatpush.bf16.msra.mxu2 %v4584_v49  ;;  %v4508_v48 = vor.u32 %v5269_v44, %v4505_v47  ;;  %v2009_v49 = vld [vmem:[#allocation3 + $0xa0] sm:$0xff]  ;;  %v2010_v50 = vld [vmem:[#allocation3 + $0x28] sm:$0xff] }
 0x419   : > { %5528 = vtanh.f32 %v1989_v46  ;;  %v4559_v46 = vld [vmem:[%s6087_s22 + $0x80] sm:$0xf]  ;;  %v5320_v44 = vld [vmem:[%s6087_s22 + $0xa4] sm:$0xf] }
 0x41a   : > { %v1964_v53 = vpop.f32.mrf.mxu2  ;;  %v1977_v54 = vpop.f32.mrf.mxu3  ;;  %2526 = vmatpush.bf16.msra.mxu3 %v4588_v45 }
 0x41b   : > { %v1983_v55 = vadd.f32 %v1964_v53, %v1733_v51  ;;  %v1984_v56 = vadd.f32 %v1977_v54, %v1734_v52  ;;  %v1940_v57 = vpop.f32.mrf.mxu0  ;;  %v1953_v58 = vpop.f32.mrf.mxu1  ;;  %v5286_v51 = vld [vmem:[%s6087_s22 + $0x8c] sm:$0xf0]  ;;  %v5284_v52 = vld [vmem:[%s6087_s22 + $0x84] sm:$0xf]  ;;  %v4561_v54 = vld [vmem:[%s6087_s22 + $0x90] sm:$0xf0] }
 0x41c   : > { %v4560_v53 = vor.u32 %v5286_v51, %v4559_v46  ;;  %v4564_v57 = vor.u32 %v5284_v52, %v4561_v54 }
 0x41d   : > { %5530 = vtanh.f32 %v1983_v55  ;;  %v1994_v59 = vmul.f32 0.5, %v1984_v56  ;;  %v4567_v55 = vld [vmem:[%s6087_s22 + $0x88] sm:$0xf]  ;;  %v5287_v56 = vld [vmem:[%s6087_s22 + $0x94] sm:$0xf0] }
 0x41e   : > { %v5527_v60 = vpop.eup %5526  ;;  %v4568_v58 = vor.u32 %v5287_v56, %v4567_v55  ;;  %2501 = vmatpush.bf16.msra.mxu1 %v4564_v57  ;;  %v2011_v55 = vld [vmem:[#allocation3 + $0x78] sm:$0xff]  ;;  %v2012_v56 = vld [vmem:[#allocation3 + $0x60] sm:$0xff] }
 0x41f   : > { %v5529_v61 = vpop.eup %5528  ;;  %v1987_v62 = vmul.f32 0.5, %v5527_v60  ;;  %5532 = vtanh.f32 %v1994_v59  ;;  %v5285_v59 = vld [vmem:[%s6087_s22 + $0x8c] sm:$0xf]  ;;  %v4569_v60 = vld [vmem:[%s6087_s22 + $0x98] sm:$0xf0] }
 0x420   : > { %v1991_v63 = vmul.f32 0.5, %v5529_v61  ;;  %v4572_v61 = vor.u32 %v5285_v59, %v4569_v60  ;;  %2514 = vmatpush.bf16.msra.mxu2 %v4568_v58 }
 0x421   : > { %v1988_v1 = vadd.f32 0.5, %v1987_v62  ;;  %v4543_v62 = vld [vmem:[%s6087_s22 + $0x60] sm:$0xf] }
 0x422   : > { %v1992_v2 = vadd.f32 0.5, %v1991_v63  ;;  %v1966_v3 = vpop.f32.mrf.mxu2  ;;  %v1979_v4 = vpop.f32.mrf.mxu3  ;;  %v5282_v63 = vld [vmem:[%s6087_s22 + $0x6c] sm:$0xf0]  ;;  %2527 = vmatpush.bf16.msra.mxu3 %v4572_v61 }
 0x423   : > { %v5531_v6 = vpop.eup %5530  ;;  %v4545_v3 = vld [vmem:[%s6087_s22 + $0x70] sm:$0xf0]  ;;  %v4551_v4 = vld [vmem:[%s6087_s22 + $0x68] sm:$0xf] }
 0x424   : > { %v1999_v7 = vmul.f32 %v1992_v2, %v6514_v5  ;;  %v2000_v8 = vmul.f32 %v5531_v6, %v1988_v1  ;;  %v4607_v5 = vld [vmem:[%s6087_s22 + $0xe0] sm:$0xf]  ;;  %v5280_v1 = vld [vmem:[%s6087_s22 + $0x64] sm:$0xf]  ;;  %v4544_v2 = vor.u32 %v5282_v63, %v4543_v62  ;;  %v5283_v6 = vld [vmem:[%s6087_s22 + $0x74] sm:$0xf0] }
 0x425   : > { %v5533_v9 = vpop.eup %5532  ;;  %v4608_v17 = vor.u32 %v5298_v15, %v4607_v5  ;;  %v4529_v15 = vld [vmem:[%s6087_s22 + $0x50] sm:$0xf0] }
 0x426   : > { %v6582_v10 = vadd.f32 %v2000_v8, %v1999_v7  ;;  %v1996_v0 = vmul.f32 0.5, %v5533_v9  ;;  %v4548_v7 = vor.u32 %v5280_v1, %v4545_v3  ;;  %v4552_v8 = vor.u32 %v5283_v6, %v4551_v4  ;;  %v5281_v9 = vld [vmem:[%s6087_s22 + $0x6c] sm:$0xf] }
 0x427   : > { %2485 = vmatpush.bf16.msra.mxu0 %v4608_v17  ;;  %v5279_v17 = vld [vmem:[%s6087_s22 + $0x54] sm:$0xf0] }
 0x428   : > { %5534 = vtanh.f32 %v6582_v10  ;;  %v1997_v11 = vadd.f32 0.5, %v1996_v0  ;;  %v4553_v0 = vld [vmem:[%s6087_s22 + $0x78] sm:$0xf0]  ;;  %2502 = vmatpush.bf16.msra.mxu1 %v4548_v7  ;;  %2515 = vmatpush.bf16.msra.mxu2 %v4552_v8  ;;  %v4536_v19 = vor.u32 %v5279_v17, %v4535_v16 }
 0x42b   : > { %2486 = vmatpush.bf16.msra.mxu0 %v4592_v29  ;;  %v5275_v29 = vld [vmem:[%s6087_s22 + $0x34] sm:$0xf0] }
 0x42c   : > { %2516 = vmatpush.bf16.msra.mxu2 %v4536_v19  ;;  %v4520_v33 = vor.u32 %v5275_v29, %v4519_v28  ;;  %v5330_v19 = vld [vmem:[%s6087_s22 + $0xec] sm:$0xf0]  ;;  %v4745_v28 = vld [vmem:[%s6087_s22 + $0xf8] sm:$0xf0] }
 0x42d   : > { %v4748_v29 = vor.u32 %v5329_v27, %v4745_v28  ;;  %v4639_v27 = vld [vmem:[%s6087_s22 + $0x20] sm:$0xf]  ;;  %v5306_v28 = vld [vmem:[%s6087_s22 + $0x2c] sm:$0xf0] }
 0x42e   : > { %v5535_v12 = vpop.eup %5534 }
 0x42f   : > { %v2003_v13 = vmul.f32 %v5535_v12, %v1997_v11  ;;  %2487 = vmatpush.bf16.msra.mxu0 %v4576_v41  ;;  %v4556_v11 = vor.u32 %v5281_v9, %v4553_v0  ;;  %v4527_v12 = vld [vmem:[%s6087_s22 + $0x40] sm:$0xf]  ;;  %v5271_v41 = vld [vmem:[%s6087_s22 + $0x14] sm:$0xf0] }
 0x430   : > { %2517 = vmatpush.bf16.msra.mxu2 %v4520_v33  ;;  %v4504_v43 = vor.u32 %v5271_v41, %v4503_v40  ;;  %v5326_v33 = vld [vmem:[%s6087_s22 + $0xcc] sm:$0xf0]  ;;  %v4729_v40 = vld [vmem:[%s6087_s22 + $0xd8] sm:$0xf0] }
 0x431   : > { %2007 = vst [vmem:[#allocation2 + $0x18] sm:$0xff] %v2003_v13  ;;  %v2014_v14 = vpack.c.bf16 %v2003_v13, %v2003_v13  ;;  %v5278_v13 = vld [vmem:[%s6087_s22 + $0x4c] sm:$0xf0]  ;;  %2528 = vmatpush.bf16.msra.mxu3 %v4556_v11  ;;  %v4732_v41 = vor.u32 %v5325_v39, %v4729_v40  ;;  %v4623_v39 = vld [vmem:[%s6087_s22] sm:$0xf] }
 0x432   : > { %v4528_v5 = vor.u32 %v5278_v13, %v4527_v12  ;;  %v5302_v40 = vld [vmem:[%s6087_s22 + $0xc] sm:$0xf0] }
 0x433   : > { %2215 = vmatmul.bf16.vlgmr.msrb.gmra.mxu0 %v2014_v14  ;;  %2228 = vmatmul.bf16.vlgmr.msrb.gmra.mxu1 %v2014_v14 }
 0x434   : > { %2241 = vmatmul.bf16.vlgmr.msrb.gmra.mxu2 %v2014_v14  ;;  %2254 = vmatmul.bf16.vlgmr.msrb.gmra.mxu3 %v2014_v14  ;;  %v5276_v14 = vld [vmem:[%s6087_s22 + $0x44] sm:$0xf] }
 0x435   : > { %2488 = vmatpush.bf16.msra.mxu0 %v4560_v53  ;;  %v4532_v18 = vor.u32 %v5276_v14, %v4529_v15  ;;  %2529 = vmatpush.bf16.msra.mxu3 %v4540_v22  ;;  %v4737_v22 = vld [vmem:[%s6087_s22 + $0xf0] sm:$0xf0] }
 0x436   : > { %2518 = vmatpush.bf16.msra.mxu2 %v4504_v43  ;;  %v4740_v25 = vor.u32 %v5328_v20, %v4737_v22  ;;  %v5322_v43 = vld [vmem:[%s6087_s22 + $0xac] sm:$0xf0]  ;;  %v4663_v20 = vld [vmem:[%s6087_s22 + $0x48] sm:$0xf] }
 0x437   : > { %2503 = vmatpush.bf16.msra.mxu1 %v4532_v18 }
 0x439   : > { %2489 = vmatpush.bf16.msra.mxu0 %v4544_v2  ;;  %2530 = vmatpush.bf16.msra.mxu3 %v4524_v30  ;;  %v4721_v30 = vld [vmem:[%s6087_s22 + $0xd0] sm:$0xf0] }
 0x43a   : > { %v4724_v38 = vor.u32 %v5324_v34, %v4721_v30  ;;  %v4647_v34 = vld [vmem:[%s6087_s22 + $0x28] sm:$0xf] }
 0x43b   : > { %2504 = vmatpush.bf16.msra.mxu1 %v4516_v32  ;;  %v4719_v32 = vld [vmem:[%s6087_s22 + $0xc0] sm:$0xf] }
 0x43c   : > { %v4720_v35 = vor.u32 %v5326_v33, %v4719_v32  ;;  %v4640_v32 = vor.u32 %v5306_v28, %v4639_v27  ;;  %v4641_v33 = vld [vmem:[%s6087_s22 + $0x30] sm:$0xf0]  ;;  %v4871_v27 = vld [vmem:[%s6087_s22 + $0xe8] sm:$0xf]  ;;  %v5363_v28 = vld [vmem:[%s6087_s22 + $0xf4] sm:$0xf0] }
 0x43d   : > { %2490 = vmatpush.bf16.msra.mxu0 %v4528_v5  ;;  %2531 = vmatpush.bf16.msra.mxu3 %v4508_v48  ;;  %v4705_v48 = vld [vmem:[%s6087_s22 + $0xb0] sm:$0xf0] }
 0x43f   : > { %2505 = vmatpush.bf16.msra.mxu1 %v4500_v42  ;;  %v4703_v42 = vld [vmem:[%s6087_s22 + $0xa0] sm:$0xf] }
 0x440   : > { %v4704_v47 = vor.u32 %v5322_v43, %v4703_v42  ;;  %v4624_v42 = vor.u32 %v5302_v40, %v4623_v39  ;;  %v4625_v43 = vld [vmem:[%s6087_s22 + $0x10] sm:$0xf0]  ;;  %v4855_v39 = vld [vmem:[%s6087_s22 + $0xc8] sm:$0xf]  ;;  %v5359_v40 = vld [vmem:[%s6087_s22 + $0xd4] sm:$0xf0] }
 0x441   : > { %2491 = vmatpush.bf16.msra.mxu0 %v4512_v26  ;;  %v4744_v26 = vor.u32 %v5331_v24, %v4743_v23  ;;  %2802 = vmatpush.bf16.msrb.mxu3 %v4748_v29  ;;  %v5309_v24 = vld [vmem:[%s6087_s22 + $0x4c] sm:$0xf]  ;;  %v5304_v29 = vld [vmem:[%s6087_s22 + $0x24] sm:$0xf] }
 0x442   : > { %v4644_v30 = vor.u32 %v5304_v29, %v4641_v33  ;;  %v5361_v33 = vld [vmem:[%s6087_s22 + $0xec] sm:$0xf] }
 0x443   : > { %2776 = vmatpush.bf16.msrb.mxu1 %v4740_v25  ;;  %2789 = vmatpush.bf16.msrb.mxu2 %v4744_v26  ;;  %v4665_v25 = vld [vmem:[%s6087_s22 + $0x58] sm:$0xf0] }
 0x444   : > { %v4668_v26 = vor.u32 %v5309_v24, %v4665_v25  ;;  %v5360_v24 = vld [vmem:[%s6087_s22 + $0xe4] sm:$0xf] }
 0x445   : > { %2492 = vmatpush.bf16.msra.mxu0 %v4496_v37  ;;  %v4728_v37 = vor.u32 %v5327_v36, %v4727_v31  ;;  %2803 = vmatpush.bf16.msrb.mxu3 %v4732_v41  ;;  %v5305_v36 = vld [vmem:[%s6087_s22 + $0x2c] sm:$0xf]  ;;  %v5300_v41 = vld [vmem:[%s6087_s22 + $0x4] sm:$0xf] }
 0x447   : > { %2777 = vmatpush.bf16.msrb.mxu1 %v4724_v38  ;;  %2790 = vmatpush.bf16.msrb.mxu2 %v4728_v37  ;;  %v4649_v38 = vld [vmem:[%s6087_s22 + $0x38] sm:$0xf0] }
 0x448   : > { %v4652_v37 = vor.u32 %v5305_v36, %v4649_v38  ;;  %v5356_v36 = vld [vmem:[%s6087_s22 + $0xc4] sm:$0xf] }
 0x4b0   : > { %v2216_v45 = vpop.f32.mrf.mxu0  ;;  %v2229_v46 = vpop.f32.mrf.mxu1 }
 0x4b1   : > { %v2259_v51 = vadd.f32 %v2216_v45, %v2009_v49  ;;  %v2260_v52 = vadd.f32 %v2229_v46, %v2010_v50  ;;  %v4708_v49 = vor.u32 %v5320_v44, %v4705_v48  ;;  %v4711_v50 = vld [vmem:[%s6087_s22 + $0xa8] sm:$0xf]  ;;  %v5323_v45 = vld [vmem:[%s6087_s22 + $0xb4] sm:$0xf0]  ;;  %v5321_v46 = vld [vmem:[%s6087_s22 + $0xac] sm:$0xf]  ;;  %v4628_v48 = vor.u32 %v5300_v41, %v4625_v43 }
 0x4b2   : > { %v4631_v44 = vld [vmem:[%s6087_s22 + $0x8] sm:$0xf]  ;;  %v5357_v43 = vld [vmem:[%s6087_s22 + $0xcc] sm:$0xf] }
 0x4b3   : > { %v2263_v53 = vmul.f32 0.5, %v2259_v51  ;;  %v2267_v54 = vmul.f32 0.5, %v2260_v52  ;;  %v4712_v51 = vor.u32 %v5323_v45, %v4711_v50  ;;  %v4713_v52 = vld [vmem:[%s6087_s22 + $0xb8] sm:$0xf0]  ;;  %2778 = vmatpush.bf16.msrb.mxu1 %v4708_v49  ;;  %v5301_v50 = vld [vmem:[%s6087_s22 + $0xc] sm:$0xf] }
 0x4b4   : > { %v4633_v45 = vld [vmem:[%s6087_s22 + $0x18] sm:$0xf0] }
 0x4b5   : > { %5536 = vtanh.f32 %v2263_v53  ;;  %v4716_v53 = vor.u32 %v5321_v46, %v4713_v52  ;;  %2791 = vmatpush.bf16.msrb.mxu2 %v4712_v51  ;;  %v4636_v46 = vor.u32 %v5301_v50, %v4633_v45  ;;  %v2287_v51 = vld [vmem:[#allocation3 + $0xb0] sm:$0xff]  ;;  %v2288_v52 = vld [vmem:[#allocation3 + $0xc8] sm:$0xff] }
 0x4b6   : > { %5538 = vtanh.f32 %v2267_v54  ;;  %v4687_v54 = vld [vmem:[%s6087_s22 + $0x80] sm:$0xf]  ;;  %v5352_v50 = vld [vmem:[%s6087_s22 + $0xa4] sm:$0xf] }
 0x4b7   : > { %v2242_v57 = vpop.f32.mrf.mxu2  ;;  %v2255_v58 = vpop.f32.mrf.mxu3  ;;  %2804 = vmatpush.bf16.msrb.mxu3 %v4716_v53 }
 0x4b8   : > { %v2261_v59 = vadd.f32 %v2242_v57, %v2011_v55  ;;  %v2262_v60 = vadd.f32 %v2255_v58, %v2012_v56  ;;  %v2218_v61 = vpop.f32.mrf.mxu0  ;;  %v2231_v62 = vpop.f32.mrf.mxu1  ;;  %v5318_v55 = vld [vmem:[%s6087_s22 + $0x8c] sm:$0xf0]  ;;  %v5316_v56 = vld [vmem:[%s6087_s22 + $0x84] sm:$0xf]  ;;  %v4689_v58 = vld [vmem:[%s6087_s22 + $0x90] sm:$0xf0] }
 0x4b9   : > { %v4688_v57 = vor.u32 %v5318_v55, %v4687_v54  ;;  %v4692_v61 = vor.u32 %v5316_v56, %v4689_v58 }
 0x4ba   : > { %5540 = vtanh.f32 %v2261_v59  ;;  %v2272_v63 = vmul.f32 0.5, %v2262_v60  ;;  %v4695_v59 = vld [vmem:[%s6087_s22 + $0x88] sm:$0xf]  ;;  %v5319_v60 = vld [vmem:[%s6087_s22 + $0x94] sm:$0xf0] }
 0x4bb   : > { %v5537_v1 = vpop.eup %5536  ;;  %v4696_v62 = vor.u32 %v5319_v60, %v4695_v59  ;;  %2779 = vmatpush.bf16.msrb.mxu1 %v4692_v61  ;;  %v2289_v59 = vld [vmem:[#allocation3 + $0x70] sm:$0xff] }
 0x4bc   : > { %v5539_v2 = vpop.eup %5538  ;;  %v2265_v3 = vmul.f32 0.5, %v5537_v1  ;;  %5542 = vtanh.f32 %v2272_v63  ;;  %v5317_v63 = vld [vmem:[%s6087_s22 + $0x8c] sm:$0xf]  ;;  %v4697_v1 = vld [vmem:[%s6087_s22 + $0x98] sm:$0xf0] }
 0x4bd   : > { %v2269_v4 = vmul.f32 0.5, %v5539_v2  ;;  %v4700_v2 = vor.u32 %v5317_v63, %v4697_v1  ;;  %2792 = vmatpush.bf16.msrb.mxu2 %v4696_v62  ;;  %v2290_v60 = vld [vmem:[#allocation3 + $0x30] sm:$0xff] }
 0x4be   : > { %v2266_v6 = vadd.f32 0.5, %v2265_v3  ;;  %v4671_v3 = vld [vmem:[%s6087_s22 + $0x60] sm:$0xf] }
 0x4bf   : > { %v2270_v7 = vadd.f32 0.5, %v2269_v4  ;;  %v2244_v8 = vpop.f32.mrf.mxu2  ;;  %v2257_v9 = vpop.f32.mrf.mxu3  ;;  %v5314_v4 = vld [vmem:[%s6087_s22 + $0x6c] sm:$0xf0]  ;;  %2805 = vmatpush.bf16.msrb.mxu3 %v4700_v2 }
 0x4c0   : > { %v5541_v0 = vpop.eup %5540  ;;  %v4673_v8 = vld [vmem:[%s6087_s22 + $0x70] sm:$0xf0]  ;;  %v4679_v9 = vld [vmem:[%s6087_s22 + $0x68] sm:$0xf] }
 0x4c1   : > { %v2277_v11 = vmul.f32 %v2270_v7, %v6582_v10  ;;  %v2278_v12 = vmul.f32 %v5541_v0, %v2266_v6  ;;  %v4735_v10 = vld [vmem:[%s6087_s22 + $0xe0] sm:$0xf]  ;;  %v5312_v6 = vld [vmem:[%s6087_s22 + $0x64] sm:$0xf]  ;;  %v4672_v7 = vor.u32 %v5314_v4, %v4671_v3  ;;  %v5315_v0 = vld [vmem:[%s6087_s22 + $0x74] sm:$0xf0] }
 0x4c2   : > { %v5543_v13 = vpop.eup %5542  ;;  %v4736_v21 = vor.u32 %v5330_v19, %v4735_v10  ;;  %v4657_v19 = vld [vmem:[%s6087_s22 + $0x50] sm:$0xf0] }
 0x4c3   : > { %v6650_v14 = vadd.f32 %v2278_v12, %v2277_v11  ;;  %v2274_v5 = vmul.f32 0.5, %v5543_v13  ;;  %v4676_v11 = vor.u32 %v5312_v6, %v4673_v8  ;;  %v4680_v12 = vor.u32 %v5315_v0, %v4679_v9  ;;  %v5313_v13 = vld [vmem:[%s6087_s22 + $0x6c] sm:$0xf] }
 0x4c4   : > { %2763 = vmatpush.bf16.msrb.mxu0 %v4736_v21  ;;  %v5311_v21 = vld [vmem:[%s6087_s22 + $0x54] sm:$0xf0] }
 0x4c5   : > { %5544 = vtanh.f32 %v6650_v14  ;;  %v2275_v15 = vadd.f32 0.5, %v2274_v5  ;;  %v4681_v5 = vld [vmem:[%s6087_s22 + $0x78] sm:$0xf0]  ;;  %2780 = vmatpush.bf16.msrb.mxu1 %v4676_v11  ;;  %2793 = vmatpush.bf16.msrb.mxu2 %v4680_v12  ;;  %v4664_v23 = vor.u32 %v5311_v21, %v4663_v20 }
 0x4c8   : > { %2764 = vmatpush.bf16.msrb.mxu0 %v4720_v35  ;;  %v5307_v35 = vld [vmem:[%s6087_s22 + $0x34] sm:$0xf0] }
 0x4c9   : > { %2794 = vmatpush.bf16.msrb.mxu2 %v4664_v23  ;;  %v4648_v31 = vor.u32 %v5307_v35, %v4647_v34  ;;  %v5362_v23 = vld [vmem:[%s6087_s22 + $0xec] sm:$0xf0]  ;;  %v4873_v34 = vld [vmem:[%s6087_s22 + $0xf8] sm:$0xf0] }
 0x4ca   : > { %v4876_v35 = vor.u32 %v5361_v33, %v4873_v34  ;;  %v4767_v33 = vld [vmem:[%s6087_s22 + $0x20] sm:$0xf]  ;;  %v5338_v34 = vld [vmem:[%s6087_s22 + $0x2c] sm:$0xf0] }
 0x4cb   : > { %v5545_v16 = vpop.eup %5544 }
 0x4cc   : > { %v2281_v17 = vmul.f32 %v5545_v16, %v2275_v15  ;;  %2765 = vmatpush.bf16.msrb.mxu0 %v4704_v47  ;;  %v4684_v15 = vor.u32 %v5313_v13, %v4681_v5  ;;  %v4655_v16 = vld [vmem:[%s6087_s22 + $0x40] sm:$0xf]  ;;  %v5303_v47 = vld [vmem:[%s6087_s22 + $0x14] sm:$0xf0] }
 0x4cd   : > { %2795 = vmatpush.bf16.msrb.mxu2 %v4648_v31  ;;  %v4632_v49 = vor.u32 %v5303_v47, %v4631_v44  ;;  %v5358_v31 = vld [vmem:[%s6087_s22 + $0xcc] sm:$0xf0]  ;;  %v4857_v44 = vld [vmem:[%s6087_s22 + $0xd8] sm:$0xf0] }
 0x4ce   : > { %2285 = vst [vmem:[#allocation2 + $0x10] sm:$0xff] %v2281_v17  ;;  %v2292_v18 = vpack.c.bf16 %v2281_v17, %v2281_v17  ;;  %v5310_v17 = vld [vmem:[%s6087_s22 + $0x4c] sm:$0xf0]  ;;  %2806 = vmatpush.bf16.msrb.mxu3 %v4684_v15  ;;  %v4860_v47 = vor.u32 %v5357_v43, %v4857_v44  ;;  %v4751_v43 = vld [vmem:[%s6087_s22] sm:$0xf] }
 0x4cf   : > { %v4656_v10 = vor.u32 %v5310_v17, %v4655_v16  ;;  %v5334_v44 = vld [vmem:[%s6087_s22 + $0xc] sm:$0xf0] }
 0x4d0   : > { %2493 = vmatmul.bf16.vlgmr.msra.gmra.mxu0 %v2292_v18  ;;  %2506 = vmatmul.bf16.vlgmr.msra.gmra.mxu1 %v2292_v18 }
 0x4d1   : > { %2519 = vmatmul.bf16.vlgmr.msra.gmra.mxu2 %v2292_v18  ;;  %2532 = vmatmul.bf16.vlgmr.msra.gmra.mxu3 %v2292_v18  ;;  %v5308_v18 = vld [vmem:[%s6087_s22 + $0x44] sm:$0xf] }
 0x4d2   : > { %2766 = vmatpush.bf16.msrb.mxu0 %v4688_v57  ;;  %v4660_v22 = vor.u32 %v5308_v18, %v4657_v19  ;;  %2807 = vmatpush.bf16.msrb.mxu3 %v4668_v26  ;;  %v4865_v26 = vld [vmem:[%s6087_s22 + $0xf0] sm:$0xf0] }
 0x4d3   : > { %2796 = vmatpush.bf16.msrb.mxu2 %v4632_v49  ;;  %v4868_v29 = vor.u32 %v5360_v24, %v4865_v26  ;;  %v5354_v49 = vld [vmem:[%s6087_s22 + $0xac] sm:$0xf0]  ;;  %v4791_v24 = vld [vmem:[%s6087_s22 + $0x48] sm:$0xf] }
 0x4d4   : > { %2781 = vmatpush.bf16.msrb.mxu1 %v4660_v22 }
 0x4d6   : > { %2767 = vmatpush.bf16.msrb.mxu0 %v4672_v7  ;;  %2808 = vmatpush.bf16.msrb.mxu3 %v4652_v37  ;;  %v4849_v37 = vld [vmem:[%s6087_s22 + $0xd0] sm:$0xf0] }
 0x4d7   : > { %v4852_v41 = vor.u32 %v5356_v36, %v4849_v37  ;;  %v4775_v36 = vld [vmem:[%s6087_s22 + $0x28] sm:$0xf] }
 0x4d8   : > { %2782 = vmatpush.bf16.msrb.mxu1 %v4644_v30  ;;  %v4847_v30 = vld [vmem:[%s6087_s22 + $0xc0] sm:$0xf] }
 0x4d9   : > { %v4848_v38 = vor.u32 %v5358_v31, %v4847_v30  ;;  %v4768_v30 = vor.u32 %v5338_v34, %v4767_v33  ;;  %v4769_v31 = vld [vmem:[%s6087_s22 + $0x30] sm:$0xf0]  ;;  %v4999_v33 = vld [vmem:[%s6087_s22 + $0xe8] sm:$0xf]  ;;  %v5395_v34 = vld [vmem:[%s6087_s22 + $0xf4] sm:$0xf0] }
 0x4da   : > { %2768 = vmatpush.bf16.msrb.mxu0 %v4656_v10  ;;  %2809 = vmatpush.bf16.msrb.mxu3 %v4636_v46  ;;  %v4833_v46 = vld [vmem:[%s6087_s22 + $0xb0] sm:$0xf0] }
 0x4dc   : > { %2783 = vmatpush.bf16.msrb.mxu1 %v4628_v48  ;;  %v4831_v48 = vld [vmem:[%s6087_s22 + $0xa0] sm:$0xf] }
 0x4dd   : > { %v4832_v45 = vor.u32 %v5354_v49, %v4831_v48  ;;  %v4752_v48 = vor.u32 %v5334_v44, %v4751_v43  ;;  %v4753_v49 = vld [vmem:[%s6087_s22 + $0x10] sm:$0xf0]  ;;  %v4983_v43 = vld [vmem:[%s6087_s22 + $0xc8] sm:$0xf]  ;;  %v5391_v44 = vld [vmem:[%s6087_s22 + $0xd4] sm:$0xf0] }
 0x4de   : > { %2769 = vmatpush.bf16.msrb.mxu0 %v4640_v32  ;;  %v4872_v32 = vor.u32 %v5363_v28, %v4871_v27  ;;  %3080 = vmatpush.bf16.msra.mxu3 %v4876_v35  ;;  %v5341_v28 = vld [vmem:[%s6087_s22 + $0x4c] sm:$0xf]  ;;  %v5336_v35 = vld [vmem:[%s6087_s22 + $0x24] sm:$0xf] }
 0x4df   : > { %v4772_v37 = vor.u32 %v5336_v35, %v4769_v31  ;;  %v5393_v31 = vld [vmem:[%s6087_s22 + $0xec] sm:$0xf] }
 0x4e0   : > { %3054 = vmatpush.bf16.msra.mxu1 %v4868_v29  ;;  %3067 = vmatpush.bf16.msra.mxu2 %v4872_v32  ;;  %v4793_v29 = vld [vmem:[%s6087_s22 + $0x58] sm:$0xf0] }
 0x4e1   : > { %v4796_v32 = vor.u32 %v5341_v28, %v4793_v29  ;;  %v5392_v28 = vld [vmem:[%s6087_s22 + $0xe4] sm:$0xf] }
 0x4e2   : > { %2770 = vmatpush.bf16.msrb.mxu0 %v4624_v42  ;;  %v4856_v42 = vor.u32 %v5359_v40, %v4855_v39  ;;  %3081 = vmatpush.bf16.msra.mxu3 %v4860_v47  ;;  %v5337_v40 = vld [vmem:[%s6087_s22 + $0x2c] sm:$0xf]  ;;  %v5332_v47 = vld [vmem:[%s6087_s22 + $0x4] sm:$0xf] }
 0x4e4   : > { %3055 = vmatpush.bf16.msra.mxu1 %v4852_v41  ;;  %3068 = vmatpush.bf16.msra.mxu2 %v4856_v42  ;;  %v4777_v41 = vld [vmem:[%s6087_s22 + $0x38] sm:$0xf0] }
 0x4e5   : > { %v4780_v42 = vor.u32 %v5337_v40, %v4777_v41  ;;  %v5388_v40 = vld [vmem:[%s6087_s22 + $0xc4] sm:$0xf] }
 0x54d   : > { %v2494_v53 = vpop.f32.mrf.mxu0  ;;  %v2507_v54 = vpop.f32.mrf.mxu1 }
 0x54e   : > { %v2537_v55 = vadd.f32 %v2494_v53, %v2287_v51  ;;  %v2538_v56 = vadd.f32 %v2507_v54, %v2288_v52  ;;  %v4836_v51 = vor.u32 %v5352_v50, %v4833_v46  ;;  %v4839_v52 = vld [vmem:[%s6087_s22 + $0xa8] sm:$0xf]  ;;  %v5355_v53 = vld [vmem:[%s6087_s22 + $0xb4] sm:$0xf0]  ;;  %v5353_v54 = vld [vmem:[%s6087_s22 + $0xac] sm:$0xf]  ;;  %v4756_v46 = vor.u32 %v5332_v47, %v4753_v49 }
 0x54f   : > { %v4759_v50 = vld [vmem:[%s6087_s22 + $0x8] sm:$0xf]  ;;  %v5389_v49 = vld [vmem:[%s6087_s22 + $0xcc] sm:$0xf] }
 0x550   : > { %v2541_v57 = vmul.f32 0.5, %v2537_v55  ;;  %v2545_v58 = vmul.f32 0.5, %v2538_v56  ;;  %v4840_v55 = vor.u32 %v5355_v53, %v4839_v52  ;;  %v4841_v56 = vld [vmem:[%s6087_s22 + $0xb8] sm:$0xf0]  ;;  %3056 = vmatpush.bf16.msra.mxu1 %v4836_v51  ;;  %v5333_v52 = vld [vmem:[%s6087_s22 + $0xc] sm:$0xf] }
 0x551   : > { %v4761_v53 = vld [vmem:[%s6087_s22 + $0x18] sm:$0xf0] }
 0x552   : > { %5546 = vtanh.f32 %v2541_v57  ;;  %v4844_v57 = vor.u32 %v5353_v54, %v4841_v56  ;;  %3069 = vmatpush.bf16.msra.mxu2 %v4840_v55  ;;  %v4764_v54 = vor.u32 %v5333_v52, %v4761_v53  ;;  %v2565_v55 = vld [vmem:[#allocation3 + $0x90] sm:$0xff]  ;;  %v2566_v56 = vld [vmem:[#allocation3 + $0xf8] sm:$0xff]  ;;  %v5384_v52 = vld [vmem:[%s6087_s22 + $0xa4] sm:$0xf] }
 0x553   : > { %5548 = vtanh.f32 %v2545_v58  ;;  %v4815_v58 = vld [vmem:[%s6087_s22 + $0x80] sm:$0xf] }
 0x554   : > { %v2520_v61 = vpop.f32.mrf.mxu2  ;;  %v2533_v62 = vpop.f32.mrf.mxu3  ;;  %3082 = vmatpush.bf16.msra.mxu3 %v4844_v57 }
 0x555   : > { %v2539_v63 = vadd.f32 %v2520_v61, %v2289_v59  ;;  %v2540_v1 = vadd.f32 %v2533_v62, %v2290_v60  ;;  %v2496_v2 = vpop.f32.mrf.mxu0  ;;  %v2509_v3 = vpop.f32.mrf.mxu1  ;;  %v5350_v59 = vld [vmem:[%s6087_s22 + $0x8c] sm:$0xf0]  ;;  %v5348_v60 = vld [vmem:[%s6087_s22 + $0x84] sm:$0xf]  ;;  %v4817_v62 = vld [vmem:[%s6087_s22 + $0x90] sm:$0xf0] }
 0x556   : > { %v4816_v61 = vor.u32 %v5350_v59, %v4815_v58  ;;  %v4820_v2 = vor.u32 %v5348_v60, %v4817_v62 }
 0x557   : > { %5550 = vtanh.f32 %v2539_v63  ;;  %v2550_v4 = vmul.f32 0.5, %v2540_v1  ;;  %v4823_v63 = vld [vmem:[%s6087_s22 + $0x88] sm:$0xf]  ;;  %v5351_v1 = vld [vmem:[%s6087_s22 + $0x94] sm:$0xf0] }
 0x558   : > { %v5547_v6 = vpop.eup %5546  ;;  %v4824_v3 = vor.u32 %v5351_v1, %v4823_v63  ;;  %3057 = vmatpush.bf16.msra.mxu1 %v4820_v2  ;;  %v2567_v63 = vld [vmem:[#allocation3 + $0xb8] sm:$0xff]  ;;  %v2568_v1 = vld [vmem:[#allocation3 + $0x80] sm:$0xff] }
 0x559   : > { %v5549_v7 = vpop.eup %5548  ;;  %v2543_v8 = vmul.f32 0.5, %v5547_v6  ;;  %5552 = vtanh.f32 %v2550_v4  ;;  %v5349_v4 = vld [vmem:[%s6087_s22 + $0x8c] sm:$0xf]  ;;  %v4825_v6 = vld [vmem:[%s6087_s22 + $0x98] sm:$0xf0] }
 0x55a   : > { %v2547_v9 = vmul.f32 0.5, %v5549_v7  ;;  %v4828_v7 = vor.u32 %v5349_v4, %v4825_v6  ;;  %3070 = vmatpush.bf16.msra.mxu2 %v4824_v3 }
 0x55b   : > { %v2544_v0 = vadd.f32 0.5, %v2543_v8  ;;  %v4799_v8 = vld [vmem:[%s6087_s22 + $0x60] sm:$0xf] }
 0x55c   : > { %v2548_v11 = vadd.f32 0.5, %v2547_v9  ;;  %v2522_v12 = vpop.f32.mrf.mxu2  ;;  %v2535_v13 = vpop.f32.mrf.mxu3  ;;  %v5346_v9 = vld [vmem:[%s6087_s22 + $0x6c] sm:$0xf0]  ;;  %3083 = vmatpush.bf16.msra.mxu3 %v4828_v7 }
 0x55d   : > { %v5551_v5 = vpop.eup %5550  ;;  %v4801_v12 = vld [vmem:[%s6087_s22 + $0x70] sm:$0xf0]  ;;  %v4807_v13 = vld [vmem:[%s6087_s22 + $0x68] sm:$0xf] }
 0x55e   : > { %v2555_v15 = vmul.f32 %v2548_v11, %v6650_v14  ;;  %v2556_v16 = vmul.f32 %v5551_v5, %v2544_v0  ;;  %v4863_v14 = vld [vmem:[%s6087_s22 + $0xe0] sm:$0xf]  ;;  %v5344_v0 = vld [vmem:[%s6087_s22 + $0x64] sm:$0xf]  ;;  %v4800_v11 = vor.u32 %v5346_v9, %v4799_v8  ;;  %v5347_v5 = vld [vmem:[%s6087_s22 + $0x74] sm:$0xf0] }
 0x55f   : > { %v5553_v17 = vpop.eup %5552  ;;  %v4864_v25 = vor.u32 %v5362_v23, %v4863_v14  ;;  %v4785_v23 = vld [vmem:[%s6087_s22 + $0x50] sm:$0xf0] }
 0x560   : > { %v6718_v18 = vadd.f32 %v2556_v16, %v2555_v15  ;;  %v2552_v10 = vmul.f32 0.5, %v5553_v17  ;;  %v4804_v15 = vor.u32 %v5344_v0, %v4801_v12  ;;  %v4808_v16 = vor.u32 %v5347_v5, %v4807_v13  ;;  %v5345_v17 = vld [vmem:[%s6087_s22 + $0x6c] sm:$0xf] }
 0x561   : > { %3041 = vmatpush.bf16.msra.mxu0 %v4864_v25  ;;  %v5343_v25 = vld [vmem:[%s6087_s22 + $0x54] sm:$0xf0] }
 0x562   : > { %5554 = vtanh.f32 %v6718_v18  ;;  %v2553_v19 = vadd.f32 0.5, %v2552_v10  ;;  %v4809_v10 = vld [vmem:[%s6087_s22 + $0x78] sm:$0xf0]  ;;  %3058 = vmatpush.bf16.msra.mxu1 %v4804_v15  ;;  %3071 = vmatpush.bf16.msra.mxu2 %v4808_v16  ;;  %v4792_v27 = vor.u32 %v5343_v25, %v4791_v24 }
 0x565   : > { %3042 = vmatpush.bf16.msra.mxu0 %v4848_v38  ;;  %v5339_v38 = vld [vmem:[%s6087_s22 + $0x34] sm:$0xf0] }
 0x566   : > { %3072 = vmatpush.bf16.msra.mxu2 %v4792_v27  ;;  %v4776_v39 = vor.u32 %v5339_v38, %v4775_v36  ;;  %v5394_v27 = vld [vmem:[%s6087_s22 + $0xec] sm:$0xf0]  ;;  %v5001_v36 = vld [vmem:[%s6087_s22 + $0xf8] sm:$0xf0] }
 0x567   : > { %v5004_v38 = vor.u32 %v5393_v31, %v5001_v36  ;;  %v4895_v31 = vld [vmem:[%s6087_s22 + $0x20] sm:$0xf]  ;;  %v5370_v36 = vld [vmem:[%s6087_s22 + $0x2c] sm:$0xf0] }
 0x568   : > { %v5555_v20 = vpop.eup %5554 }
 0x569   : > { %v2559_v21 = vmul.f32 %v5555_v20, %v2553_v19  ;;  %3043 = vmatpush.bf16.msra.mxu0 %v4832_v45  ;;  %v4812_v19 = vor.u32 %v5345_v17, %v4809_v10  ;;  %v4783_v20 = vld [vmem:[%s6087_s22 + $0x40] sm:$0xf]  ;;  %v5335_v45 = vld [vmem:[%s6087_s22 + $0x14] sm:$0xf0] }
 0x56a   : > { %3073 = vmatpush.bf16.msra.mxu2 %v4776_v39  ;;  %v4760_v51 = vor.u32 %v5335_v45, %v4759_v50  ;;  %v5390_v39 = vld [vmem:[%s6087_s22 + $0xcc] sm:$0xf0]  ;;  %v4985_v50 = vld [vmem:[%s6087_s22 + $0xd8] sm:$0xf0] }
 0x56b   : > { %2563 = vst [vmem:[#allocation2 + $0x8] sm:$0xff] %v2559_v21  ;;  %v2570_v22 = vpack.c.bf16 %v2559_v21, %v2559_v21  ;;  %v5342_v21 = vld [vmem:[%s6087_s22 + $0x4c] sm:$0xf0]  ;;  %3084 = vmatpush.bf16.msra.mxu3 %v4812_v19  ;;  %v4988_v45 = vor.u32 %v5389_v49, %v4985_v50  ;;  %v4879_v49 = vld [vmem:[%s6087_s22] sm:$0xf] }
 0x56c   : > { %v4784_v14 = vor.u32 %v5342_v21, %v4783_v20  ;;  %v5366_v50 = vld [vmem:[%s6087_s22 + $0xc] sm:$0xf0] }
 0x56d   : > { %2771 = vmatmul.bf16.vlgmr.msrb.gmra.mxu0 %v2570_v22  ;;  %2784 = vmatmul.bf16.vlgmr.msrb.gmra.mxu1 %v2570_v22 }
 0x56e   : > { %2797 = vmatmul.bf16.vlgmr.msrb.gmra.mxu2 %v2570_v22  ;;  %2810 = vmatmul.bf16.vlgmr.msrb.gmra.mxu3 %v2570_v22  ;;  %v5340_v22 = vld [vmem:[%s6087_s22 + $0x44] sm:$0xf] }
 0x56f   : > { %3044 = vmatpush.bf16.msra.mxu0 %v4816_v61  ;;  %v4788_v26 = vor.u32 %v5340_v22, %v4785_v23  ;;  %3085 = vmatpush.bf16.msra.mxu3 %v4796_v32  ;;  %v4993_v32 = vld [vmem:[%s6087_s22 + $0xf0] sm:$0xf0] }
 0x570   : > { %3074 = vmatpush.bf16.msra.mxu2 %v4760_v51  ;;  %v4996_v35 = vor.u32 %v5392_v28, %v4993_v32  ;;  %v5386_v51 = vld [vmem:[%s6087_s22 + $0xac] sm:$0xf0]  ;;  %v4919_v28 = vld [vmem:[%s6087_s22 + $0x48] sm:$0xf] }
 0x571   : > { %3059 = vmatpush.bf16.msra.mxu1 %v4788_v26 }
 0x573   : > { %3045 = vmatpush.bf16.msra.mxu0 %v4800_v11  ;;  %3086 = vmatpush.bf16.msra.mxu3 %v4780_v42  ;;  %v4977_v42 = vld [vmem:[%s6087_s22 + $0xd0] sm:$0xf0] }
 0x574   : > { %v4980_v47 = vor.u32 %v5388_v40, %v4977_v42  ;;  %v4903_v40 = vld [vmem:[%s6087_s22 + $0x28] sm:$0xf] }
 0x575   : > { %3060 = vmatpush.bf16.msra.mxu1 %v4772_v37  ;;  %v4975_v37 = vld [vmem:[%s6087_s22 + $0xc0] sm:$0xf] }
 0x576   : > { %v4976_v41 = vor.u32 %v5390_v39, %v4975_v37  ;;  %v4896_v37 = vor.u32 %v5370_v36, %v4895_v31  ;;  %v4897_v39 = vld [vmem:[%s6087_s22 + $0x30] sm:$0xf0] }
 0x577   : > { %3046 = vmatpush.bf16.msra.mxu0 %v4784_v14  ;;  %3087 = vmatpush.bf16.msra.mxu3 %v4764_v54  ;;  %v4961_v54 = vld [vmem:[%s6087_s22 + $0xb0] sm:$0xf0] }
 0x579   : > { %3061 = vmatpush.bf16.msra.mxu1 %v4756_v46  ;;  %v4959_v46 = vld [vmem:[%s6087_s22 + $0xa0] sm:$0xf] }
 0x57a   : > { %v4960_v53 = vor.u32 %v5386_v51, %v4959_v46  ;;  %v4880_v46 = vor.u32 %v5366_v50, %v4879_v49  ;;  %v4881_v51 = vld [vmem:[%s6087_s22 + $0x10] sm:$0xf0] }
 0x57b   : > { %3047 = vmatpush.bf16.msra.mxu0 %v4768_v30  ;;  %v5000_v30 = vor.u32 %v5395_v34, %v4999_v33  ;;  %3358 = vmatpush.bf16.msrb.mxu3 %v5004_v38  ;;  %v5373_v34 = vld [vmem:[%s6087_s22 + $0x4c] sm:$0xf]  ;;  %v5368_v38 = vld [vmem:[%s6087_s22 + $0x24] sm:$0xf] }
 0x57c   : > { %v4900_v42 = vor.u32 %v5368_v38, %v4897_v39  ;;  %v3124_v39 = vld [vmem:[#allocation3 + $0x88] sm:$0xff] }
 0x57d   : > { %3332 = vmatpush.bf16.msrb.mxu1 %v4996_v35  ;;  %3345 = vmatpush.bf16.msrb.mxu2 %v5000_v30  ;;  %v4921_v35 = vld [vmem:[%s6087_s22 + $0x58] sm:$0xf0] }
 0x57e   : > { %v4924_v30 = vor.u32 %v5373_v34, %v4921_v35  ;;  %v3122_v34 = vld [vmem:[#allocation3 + $0xc0] sm:$0xff] }
 0x57f   : > { %3048 = vmatpush.bf16.msra.mxu0 %v4752_v48  ;;  %v4984_v48 = vor.u32 %v5391_v44, %v4983_v43  ;;  %3359 = vmatpush.bf16.msrb.mxu3 %v4988_v45  ;;  %v5369_v44 = vld [vmem:[%s6087_s22 + $0x2c] sm:$0xf]  ;;  %v5364_v45 = vld [vmem:[%s6087_s22 + $0x4] sm:$0xf] }
 0x581   : > { %3333 = vmatpush.bf16.msrb.mxu1 %v4980_v47  ;;  %3346 = vmatpush.bf16.msrb.mxu2 %v4984_v48  ;;  %v4905_v47 = vld [vmem:[%s6087_s22 + $0x38] sm:$0xf0] }
 0x582   : > { %v4908_v48 = vor.u32 %v5369_v44, %v4905_v47 }
 0x5ea   : > { %v2772_v57 = vpop.f32.mrf.mxu0  ;;  %v2785_v58 = vpop.f32.mrf.mxu1 }
 0x5eb   : > { %v2815_v59 = vadd.f32 %v2772_v57, %v2565_v55  ;;  %v2816_v60 = vadd.f32 %v2785_v58, %v2566_v56  ;;  %v4964_v55 = vor.u32 %v5384_v52, %v4961_v54  ;;  %v4967_v56 = vld [vmem:[%s6087_s22 + $0xa8] sm:$0xf]  ;;  %v5387_v57 = vld [vmem:[%s6087_s22 + $0xb4] sm:$0xf0]  ;;  %v5385_v58 = vld [vmem:[%s6087_s22 + $0xac] sm:$0xf]  ;;  %v4884_v54 = vor.u32 %v5364_v45, %v4881_v51 }
 0x5ec   : > { %v4887_v52 = vld [vmem:[%s6087_s22 + $0x8] sm:$0xf] }
 0x5ed   : > { %v2819_v61 = vmul.f32 0.5, %v2815_v59  ;;  %v2823_v62 = vmul.f32 0.5, %v2816_v60  ;;  %v4968_v59 = vor.u32 %v5387_v57, %v4967_v56  ;;  %v4969_v60 = vld [vmem:[%s6087_s22 + $0xb8] sm:$0xf0]  ;;  %3334 = vmatpush.bf16.msrb.mxu1 %v4964_v55  ;;  %v5365_v56 = vld [vmem:[%s6087_s22 + $0xc] sm:$0xf] }
 0x5ee   : > { %v4889_v57 = vld [vmem:[%s6087_s22 + $0x18] sm:$0xf0] }
 0x5ef   : > { %5556 = vtanh.f32 %v2819_v61  ;;  %v4972_v61 = vor.u32 %v5385_v58, %v4969_v60  ;;  %3347 = vmatpush.bf16.msrb.mxu2 %v4968_v59  ;;  %v4892_v58 = vor.u32 %v5365_v56, %v4889_v57  ;;  %v2843_v59 = vld [vmem:[#allocation3 + $0x48] sm:$0xff]  ;;  %v2844_v60 = vld [vmem:[#allocation3 + $0x38] sm:$0xff] }
 0x5f0   : > { %5558 = vtanh.f32 %v2823_v62  ;;  %v4943_v62 = vld [vmem:[%s6087_s22 + $0x80] sm:$0xf] }
 0x5f1   : > { %v2798_v2 = vpop.f32.mrf.mxu2  ;;  %v2811_v3 = vpop.f32.mrf.mxu3  ;;  %3360 = vmatpush.bf16.msrb.mxu3 %v4972_v61 }
 0x5f2   : > { %v2817_v4 = vadd.f32 %v2798_v2, %v2567_v63  ;;  %v2818_v6 = vadd.f32 %v2811_v3, %v2568_v1  ;;  %v2774_v7 = vpop.f32.mrf.mxu0  ;;  %v2787_v8 = vpop.f32.mrf.mxu1  ;;  %v5382_v63 = vld [vmem:[%s6087_s22 + $0x8c] sm:$0xf0]  ;;  %v5380_v1 = vld [vmem:[%s6087_s22 + $0x84] sm:$0xf]  ;;  %v4945_v3 = vld [vmem:[%s6087_s22 + $0x90] sm:$0xf0] }
 0x5f3   : > { %v4944_v2 = vor.u32 %v5382_v63, %v4943_v62  ;;  %v4948_v7 = vor.u32 %v5380_v1, %v4945_v3 }
 0x5f4   : > { %5560 = vtanh.f32 %v2817_v4  ;;  %v2828_v9 = vmul.f32 0.5, %v2818_v6  ;;  %v4951_v4 = vld [vmem:[%s6087_s22 + $0x88] sm:$0xf]  ;;  %v5383_v6 = vld [vmem:[%s6087_s22 + $0x94] sm:$0xf0] }
 0x5f5   : > { %v5557_v0 = vpop.eup %5556  ;;  %v4952_v8 = vor.u32 %v5383_v6, %v4951_v4  ;;  %3335 = vmatpush.bf16.msrb.mxu1 %v4948_v7  ;;  %v2845_v4 = vld [vmem:[#allocation3 + $0xd8] sm:$0xff] }
 0x5f6   : > { %v5559_v11 = vpop.eup %5558  ;;  %v2821_v12 = vmul.f32 0.5, %v5557_v0  ;;  %5562 = vtanh.f32 %v2828_v9  ;;  %v5381_v9 = vld [vmem:[%s6087_s22 + $0x8c] sm:$0xf]  ;;  %v4953_v0 = vld [vmem:[%s6087_s22 + $0x98] sm:$0xf0]  ;;  %v2846_v6 = vld [vmem:[#allocation3 + $0x98] sm:$0xff] }
 0x5f7   : > { %v2825_v13 = vmul.f32 0.5, %v5559_v11  ;;  %v4956_v11 = vor.u32 %v5381_v9, %v4953_v0  ;;  %3348 = vmatpush.bf16.msrb.mxu2 %v4952_v8 }
 0x5f8   : > { %v2822_v5 = vadd.f32 0.5, %v2821_v12  ;;  %v4927_v12 = vld [vmem:[%s6087_s22 + $0x60] sm:$0xf] }
 0x5f9   : > { %v2826_v15 = vadd.f32 0.5, %v2825_v13  ;;  %v2800_v16 = vpop.f32.mrf.mxu2  ;;  %v2813_v17 = vpop.f32.mrf.mxu3  ;;  %v5378_v13 = vld [vmem:[%s6087_s22 + $0x6c] sm:$0xf0]  ;;  %3361 = vmatpush.bf16.msrb.mxu3 %v4956_v11 }
 0x5fa   : > { %v5561_v10 = vpop.eup %5560  ;;  %v4929_v16 = vld [vmem:[%s6087_s22 + $0x70] sm:$0xf0]  ;;  %v4935_v17 = vld [vmem:[%s6087_s22 + $0x68] sm:$0xf] }
 0x5fb   : > { %v2833_v19 = vmul.f32 %v2826_v15, %v6718_v18  ;;  %v2834_v20 = vmul.f32 %v5561_v10, %v2822_v5  ;;  %v4991_v18 = vld [vmem:[%s6087_s22 + $0xe0] sm:$0xf]  ;;  %v5376_v5 = vld [vmem:[%s6087_s22 + $0x64] sm:$0xf]  ;;  %v4928_v15 = vor.u32 %v5378_v13, %v4927_v12  ;;  %v5379_v10 = vld [vmem:[%s6087_s22 + $0x74] sm:$0xf0] }
 0x5fc   : > { %v5563_v21 = vpop.eup %5562  ;;  %v4992_v29 = vor.u32 %v5394_v27, %v4991_v18  ;;  %v4913_v27 = vld [vmem:[%s6087_s22 + $0x50] sm:$0xf0] }
 0x5fd   : > { %v6786_v22 = vadd.f32 %v2834_v20, %v2833_v19  ;;  %v2830_v14 = vmul.f32 0.5, %v5563_v21  ;;  %v4932_v19 = vor.u32 %v5376_v5, %v4929_v16  ;;  %v4936_v20 = vor.u32 %v5379_v10, %v4935_v17  ;;  %v5377_v21 = vld [vmem:[%s6087_s22 + $0x6c] sm:$0xf] }
 0x5fe   : > { %3319 = vmatpush.bf16.msrb.mxu0 %v4992_v29  ;;  %v5375_v29 = vld [vmem:[%s6087_s22 + $0x54] sm:$0xf0] }
 0x5ff   : > { %5564 = vtanh.f32 %v6786_v22  ;;  %v2831_v23 = vadd.f32 0.5, %v2830_v14  ;;  %v4937_v14 = vld [vmem:[%s6087_s22 + $0x78] sm:$0xf0]  ;;  %3336 = vmatpush.bf16.msrb.mxu1 %v4932_v19  ;;  %3349 = vmatpush.bf16.msrb.mxu2 %v4936_v20  ;;  %v4920_v33 = vor.u32 %v5375_v29, %v4919_v28 }
 0x602   : > { %3320 = vmatpush.bf16.msrb.mxu0 %v4976_v41  ;;  %v5371_v41 = vld [vmem:[%s6087_s22 + $0x34] sm:$0xf0] }
 0x603   : > { %3350 = vmatpush.bf16.msrb.mxu2 %v4920_v33  ;;  %v4904_v43 = vor.u32 %v5371_v41, %v4903_v40  ;;  %v3121_v33 = vld [vmem:[#allocation3 + $0x58] sm:$0xff] }
 0x605   : > { %v5565_v24 = vpop.eup %5564 }
 0x606   : > { %v2837_v25 = vmul.f32 %v5565_v24, %v2831_v23  ;;  %3321 = vmatpush.bf16.msrb.mxu0 %v4960_v53  ;;  %v4940_v23 = vor.u32 %v5377_v21, %v4937_v14  ;;  %v4911_v24 = vld [vmem:[%s6087_s22 + $0x40] sm:$0xf]  ;;  %v5367_v53 = vld [vmem:[%s6087_s22 + $0x14] sm:$0xf0] }
 0x607   : > { %3351 = vmatpush.bf16.msrb.mxu2 %v4904_v43  ;;  %v4888_v55 = vor.u32 %v5367_v53, %v4887_v52 }
 0x608   : > { %2841 = vst [vmem:[#allocation2 + $0x20] sm:$0xff] %v2837_v25  ;;  %v2848_v26 = vpack.c.bf16 %v2837_v25, %v2837_v25  ;;  %v5374_v25 = vld [vmem:[%s6087_s22 + $0x4c] sm:$0xf0]  ;;  %3362 = vmatpush.bf16.msrb.mxu3 %v4940_v23 }
 0x609   : > { %v4912_v18 = vor.u32 %v5374_v25, %v4911_v24 }
 0x60a   : > { %3049 = vmatmul.bf16.vlgmr.msra.gmra.mxu0 %v2848_v26  ;;  %3062 = vmatmul.bf16.vlgmr.msra.gmra.mxu1 %v2848_v26 }
 0x60b   : > { %3075 = vmatmul.bf16.vlgmr.msra.gmra.mxu2 %v2848_v26  ;;  %3088 = vmatmul.bf16.vlgmr.msra.gmra.mxu3 %v2848_v26  ;;  %v5372_v26 = vld [vmem:[%s6087_s22 + $0x44] sm:$0xf] }
 0x60c   : > { %3322 = vmatpush.bf16.msrb.mxu0 %v4944_v2  ;;  %v4916_v32 = vor.u32 %v5372_v26, %v4913_v27  ;;  %3363 = vmatpush.bf16.msrb.mxu3 %v4924_v30 }
 0x60d   : > { %3352 = vmatpush.bf16.msrb.mxu2 %v4888_v55 }
 0x60e   : > { %3337 = vmatpush.bf16.msrb.mxu1 %v4916_v32 }
 0x610   : > { %3323 = vmatpush.bf16.msrb.mxu0 %v4928_v15  ;;  %3364 = vmatpush.bf16.msrb.mxu3 %v4908_v48 }
 0x612   : > { %3338 = vmatpush.bf16.msrb.mxu1 %v4900_v42 }
 0x614   : > { %3324 = vmatpush.bf16.msrb.mxu0 %v4912_v18  ;;  %3365 = vmatpush.bf16.msrb.mxu3 %v4892_v58 }
 0x616   : > { %3339 = vmatpush.bf16.msrb.mxu1 %v4884_v54 }
 0x618   : > { %3325 = vmatpush.bf16.msrb.mxu0 %v4896_v37  ;;  %v3123_v37 = vld [vmem:[#allocation3 + $0x40] sm:$0xff] }
 0x61c   : > { %3326 = vmatpush.bf16.msrb.mxu0 %v4880_v46 }
 0x687   : > { %v3050_v61 = vpop.f32.mrf.mxu0  ;;  %v3063_v62 = vpop.f32.mrf.mxu1 }
 0x688   : > { %v3093_v63 = vadd.f32 %v3050_v61, %v2843_v59  ;;  %v3094_v1 = vadd.f32 %v3063_v62, %v2844_v60 }
 0x68a   : > { %v3097_v2 = vmul.f32 0.5, %v3093_v63  ;;  %v3101_v3 = vmul.f32 0.5, %v3094_v1 }
 0x68c   : > { %5566 = vtanh.f32 %v3097_v2 }
 0x68d   : > { %5568 = vtanh.f32 %v3101_v3 }
 0x68e   : > { %v3076_v7 = vpop.f32.mrf.mxu2  ;;  %v3089_v8 = vpop.f32.mrf.mxu3 }
 0x68f   : > { %v3095_v9 = vadd.f32 %v3076_v7, %v2845_v4  ;;  %v3096_v0 = vadd.f32 %v3089_v8, %v2846_v6  ;;  %v3052_v11 = vpop.f32.mrf.mxu0  ;;  %v3065_v12 = vpop.f32.mrf.mxu1 }
 0x691   : > { %5570 = vtanh.f32 %v3095_v9  ;;  %v3106_v13 = vmul.f32 0.5, %v3096_v0 }
 0x692   : > { %v5567_v5 = vpop.eup %5566 }
 0x693   : > { %v5569_v15 = vpop.eup %5568  ;;  %v3099_v16 = vmul.f32 0.5, %v5567_v5  ;;  %5572 = vtanh.f32 %v3106_v13 }
 0x694   : > { %v3103_v17 = vmul.f32 0.5, %v5569_v15 }
 0x695   : > { %v3100_v10 = vadd.f32 0.5, %v3099_v16 }
 0x696   : > { %v3104_v19 = vadd.f32 0.5, %v3103_v17  ;;  %v3078_v20 = vpop.f32.mrf.mxu2  ;;  %v3091_v21 = vpop.f32.mrf.mxu3 }
 0x697   : > { %v5571_v14 = vpop.eup %5570 }
 0x698   : > { %v3111_v23 = vmul.f32 %v3104_v19, %v6786_v22  ;;  %v3112_v24 = vmul.f32 %v5571_v14, %v3100_v10 }
 0x699   : > { %v5573_v25 = vpop.eup %5572 }
 0x69a   : > { %v3113_v26 = vadd.f32 %v3112_v24, %v3111_v23  ;;  %v3108_v18 = vmul.f32 0.5, %v5573_v25 }
 0x69c   : > { %5574 = vtanh.f32 %v3113_v26  ;;  %v3109_v27 = vadd.f32 0.5, %v3108_v18 }
 0x6a2   : > { %v5575_v28 = vpop.eup %5574 }
 0x6a3   : > { %v3115_v29 = vmul.f32 %v5575_v28, %v3109_v27 }
 0x6a5   : > { %3119 = vst [vmem:[#allocation2 + $0x28] sm:$0xff] %v3115_v29  ;;  %v3126_v32 = vpack.c.bf16 %v3115_v29, %v3115_v29 }
 0x6a7   : > { %3327 = vmatmul.bf16.vlgmr.msrb.gmra.mxu0 %v3126_v32  ;;  %3340 = vmatmul.bf16.vlgmr.msrb.gmra.mxu1 %v3126_v32 }
 0x6a8   : > { %3353 = vmatmul.bf16.vlgmr.msrb.gmra.mxu2 %v3126_v32  ;;  %3366 = vmatmul.bf16.vlgmr.msrb.gmra.mxu3 %v3126_v32 }
 0x724   : > { %v3328_v35 = vpop.f32.mrf.mxu0  ;;  %v3341_v30 = vpop.f32.mrf.mxu1 }
 0x725   : > { %v3371_v31 = vadd.f32 %v3328_v35, %v3121_v33  ;;  %v3372_v22 = vadd.f32 %v3341_v30, %v3122_v34 }
 0x727   : > { %v3375_v36 = vmul.f32 0.5, %v3371_v31  ;;  %v3379_v38 = vmul.f32 0.5, %v3372_v22 }
 0x729   : > { %5576 = vtanh.f32 %v3375_v36 }
 0x72a   : > { %5578 = vtanh.f32 %v3379_v38 }
 0x72b   : > { %v3354_v40 = vpop.f32.mrf.mxu2  ;;  %v3367_v41 = vpop.f32.mrf.mxu3 }
 0x72c   : > { %v3373_v42 = vadd.f32 %v3354_v40, %v3123_v37  ;;  %v3374_v43 = vadd.f32 %v3367_v41, %v3124_v39  ;;  %v3330_v44 = vpop.f32.mrf.mxu0  ;;  %v3343_v47 = vpop.f32.mrf.mxu1 }
 0x72e   : > { %5580 = vtanh.f32 %v3373_v42  ;;  %v3384_v48 = vmul.f32 0.5, %v3374_v43 }
 0x72f   : > { %v5577_v49 = vpop.eup %5576 }
 0x730   : > { %v5579_v50 = vpop.eup %5578  ;;  %v3377_v45 = vmul.f32 0.5, %v5577_v49  ;;  %5582 = vtanh.f32 %v3384_v48 }
 0x731   : > { %v3381_v46 = vmul.f32 0.5, %v5579_v50 }
 0x732   : > { %v3378_v51 = vadd.f32 0.5, %v3377_v45 }
 0x733   : > { %v3382_v52 = vadd.f32 0.5, %v3381_v46  ;;  %v3356_v53 = vpop.f32.mrf.mxu2  ;;  %v3369_v54 = vpop.f32.mrf.mxu3 }
 0x734   : > { %v5581_v55 = vpop.eup %5580 }
 0x735   : > { %v3389_v56 = vmul.f32 %v3382_v52, %v3113_v26  ;;  %v3390_v57 = vmul.f32 %v5581_v55, %v3378_v51 }
 0x736   : > { %v5583_v58 = vpop.eup %5582 }
 0x737   : > { %v3391_v59 = vadd.f32 %v3390_v57, %v3389_v56  ;;  %v3386_v60 = vmul.f32 0.5, %v5583_v58 }
 0x739   : > { %5584 = vtanh.f32 %v3391_v59  ;;  %v3387_v61 = vadd.f32 0.5, %v3386_v60 }
 0x73f   : > { %v5585_v62 = vpop.eup %5584  ;;  %3401 = sbr.rel (%p5005_p1) target bundleno = 2158 (0x86e), region = 88 }
 0x740   : > { %v3393_v63 = vmul.f32 %v5585_v62, %v3387_v61 }
 0x742   : > { %3395 = vst [vmem:[#allocation4] sm:$0xff] %v3393_v63 }
 0x743   : > { %3397 = vst [vmem:[#allocation2 + $0x38] sm:$0xff] %v3393_v63 }
 0x744   : > { %v5403_v1 = vld [vmem:[#allocation14 + $0x38] sm:$0xff]  ;;  %v5402_v2 = vld [vmem:[#allocation14 + $0x30] sm:$0xff]  ;;  %v5401_v6 = vld [vmem:[#allocation14 + $0x28] sm:$0xff] }
 0x745   : > { %3472 = vmatpush.bf16.msra.mxu0 %v5403_v1  ;;  %v5411_v3 = vld [vmem:[#allocation15 + $0x38] sm:$0xff]  ;;  %v5410_v4 = vld [vmem:[#allocation15 + $0x30] sm:$0xff]  ;;  %v5409_v7 = vld [vmem:[#allocation15 + $0x28] sm:$0xff] }
 0x746   : > { %3555 = vmatpush.bf16.msra.mxu1 %v5411_v3  ;;  %v5400_v8 = vld [vmem:[#allocation14 + $0x20] sm:$0xff]  ;;  %v5399_v0 = vld [vmem:[#allocation14 + $0x18] sm:$0xff]  ;;  %v5398_v12 = vld [vmem:[#allocation14 + $0x10] sm:$0xff] }
 0x747   : > { %v5408_v9 = vld [vmem:[#allocation15 + $0x20] sm:$0xff]  ;;  %v5407_v11 = vld [vmem:[#allocation15 + $0x18] sm:$0xff]  ;;  %v5406_v13 = vld [vmem:[#allocation15 + $0x10] sm:$0xff] }
 0x748   : > { %v5397_v5 = vld [vmem:[#allocation14 + $0x8] sm:$0xff]  ;;  %v5396_v15 = vld [vmem:[#allocation14] sm:$0xff]  ;;  %v5586_v20 = vld [vmem:[%s6883_s5] ss:$0 sm:$0xff] }
 0x749   : > { %3473 = vmatpush.bf16.msra.mxu0 %v5402_v2  ;;  %v3402_v16 = vld [vmem:[#allocation4] sm:$0xff]  ;;  %v5405_v10 = vld [vmem:[#allocation15 + $0x8] sm:$0xff]  ;;  %v5404_v19 = vld [vmem:[#allocation15] sm:$0xff] }
 0x74a   : > { %3556 = vmatpush.bf16.msra.mxu1 %v5410_v4  ;;  %v3403_v17 = vpack.c.bf16 %v3402_v16, %v3402_v16  ;;  %v5587_v26 = vld [vmem:[%s6885_s7] ss:$0 sm:$0xff] }
 0x74d   : > { %3474 = vmatpush.bf16.msra.mxu0 %v5401_v6 }
 0x74e   : > { %3557 = vmatpush.bf16.msra.mxu1 %v5409_v7 }
 0x751   : > { %3475 = vmatpush.bf16.msra.mxu0 %v5400_v8 }
 0x752   : > { %3558 = vmatpush.bf16.msra.mxu1 %v5408_v9 }
 0x755   : > { %3476 = vmatpush.bf16.msra.mxu0 %v5399_v0 }
 0x756   : > { %3559 = vmatpush.bf16.msra.mxu1 %v5407_v11 }
 0x759   : > { %3477 = vmatpush.bf16.msra.mxu0 %v5398_v12 }
 0x75a   : > { %3560 = vmatpush.bf16.msra.mxu1 %v5406_v13 }
 0x75d   : > { %3478 = vmatpush.bf16.msra.mxu0 %v5397_v5 }
 0x75e   : > { %3561 = vmatpush.bf16.msra.mxu1 %v5405_v10 }
 0x761   : > { %3479 = vmatpush.bf16.msra.mxu0 %v5396_v15 }
 0x762   : > { %3562 = vmatpush.bf16.msra.mxu1 %v5404_v19 }
 0x764   : > { %3480 = vmatmul.bf16.vlgmr.msra.gmra.mxu0 %v3403_v17 }
 0x7e1   : > { %v3481_v21 = vpop.f32.mrf.mxu0 }
 0x7e2   : > { %v3482_v14 = vadd.f32 %v5586_v20, %v3481_v21 }
 0x7e4   : > { %v3485_v23 = vmax.f32 %v3482_v14, 0.0 }
 0x7e6   : > { %v3486_v24 = vpack.c.bf16 %v3485_v23, %v3485_v23 }
 0x7e8   : > { %3563 = vmatmul.bf16.vlgmr.msra.gmra.mxu1 %v3486_v24 }
 0x7e9   : > { %v3483_v25 = vpop.f32.mrf.mxu0 }
 0x865   : > { %v3564_v18 = vpop.f32.mrf.mxu1 }
 0x866   : > { %v3565_v27 = vadd.f32 %v5587_v26, %v3564_v18 }
 0x868   : > { %3568 = vst [vmem:[#allocation17] sm:$0xff] %v3565_v27 }
 0x86d   : > { %v3566_v28 = vpop.f32.mrf.mxu1 }
 0x86e PF: > { %p5461_p4 = scmp.eq.s32.totalorder %s5927_s9, 1  ;;  %s5862_s20 = smov [#allocation17]  }
 0x86f   : > { %s3575_s18 = sshll.u32 %s5862_s20, 4  ;;  %s3577_s4 = sshll.u32 %s6886_s8, 4  ;;  %s3576_s18 = int_to_ptr.vmem [resolvable:$true] %s3575_s18  ;;  %s3578_s4 = int_to_ptr.hbm [resolvable:$true] %s3577_s4 }
 0x870   : > { %5431 = dma.vmem_to_hbm [thread:$0]  (%p5461_p4), %s3576_s18, 128, %s3578_s4, [#allocation8]  }
 0x871   : > { %5833 = dma.done.wait (%p5461_p4), [#allocation8], 128  }
 0x872   : > { %5835 = vsyncadd (%p5461_p4), [#allocation8], 4294967168 }
 0x873 PF: > { %s6917_s30 = sld [smem:[#allocation24_spill]]  ;;  %s6919_s27 = smov %s5842_s28 }
 0x874   : > { %s6918_s13 = sld [smem:[#allocation25_spill]]  ;;  %s6920_s28 = smov %s5846_s29 }
 0x879   : > { %p24_p5 = scmp.ge.s32.totalorder %s6917_s30, 4  }
 0x87a   : > { %s6921_s29 = smov %s6918_s13 }
 0x87b   :  { %26 = sbr.rel (!%p24_p5) target bundleno = 12 (0xc), region = 152 }
 0x880   :  { %3591 = vsyncpa [#allocation7], 1 }
 0x881   :  { %3593 = vsyncpa [#allocation7 + $0x1], 1 }
 0x882   :  { %3594 = vsyncpa [#allocation10], 1 }
 0x883   :  { %3596 = vsyncpa [#allocation10 + $0x1], 1 }
 0x884   :  { %3597 = vsyncpa [#allocation13], 1 }
 0x885   :  { %3599 = vsyncpa [#allocation13 + $0x1], 1 }
 0x886   :  { %3600 = vsyncpa [#allocation16], 1 }
 0x887   :  { %3601 = vsyncpa [#allocation8], 1 }
 0x888   :  { %3603 = vsyncpa [#allocation8 + $0x1], 1 }

</bundles_post_ra>
